<compile_context>
chip_gen: v7x
topology: tpu7x:2x2x1
jax: 0.10.0
libtpu: 0.0.40
codegen_flags: <defaults>
</compile_context>

<pallas_src>
import functools

import numpy as np
import jax
import jax.numpy as jnp
from jax.experimental import pallas as pl
from jax.experimental.pallas import tpu as pltpu

# --- module-consistent sizes --------------------------------------------------
BATCH = 200            # demo batch
DATA_DIM = 32          # data_dim
H_DIM = 128            # h_dim
NUM_BLOCKS = 2         # num_blocks
GAUSS_FILTER_DIM = 5   # odd -> symmetric 'same' padding (matches F.conv1d)
C_DIM = 64             # 2 ** 6
OUT_PAD = 128          # lane-dense padding of the 1-wide fc2 output
MAX_TILE_B = 512       # rows per grid step beyond which we start tiling


# --- host-side helpers --------------------------------------------------------
def gaussian_window(m, std):
    # scipy.signal.windows.gaussian(m, std)
    n = np.arange(m, dtype=np.float64) - (m - 1) / 2.0
    return np.exp(-0.5 * (n / std) ** 2).astype(np.float32)


def conv_same_toeplitz(filt, h):
    """Matrix M with (x @ M)[b, n] == F.conv1d(x[b], filt, padding='same')[n]."""
    k = len(filt)
    pad = (k - 1) // 2
    mat = np.zeros((h, h), np.float32)
    for m in range(h):
        for n in range(h):
            j = m - n + pad
            if 0 <= j < k:
                mat[m, n] = filt[j]
    return mat


def _device_kind():
    try:
        return jax.devices()[0].device_kind.lower()
    except Exception:  # pragma: no cover
        return ""


# --- in-kernel math -----------------------------------------------------------
def _leaky_relu(x, slope=0.1):
    return jnp.where(x >= 0, x, slope * x)


def _normalize(z, eps=1e-5):
    # LayerNorm without affine (affine folded into downstream weights).
    # Moments form -> the two cross-lane reductions are independent (XLU overlap).
    mu = jnp.mean(z, axis=-1, keepdims=True)
    ms = jnp.mean(z * z, axis=-1, keepdims=True)
    var = jnp.maximum(ms - mu * mu, 0.0)
    return (z - mu) * jax.lax.rsqrt(var + eps)


def discriminator_kernel(x_ref, w1_ref, wcc_ref, wl_ref, w2_ref, vec_ref,
                         bcc_ref, o_ref, *, lrelu_bf16):
    bf16 = jnp.bfloat16
    v = vec_ref[...]                       # (8, H) packed per-channel vectors (f32)
    b1 = v[0:1, :]                         # fc1 bias
    prelu_a = v[1:2, :]                    # PReLU slope
    bcc = bcc_ref[...]                     # (NB, 1, 3C) fused first-layer biases

    # fc1 -> PReLU -> LN0 (LN0 affine is folded into block 0's weights)
    x = x_ref[...]                         # (TB, D) bf16, pre-cast on host
    h = jnp.dot(x, w1_ref[...], preferred_element_type=jnp.float32) + b1
    h = jnp.where(h >= 0, h, prelu_a * h)  # PReLU
    n = _normalize(h)

    for i in range(NUM_BLOCKS):
        blf = v[2 + i:3 + i, :]                               # bl + beta_in (fused)
        gres = v[2 + NUM_BLOCKS + i:3 + NUM_BLOCKS + i, :]    # gamma_in (residual)
        # fused (gauss-conv + per-scale linear + LN-affine), 3 scales along N:
        # (TB,128) @ (128,192) -> LeakyReLU(0.1) -> (TB,192) @ (192,128)
        lin = jnp.dot(n.astype(bf16), wcc_ref[i],
                      preferred_element_type=jnp.float32) + bcc[i]
        if lrelu_bf16:
            act = _leaky_relu(lin.astype(bf16))               # bf16 VPU (v6e/v7x)
        else:
            act = _leaky_relu(lin).astype(bf16)               # f32 VPU (v5e-safe)
        mix = jnp.dot(act, wl_ref[i],
                      preferred_element_type=jnp.float32) + blf
        n = _normalize(mix + gres * n)     # residual add; next LN affine folded

    b2 = v[2 + 2 * NUM_BLOCKS:3 + 2 * NUM_BLOCKS, :]
    # fc2 (h_dim -> 1) with the last LN affine folded in, padded to 128 lanes
    # for a lane-dense store (no sigmoid in the original forward()).
    o_ref[...] = jnp.dot(n.astype(bf16), w2_ref[...],
                         preferred_element_type=jnp.float32) + b2


# --- host-side algebraic fusion -----------------------------------------------
def _fuse_params(P, conv_mats):
    """Fold the gaussian conv (Toeplitz) AND every LayerNorm affine into the
    linear layers.  All folds are done in f32; bf16 casting happens later."""
    g_in = [P["g0"][0]] + [P["g1"][i, 0] for i in range(NUM_BLOCKS - 1)]
    be_in = [P["be0"][0]] + [P["be1"][i, 0] for i in range(NUM_BLOCKS - 1)]

    wcc, bcc, bl_fused, gres = [], [], [], []
    for i in range(NUM_BLOCKS):
        w_parts, b_parts = [], []
        for t in range(3):
            m = conv_mats[t]                                   # (H, H) Toeplitz
            w_parts.append((g_in[i][:, None] * m) @ P["wc"][t][i])       # (H, C)
            b_parts.append(be_in[i][None, :] @ m @ P["wc"][t][i]
                           + P["bc"][t][i])                               # (1, C)
        wcc.append(jnp.concatenate(w_parts, axis=1))           # (H, 3C)
        bcc.append(jnp.concatenate(b_parts, axis=1))           # (1, 3C)
        bl_fused.append(P["bl"][i] + be_in[i][None, :])        # residual beta fold
        gres.append(g_in[i])                                   # residual gamma

    g_last, be_last = P["g1"][NUM_BLOCKS - 1, 0], P["be1"][NUM_BLOCKS - 1, 0]
    w2f = g_last[:, None] * P["w2"]                            # (H, 1)
    b2f = be_last[None, :] @ P["w2"] + P["b2"]                 # (1, 1)
    return jnp.stack(wcc), jnp.stack(bcc), bl_fused, gres, w2f, b2f


def _pack_vectors(P, bl_fused, gres, b2f):
    """Pack all small per-channel vectors into one resident (rows, H) array."""
    rows = [P["b1"][0], P["prelu_a"][0]]
    rows += [bl_fused[i][0] for i in range(NUM_BLOCKS)]
    rows += [gres[i] for i in range(NUM_BLOCKS)]
    rows += [jnp.zeros((H_DIM,), jnp.float32).at[0].set(b2f[0, 0])]
    n_rows = len(rows)
    pad_rows = pl.cdiv(n_rows, 8) * 8
    vec = jnp.zeros((pad_rows, H_DIM), jnp.float32)
    return vec.at[:n_rows].set(jnp.stack(rows))


def _choose_tiling(batch, is_v7):
    min_tiles = 2 if is_v7 else 1          # keep both v7x TensorCores busy
    n_tiles = max(min_tiles, pl.cdiv(batch, MAX_TILE_B))
    tile = pl.cdiv(pl.cdiv(batch, n_tiles), 8) * 8   # sublane-aligned rows/tile
    return tile, n_tiles, tile * n_tiles


# --- wrapper -------------------------------------------------------------------
def discriminator_forward(x, params, conv_mats):
    kind = _device_kind()
    is_v7 = ("v7" in kind) or ("7x" in kind)
    lrelu_bf16 = is_v7 or ("v6" in kind)   # bf16 VPU only on v6e/v7x

    b = x.shape[0]
    tile_b, n_tiles, b_pad = _choose_tiling(b, is_v7)
    if b_pad != b:
        x = jnp.pad(x, ((0, b_pad - b), (0, 0)))

    wcc, bcc, bl_fused, gres, w2f, b2f = _fuse_params(params, conv_mats)
    vec = _pack_vectors(params, bl_fused, gres, b2f)
    w2p = jnp.zeros((H_DIM, OUT_PAD), jnp.float32).at[:, :1].set(w2f)

    bf16 = jnp.bfloat16
    args = (
        x.astype(bf16),                    # pre-cast: halves the streaming DMA
        params["w1"].astype(bf16),         # (D, H)
        wcc.astype(bf16),                  # (NB, H, 3C) conv+LN-affine fused
        params["wl"].astype(bf16),         # (NB, 3C, H)
        w2p.astype(bf16),                  # (H, 128) fc2 padded, LN-affine fused
        vec,                               # (8, H) packed f32 per-channel vectors
        bcc,                               # (NB, 1, 3C) fused biases, f32
    )

    def _resident_spec(shape):
        nd = len(shape)
        return pl.BlockSpec(shape, lambda i, nd=nd: (0,) * nd)

    in_specs = [pl.BlockSpec((tile_b, DATA_DIM), lambda i: (i, 0))]
    in_specs += [_resident_spec(a.shape) for a in args[1:]]

    # "parallel"/"arbitrary" are a codegen no-op; only CORE_PARALLEL actually
    # shards the batch axis across v7x's two TensorCores.
    semantics = (pltpu.CORE_PARALLEL,) if is_v7 else ("arbitrary",)

    kernel = functools.partial(discriminator_kernel, lrelu_bf16=lrelu_bf16)
    out = pl.pallas_call(
        kernel,
        out_shape=jax.ShapeDtypeStruct((b_pad, OUT_PAD), jnp.float32),
        grid=(n_tiles,),
        in_specs=in_specs,
        out_specs=pl.BlockSpec((tile_b, OUT_PAD), lambda i: (i, 0)),
        compiler_params=pltpu.CompilerParams(dimension_semantics=semantics),
    )(*args)
    return out[:b, :1]


# --- pure-JAX reference (unfused, f32) -----------------------------------------
def ref_forward(x, P, filters):
    def lrelu(v, s):
        return jnp.where(v >= 0, v, s * v)

    def ln(v, g, b, eps=1e-5):
        mu = v.mean(-1, keepdims=True)
        var = ((v - mu) ** 2).mean(-1, keepdims=True)
        return (v - mu) / jnp.sqrt(var + eps) * g + b

    def conv_same(v, f):
        k = f.shape[0]
        pad_l = (k - 1) // 2
        pad_r = k - 1 - pad_l
        vp = jnp.pad(v, ((0, 0), (pad_l, pad_r)))
        return sum(f[j] * vp[:, j:j + v.shape[1]] for j in range(k))

    h0 = x @ P["w1"] + P["b1"][0]
    h0 = jnp.where(h0 >= 0, h0, P["prelu_a"][0] * h0)
    out = ln(h0, P["g0"][0], P["be0"][0])
    for i in range(NUM_BLOCKS):
        res = out
        xs = []
        for t in range(3):
            c = conv_same(out, filters[t])
            xs.append(lrelu(c @ P["wc"][t][i] + P["bc"][t][i, 0], 0.1))
        cat = jnp.concatenate(xs, axis=1)
        out = cat @ P["wl"][i] + P["bl"][i, 0]
        out = out + res
        out = ln(out, P["g1"][i, 0], P["be1"][i, 0])
    return out @ P["w2"] + P["b2"][0]


# --- main -----------------------------------------------------------------------
if __name__ == "__main__":
    key = jax.random.PRNGKey(0)
    ks = jax.random.split(key, 18)

    def nrm(k, shape, scale=0.05):
        return (scale * jax.random.normal(k, shape)).astype(jnp.float32)

    params = {
        "w1": nrm(ks[0], (DATA_DIM, H_DIM)),
        "b1": nrm(ks[1], (1, H_DIM)),
        "prelu_a": jnp.full((1, H_DIM), 0.25, jnp.float32),  # nn.PReLU() default
        # Non-trivial LN affines so the host-side folds are actually exercised.
        "g0": 1.0 + nrm(ks[13], (1, H_DIM), 0.1),
        "be0": nrm(ks[14], (1, H_DIM), 0.1),
        "wc": [nrm(ks[2 + t], (NUM_BLOCKS, H_DIM, C_DIM)) for t in range(3)],
        "bc": [nrm(ks[5 + t], (NUM_BLOCKS, 1, C_DIM)) for t in range(3)],
        "wl": nrm(ks[8], (NUM_BLOCKS, 3 * C_DIM, H_DIM)),
        "bl": nrm(ks[9], (NUM_BLOCKS, 1, H_DIM)),
        "g1": 1.0 + nrm(ks[15], (NUM_BLOCKS, 1, H_DIM), 0.1),
        "be1": nrm(ks[16], (NUM_BLOCKS, 1, H_DIM), 0.1),
        "w2": nrm(ks[10], (H_DIM, 1)),
        "b2": nrm(ks[11], (1, 1)),
    }

    filt_np = [gaussian_window(GAUSS_FILTER_DIM, 0.5),
               gaussian_window(GAUSS_FILTER_DIM, 1.0),
               gaussian_window(GAUSS_FILTER_DIM, 3.0)]
    conv_mats = jnp.asarray(
        np.stack([conv_same_toeplitz(f, H_DIM) for f in filt_np]), jnp.float32)
    filters = [jnp.asarray(f) for f in filt_np]

    x = jax.random.normal(ks[12], (BATCH, DATA_DIM), dtype=jnp.float32)

    out = jax.block_until_ready(discriminator_forward(x, params, conv_mats))
    ref = jax.block_until_ready(ref_forward(x, params, filters))

    assert out.shape == (BATCH, 1), out.shape
    err = float(np.max(np.abs(np.asarray(out) - np.asarray(ref))))
    assert np.allclose(np.asarray(out), np.asarray(ref),
                       rtol=2e-2, atol=2e-2), f"max abs err {err}"

    print("KERNEL_OK")
</pallas_src>

<mosaic_0001>
module attributes {stable_mosaic.version = 11 : i64} {
  func.func @discriminator_kernel(%arg0: i32, %arg1: memref<200x32xbf16, #tpu.memory_space<vmem>>, %arg2: memref<32x128xbf16, #tpu.memory_space<vmem>>, %arg3: memref<2x128x192xbf16, #tpu.memory_space<vmem>>, %arg4: memref<2x192x128xbf16, #tpu.memory_space<vmem>>, %arg5: memref<128x128xbf16, #tpu.memory_space<vmem>>, %arg6: memref<8x128xf32, #tpu.memory_space<vmem>>, %arg7: memref<2x1x192xf32, #tpu.memory_space<vmem>>, %arg8: memref<200x128xf32, #tpu.memory_space<vmem>>) attributes {dimension_semantics = [#tpu.dimension_semantics<arbitrary>], iteration_bounds = array<i64: 1>, scalar_prefetch = 0 : i64, scratch_operands = 0 : i64, tpu.core_type = #tpu.core_type<tc>, window_params = [{transform_indices = @transform_0, window_bounds = array<i64: 200, 32>}, {pipeline_mode = #tpu.pipeline_mode<synchronous>, transform_indices = @transform_1, window_bounds = array<i64: 32, 128>}, {pipeline_mode = #tpu.pipeline_mode<synchronous>, transform_indices = @transform_2, window_bounds = array<i64: 2, 128, 192>}, {pipeline_mode = #tpu.pipeline_mode<synchronous>, transform_indices = @transform_3, window_bounds = array<i64: 2, 192, 128>}, {pipeline_mode = #tpu.pipeline_mode<synchronous>, transform_indices = @transform_4, window_bounds = array<i64: 128, 128>}, {pipeline_mode = #tpu.pipeline_mode<synchronous>, transform_indices = @transform_5, window_bounds = array<i64: 8, 128>}, {pipeline_mode = #tpu.pipeline_mode<synchronous>, transform_indices = @transform_6, window_bounds = array<i64: 2, 1, 192>}, {transform_indices = @transform_7, window_bounds = array<i64: 200, 128>}]} {
    %c0 = arith.constant 0 : index
    %c0_0 = arith.constant 0 : index
    %0 = vector.load %arg6[%c0, %c0_0] : memref<8x128xf32, #tpu.memory_space<vmem>>, vector<8x128xf32>
    %1 = vector.extract_strided_slice %0 {offsets = [0, 0], sizes = [1, 128], strides = [1, 1]} : vector<8x128xf32> to vector<1x128xf32>
    %2 = vector.extract_strided_slice %0 {offsets = [1, 0], sizes = [1, 128], strides = [1, 1]} : vector<8x128xf32> to vector<1x128xf32>
    %c0_1 = arith.constant 0 : index
    %c0_2 = arith.constant 0 : index
    %c0_3 = arith.constant 0 : index
    %3 = vector.load %arg7[%c0_1, %c0_2, %c0_3] : memref<2x1x192xf32, #tpu.memory_space<vmem>>, vector<2x1x192xf32>
    %c0_4 = arith.constant 0 : index
    %c0_5 = arith.constant 0 : index
    %4 = vector.load %arg1[%c0_4, %c0_5] : memref<200x32xbf16, #tpu.memory_space<vmem>>, vector<200x32xbf16>
    %c0_6 = arith.constant 0 : index
    %c0_7 = arith.constant 0 : index
    %5 = vector.load %arg2[%c0_6, %c0_7] : memref<32x128xbf16, #tpu.memory_space<vmem>>, vector<32x128xbf16>
    %cst = arith.constant dense<0.000000e+00> : vector<200x128xf32>
    %6 = tpu.matmul %4, %5, %cst {dimension_numbers = #tpu.dot_dimension_numbers<[1], [0], [0], [1], [0, 0, 1, 1], [], []>} : vector<200x32xbf16>, vector<32x128xbf16>, vector<200x128xf32> -> vector<200x128xf32>
    %7 = vector.broadcast %1 : vector<1x128xf32> to vector<200x128xf32>
    %8 = arith.addf %6, %7 : vector<200x128xf32>
    %cst_8 = arith.constant 0.000000e+00 : f32
    %9 = vector.broadcast %cst_8 : f32 to vector<200x128xf32>
    %10 = arith.cmpf oge, %8, %9 : vector<200x128xf32>
    %11 = vector.broadcast %2 : vector<1x128xf32> to vector<200x128xf32>
    %12 = arith.mulf %11, %8 : vector<200x128xf32>
    %13 = arith.select %10, %8, %12 : vector<200x128xi1>, vector<200x128xf32>
    %cst_9 = arith.constant dense<0.000000e+00> : vector<200xf32>
    %14 = vector.multi_reduction <add>, %13, %cst_9 [1] : vector<200x128xf32> to vector<200xf32>
    %15 = vector.shape_cast %14 : vector<200xf32> to vector<200x1xf32>
    %cst_10 = arith.constant 1.280000e+02 : f32
    %16 = vector.broadcast %cst_10 : f32 to vector<200x1xf32>
    %17 = arith.divf %15, %16 : vector<200x1xf32>
    %18 = arith.mulf %13, %13 : vector<200x128xf32>
    %cst_11 = arith.constant dense<0.000000e+00> : vector<200xf32>
    %19 = vector.multi_reduction <add>, %18, %cst_11 [1] : vector<200x128xf32> to vector<200xf32>
    %20 = vector.shape_cast %19 : vector<200xf32> to vector<200x1xf32>
    %cst_12 = arith.constant 1.280000e+02 : f32
    %21 = vector.broadcast %cst_12 : f32 to vector<200x1xf32>
    %22 = arith.divf %20, %21 : vector<200x1xf32>
    %23 = arith.mulf %17, %17 : vector<200x1xf32>
    %24 = arith.subf %22, %23 : vector<200x1xf32>
    %cst_13 = arith.constant 0.000000e+00 : f32
    %25 = vector.broadcast %cst_13 : f32 to vector<200x1xf32>
    %26 = arith.maximumf %24, %25 : vector<200x1xf32>
    %27 = vector.broadcast %17 : vector<200x1xf32> to vector<200x128xf32>
    %28 = arith.subf %13, %27 : vector<200x128xf32>
    %cst_14 = arith.constant 9.99999974E-6 : f32
    %29 = vector.broadcast %cst_14 : f32 to vector<200x1xf32>
    %30 = arith.addf %26, %29 : vector<200x1xf32>
    %31 = math.rsqrt %30 : vector<200x1xf32>
    %32 = vector.broadcast %31 : vector<200x1xf32> to vector<200x128xf32>
    %33 = arith.mulf %28, %32 : vector<200x128xf32>
    %34 = vector.extract_strided_slice %0 {offsets = [2, 0], sizes = [1, 128], strides = [1, 1]} : vector<8x128xf32> to vector<1x128xf32>
    %35 = vector.extract_strided_slice %0 {offsets = [4, 0], sizes = [1, 128], strides = [1, 1]} : vector<8x128xf32> to vector<1x128xf32>
    %36 = arith.truncf %33 : vector<200x128xf32> to vector<200x128xbf16>
    %c0_15 = arith.constant 0 : index
    %c0_16 = arith.constant 0 : index
    %c0_17 = arith.constant 0 : index
    %37 = vector.load %arg3[%c0_15, %c0_16, %c0_17] : memref<2x128x192xbf16, #tpu.memory_space<vmem>>, vector<1x128x192xbf16>
    %38 = vector.shape_cast %37 : vector<1x128x192xbf16> to vector<128x192xbf16>
    %cst_18 = arith.constant dense<0.000000e+00> : vector<200x192xf32>
    %39 = tpu.matmul %36, %38, %cst_18 {dimension_numbers = #tpu.dot_dimension_numbers<[1], [0], [0], [1], [0, 0, 1, 1], [], []>} : vector<200x128xbf16>, vector<128x192xbf16>, vector<200x192xf32> -> vector<200x192xf32>
    %40 = vector.extract_strided_slice %3 {offsets = [0, 0, 0], sizes = [1, 1, 192], strides = [1, 1, 1]} : vector<2x1x192xf32> to vector<1x1x192xf32>
    %41 = vector.shape_cast %40 : vector<1x1x192xf32> to vector<1x192xf32>
    %42 = vector.broadcast %41 : vector<1x192xf32> to vector<200x192xf32>
    %43 = arith.addf %39, %42 : vector<200x192xf32>
    %cst_19 = arith.constant 0.000000e+00 : f32
    %44 = vector.broadcast %cst_19 : f32 to vector<200x192xf32>
    %45 = arith.cmpf oge, %43, %44 : vector<200x192xf32>
    %cst_20 = arith.constant 1.000000e-01 : f32
    %46 = vector.broadcast %cst_20 : f32 to vector<200x192xf32>
    %47 = arith.mulf %46, %43 : vector<200x192xf32>
    %48 = arith.select %45, %43, %47 : vector<200x192xi1>, vector<200x192xf32>
    %49 = arith.truncf %48 : vector<200x192xf32> to vector<200x192xbf16>
    %c0_21 = arith.constant 0 : index
    %c0_22 = arith.constant 0 : index
    %c0_23 = arith.constant 0 : index
    %50 = vector.load %arg4[%c0_21, %c0_22, %c0_23] : memref<2x192x128xbf16, #tpu.memory_space<vmem>>, vector<1x192x128xbf16>
    %51 = vector.shape_cast %50 : vector<1x192x128xbf16> to vector<192x128xbf16>
    %cst_24 = arith.constant dense<0.000000e+00> : vector<200x128xf32>
    %52 = tpu.matmul %49, %51, %cst_24 {dimension_numbers = #tpu.dot_dimension_numbers<[1], [0], [0], [1], [0, 0, 1, 1], [], []>} : vector<200x192xbf16>, vector<192x128xbf16>, vector<200x128xf32> -> vector<200x128xf32>
    %53 = vector.broadcast %34 : vector<1x128xf32> to vector<200x128xf32>
    %54 = arith.addf %52, %53 : vector<200x128xf32>
    %55 = vector.broadcast %35 : vector<1x128xf32> to vector<200x128xf32>
    %56 = arith.mulf %55, %33 : vector<200x128xf32>
    %57 = arith.addf %54, %56 : vector<200x128xf32>
    %cst_25 = arith.constant dense<0.000000e+00> : vector<200xf32>
    %58 = vector.multi_reduction <add>, %57, %cst_25 [1] : vector<200x128xf32> to vector<200xf32>
    %59 = vector.shape_cast %58 : vector<200xf32> to vector<200x1xf32>
    %cst_26 = arith.constant 1.280000e+02 : f32
    %60 = vector.broadcast %cst_26 : f32 to vector<200x1xf32>
    %61 = arith.divf %59, %60 : vector<200x1xf32>
    %62 = arith.mulf %57, %57 : vector<200x128xf32>
    %cst_27 = arith.constant dense<0.000000e+00> : vector<200xf32>
    %63 = vector.multi_reduction <add>, %62, %cst_27 [1] : vector<200x128xf32> to vector<200xf32>
    %64 = vector.shape_cast %63 : vector<200xf32> to vector<200x1xf32>
    %cst_28 = arith.constant 1.280000e+02 : f32
    %65 = vector.broadcast %cst_28 : f32 to vector<200x1xf32>
    %66 = arith.divf %64, %65 : vector<200x1xf32>
    %67 = arith.mulf %61, %61 : vector<200x1xf32>
    %68 = arith.subf %66, %67 : vector<200x1xf32>
    %cst_29 = arith.constant 0.000000e+00 : f32
    %69 = vector.broadcast %cst_29 : f32 to vector<200x1xf32>
    %70 = arith.maximumf %68, %69 : vector<200x1xf32>
    %71 = vector.broadcast %61 : vector<200x1xf32> to vector<200x128xf32>
    %72 = arith.subf %57, %71 : vector<200x128xf32>
    %cst_30 = arith.constant 9.99999974E-6 : f32
    %73 = vector.broadcast %cst_30 : f32 to vector<200x1xf32>
    %74 = arith.addf %70, %73 : vector<200x1xf32>
    %75 = math.rsqrt %74 : vector<200x1xf32>
    %76 = vector.broadcast %75 : vector<200x1xf32> to vector<200x128xf32>
    %77 = arith.mulf %72, %76 : vector<200x128xf32>
    %78 = vector.extract_strided_slice %0 {offsets = [3, 0], sizes = [1, 128], strides = [1, 1]} : vector<8x128xf32> to vector<1x128xf32>
    %79 = vector.extract_strided_slice %0 {offsets = [5, 0], sizes = [1, 128], strides = [1, 1]} : vector<8x128xf32> to vector<1x128xf32>
    %80 = arith.truncf %77 : vector<200x128xf32> to vector<200x128xbf16>
    %c1 = arith.constant 1 : index
    %c0_31 = arith.constant 0 : index
    %c0_32 = arith.constant 0 : index
    %81 = vector.load %arg3[%c1, %c0_31, %c0_32] : memref<2x128x192xbf16, #tpu.memory_space<vmem>>, vector<1x128x192xbf16>
    %82 = vector.shape_cast %81 : vector<1x128x192xbf16> to vector<128x192xbf16>
    %cst_33 = arith.constant dense<0.000000e+00> : vector<200x192xf32>
    %83 = tpu.matmul %80, %82, %cst_33 {dimension_numbers = #tpu.dot_dimension_numbers<[1], [0], [0], [1], [0, 0, 1, 1], [], []>} : vector<200x128xbf16>, vector<128x192xbf16>, vector<200x192xf32> -> vector<200x192xf32>
    %84 = vector.extract_strided_slice %3 {offsets = [1, 0, 0], sizes = [1, 1, 192], strides = [1, 1, 1]} : vector<2x1x192xf32> to vector<1x1x192xf32>
    %85 = vector.shape_cast %84 : vector<1x1x192xf32> to vector<1x192xf32>
    %86 = vector.broadcast %85 : vector<1x192xf32> to vector<200x192xf32>
    %87 = arith.addf %83, %86 : vector<200x192xf32>
    %cst_34 = arith.constant 0.000000e+00 : f32
    %88 = vector.broadcast %cst_34 : f32 to vector<200x192xf32>
    %89 = arith.cmpf oge, %87, %88 : vector<200x192xf32>
    %cst_35 = arith.constant 1.000000e-01 : f32
    %90 = vector.broadcast %cst_35 : f32 to vector<200x192xf32>
    %91 = arith.mulf %90, %87 : vector<200x192xf32>
    %92 = arith.select %89, %87, %91 : vector<200x192xi1>, vector<200x192xf32>
    %93 = arith.truncf %92 : vector<200x192xf32> to vector<200x192xbf16>
    %c1_36 = arith.constant 1 : index
    %c0_37 = arith.constant 0 : index
    %c0_38 = arith.constant 0 : index
    %94 = vector.load %arg4[%c1_36, %c0_37, %c0_38] : memref<2x192x128xbf16, #tpu.memory_space<vmem>>, vector<1x192x128xbf16>
    %95 = vector.shape_cast %94 : vector<1x192x128xbf16> to vector<192x128xbf16>
    %cst_39 = arith.constant dense<0.000000e+00> : vector<200x128xf32>
    %96 = tpu.matmul %93, %95, %cst_39 {dimension_numbers = #tpu.dot_dimension_numbers<[1], [0], [0], [1], [0, 0, 1, 1], [], []>} : vector<200x192xbf16>, vector<192x128xbf16>, vector<200x128xf32> -> vector<200x128xf32>
    %97 = vector.broadcast %78 : vector<1x128xf32> to vector<200x128xf32>
    %98 = arith.addf %96, %97 : vector<200x128xf32>
    %99 = vector.broadcast %79 : vector<1x128xf32> to vector<200x128xf32>
    %100 = arith.mulf %99, %77 : vector<200x128xf32>
    %101 = arith.addf %98, %100 : vector<200x128xf32>
    %cst_40 = arith.constant dense<0.000000e+00> : vector<200xf32>
    %102 = vector.multi_reduction <add>, %101, %cst_40 [1] : vector<200x128xf32> to vector<200xf32>
    %103 = vector.shape_cast %102 : vector<200xf32> to vector<200x1xf32>
    %cst_41 = arith.constant 1.280000e+02 : f32
    %104 = vector.broadcast %cst_41 : f32 to vector<200x1xf32>
    %105 = arith.divf %103, %104 : vector<200x1xf32>
    %106 = arith.mulf %101, %101 : vector<200x128xf32>
    %cst_42 = arith.constant dense<0.000000e+00> : vector<200xf32>
    %107 = vector.multi_reduction <add>, %106, %cst_42 [1] : vector<200x128xf32> to vector<200xf32>
    %108 = vector.shape_cast %107 : vector<200xf32> to vector<200x1xf32>
    %cst_43 = arith.constant 1.280000e+02 : f32
    %109 = vector.broadcast %cst_43 : f32 to vector<200x1xf32>
    %110 = arith.divf %108, %109 : vector<200x1xf32>
    %111 = arith.mulf %105, %105 : vector<200x1xf32>
    %112 = arith.subf %110, %111 : vector<200x1xf32>
    %cst_44 = arith.constant 0.000000e+00 : f32
    %113 = vector.broadcast %cst_44 : f32 to vector<200x1xf32>
    %114 = arith.maximumf %112, %113 : vector<200x1xf32>
    %115 = vector.broadcast %105 : vector<200x1xf32> to vector<200x128xf32>
    %116 = arith.subf %101, %115 : vector<200x128xf32>
    %cst_45 = arith.constant 9.99999974E-6 : f32
    %117 = vector.broadcast %cst_45 : f32 to vector<200x1xf32>
    %118 = arith.addf %114, %117 : vector<200x1xf32>
    %119 = math.rsqrt %118 : vector<200x1xf32>
    %120 = vector.broadcast %119 : vector<200x1xf32> to vector<200x128xf32>
    %121 = arith.mulf %116, %120 : vector<200x128xf32>
    %122 = vector.extract_strided_slice %0 {offsets = [6, 0], sizes = [1, 128], strides = [1, 1]} : vector<8x128xf32> to vector<1x128xf32>
    %123 = arith.truncf %121 : vector<200x128xf32> to vector<200x128xbf16>
    %c0_46 = arith.constant 0 : index
    %c0_47 = arith.constant 0 : index
    %124 = vector.load %arg5[%c0_46, %c0_47] : memref<128x128xbf16, #tpu.memory_space<vmem>>, vector<128x128xbf16>
    %cst_48 = arith.constant dense<0.000000e+00> : vector<200x128xf32>
    %125 = tpu.matmul %123, %124, %cst_48 {dimension_numbers = #tpu.dot_dimension_numbers<[1], [0], [0], [1], [0, 0, 1, 1], [], []>} : vector<200x128xbf16>, vector<128x128xbf16>, vector<200x128xf32> -> vector<200x128xf32>
    %126 = vector.broadcast %122 : vector<1x128xf32> to vector<200x128xf32>
    %127 = arith.addf %125, %126 : vector<200x128xf32>
    %c0_49 = arith.constant 0 : index
    %c0_50 = arith.constant 0 : index
    %128 = vector.load %arg8[%c0_49, %c0_50] : memref<200x128xf32, #tpu.memory_space<vmem>>, vector<200x128xf32>
    tpu.vector_store %arg8[%c0_49, %c0_50], %127 {strides = array<i32>} : memref<200x128xf32, #tpu.memory_space<vmem>>, vector<200x128xf32>,
    return
  }
  func.func @transform_0(%arg0: i32) -> (i32, i32) {
    %c0_i32 = arith.constant 0 : i32
    %c0_i32_0 = arith.constant 0 : i32
    return %arg0, %c0_i32 : i32, i32
  }
  func.func @transform_1(%arg0: i32) -> (i32, i32) {
    %c0_i32 = arith.constant 0 : i32
    %c0_i32_0 = arith.constant 0 : i32
    %c0_i32_1 = arith.constant 0 : i32
    return %c0_i32, %c0_i32_0 : i32, i32
  }
  func.func @transform_2(%arg0: i32) -> (i32, i32, i32) {
    %c0_i32 = arith.constant 0 : i32
    %c0_i32_0 = arith.constant 0 : i32
    %c0_i32_1 = arith.constant 0 : i32
    %c0_i32_2 = arith.constant 0 : i32
    return %c0_i32, %c0_i32_0, %c0_i32_1 : i32, i32, i32
  }
  func.func @transform_3(%arg0: i32) -> (i32, i32, i32) {
    %c0_i32 = arith.constant 0 : i32
    %c0_i32_0 = arith.constant 0 : i32
    %c0_i32_1 = arith.constant 0 : i32
    %c0_i32_2 = arith.constant 0 : i32
    return %c0_i32, %c0_i32_0, %c0_i32_1 : i32, i32, i32
  }
  func.func @transform_4(%arg0: i32) -> (i32, i32) {
    %c0_i32 = arith.constant 0 : i32
    %c0_i32_0 = arith.constant 0 : i32
    %c0_i32_1 = arith.constant 0 : i32
    return %c0_i32, %c0_i32_0 : i32, i32
  }
  func.func @transform_5(%arg0: i32) -> (i32, i32) {
    %c0_i32 = arith.constant 0 : i32
    %c0_i32_0 = arith.constant 0 : i32
    %c0_i32_1 = arith.constant 0 : i32
    return %c0_i32, %c0_i32_0 : i32, i32
  }
  func.func @transform_6(%arg0: i32) -> (i32, i32, i32) {
    %c0_i32 = arith.constant 0 : i32
    %c0_i32_0 = arith.constant 0 : i32
    %c0_i32_1 = arith.constant 0 : i32
    %c0_i32_2 = arith.constant 0 : i32
    return %c0_i32, %c0_i32_0, %c0_i32_1 : i32, i32, i32
  }
  func.func @transform_7(%arg0: i32) -> (i32, i32) {
    %c0_i32 = arith.constant 0 : i32
    %c0_i32_0 = arith.constant 0 : i32
    return %arg0, %c0_i32 : i32, i32
  }
}

</mosaic_0001>

<bundles_post_ra>
// kernel: tpu_custom_call.1
= control target key start
LH: loop header
LB: loop body
LE: loop exit
PB: predicated region body
PF: predicated region fallthrough
CT: control target
= control target key end

     0   :  { %v3890_v1 = vmov 0.0   ;;  %vm3891_vm0 = vmmov 0   ;;  %vm139_vm1 = vcmask 261120   ;;  %s5661_s0 = inlined_call_operand.vmem [shape: bf16[200,32], index: 0, kind: input, shape index: {}]   ;;  %s5662_s1 = inlined_call_operand.vmem [shape: bf16[32,128], index: 1, kind: input, shape index: {}]   ;;  %s5663_s2 = inlined_call_operand.vmem [shape: bf16[2,128,192], index: 2, kind: input, shape index: {}]   ;;  %s5664_s3 = inlined_call_operand.vmem [shape: bf16[2,192,128], index: 3, kind: input, shape index: {}]   ;;  %s5665_s4 = inlined_call_operand.vmem [shape: bf16[128,128], index: 4, kind: input, shape index: {}]   ;;  %s5666_s5 = inlined_call_operand.vmem [shape: f32[8,128], index: 5, kind: input, shape index: {}]   ;;  %s5667_s6 = inlined_call_operand.vmem [shape: f32[2,1,192], index: 6, kind: input, shape index: {}]   ;;  %s5668_s7 = inlined_call_operand.hbm [shape: f32[200,128], index: 7, kind: output, shape index: {}]  }
   0x1   :  { %v3618_v0 = vld [vmem:[%s5662_s1] sm:$0xff]   ;;  %3472 = vmatprep.subr.bf16.mxu0 %v3890_v1  ;;  %v3619_v2 = vld [vmem:[%s5662_s1 + $0x8] sm:$0xff]   ;;  %3476 = vmatprep.mubr.msk.bf16.mxu0 %vm3891_vm0, %v3890_v1  ;;  %v3622_v5 = vld [vmem:[%s5661_s0 + $0x10] sm:$0xff]  }
   0x2   :  { %3473 = vmatpush3.bf16.msra.mxu0 %v3618_v0  ;;  %v3620_v3 = vld [vmem:[%s5661_s0] sm:$0xff]   ;;  %v3621_v4 = vld [vmem:[%s5661_s0 + $0x8] sm:$0xff]   ;;  %v3623_v6 = vld [vmem:[%s5661_s0 + $0x18] sm:$0xff]  }
   0x3   :  { %3474 = vmatprep.subr.bf16.mxu0 %v3890_v1  ;;  %v3624_v7 = vld [vmem:[%s5661_s0 + $0x20] sm:$0xff]   ;;  %v3625_v8 = vld [vmem:[%s5661_s0 + $0x28] sm:$0xff]  }
   0x6   :  { %3475 = vmatpush3.bf16.msra.mxu0 %v3619_v2 }
   0x9   :  { %3477 = vmatmul.mubr.msk.bf16.vlgmr.msra.gmra.mrb[0].mxu0 %vm139_vm1, %v3620_v3 }
   0xa   :  { %3480 = vmatprep.mubr.msk.bf16.mxu0 %vm3891_vm0, %v3890_v1 }
  0x11   :  { %3481 = vmatmul.mubr.msk.bf16.gmra.mrb[4].mxu0 %vm139_vm1, %v3621_v4 }
  0x12   :  { %3484 = vmatprep.mubr.msk.bf16.mxu0 %vm3891_vm0, %v3890_v1 }
  0x19   :  { %3485 = vmatmul.mubr.msk.bf16.gmra.mrb[8].mxu0 %vm139_vm1, %v3622_v5 }
  0x1a   :  { %3488 = vmatprep.mubr.msk.bf16.mxu0 %vm3891_vm0, %v3890_v1 }
  0x21   :  { %3489 = vmatmul.mubr.msk.bf16.gmra.mrb[12].mxu0 %vm139_vm1, %v3623_v6 }
  0x22   :  { %3492 = vmatprep.mubr.msk.bf16.mxu0 %vm3891_vm0, %v3890_v1 }
  0x29   :  { %3493 = vmatmul.mubr.msk.bf16.gmra.mrb[16].mxu0 %vm139_vm1, %v3624_v7 }
  0x2a   :  { %3496 = vmatprep.mubr.msk.bf16.mxu0 %vm3891_vm0, %v3890_v1 }
  0x2b   :  { %12 = vsyncpa [#allocation3], 0  ;;  %v3626_v9 = vld [vmem:[%s5661_s0 + $0x30] sm:$0xff]   ;;  %v3627_v10 = vld [vmem:[%s5661_s0 + $0x38] sm:$0xff]   ;;  %v60_v18 = vlaneseq }
  0x2c   :  { %v3628_v11 = vld [vmem:[%s5661_s0 + $0x40] sm:$0xff]   ;;  %v3629_v12 = vld [vmem:[%s5661_s0 + $0x48] sm:$0xff]   ;;  %v3630_v13 = vld [vmem:[%s5661_s0 + $0x50] sm:$0xff]  }
  0x2d   :  { %v3631_v14 = vld [vmem:[%s5661_s0 + $0x58] sm:$0xff]   ;;  %v3632_v15 = vld [vmem:[%s5661_s0 + $0x60] ss:$0 sps:$4 sm:$0xff]   ;;  %v3633_v16 = vld [vmem:[%s5663_s2 + $0x4] ss:$8 sps:$4 sm:$0xff]   ;;  %v4028_v19 = vshrl.u32 %v60_v18, 7 }
  0x2e   :  { %v3635_v17 = vld [vmem:[%s5663_s2] ss:$8 sps:$4 sm:$0xff]   ;;  %865 = vmatprep.subr.bf16.mxu1 %v3633_v16  ;;  %v3636_v56 = vld [vmem:[%s5663_s2 + $0x14] ss:$8 sps:$4 sm:$0xff]   ;;  %v3638_v57 = vld [vmem:[%s5663_s2 + $0x10] ss:$8 sps:$4 sm:$0xff]  }
  0x2f   :  { %866 = vmatpush1.bf16.msra.mxu1 %v3635_v17  ;;  %v4031_v20 = vsub.s32 0, %v4028_v19  ;;  %v28_v21 = vld [vmem:[%s5666_s5] sm:$0xff]  ;;  %v4037_v22 = vsub.s32 1, %v4028_v19 }
  0x30   :  { %867 = vmatprep.subr.bf16.mxu1 %v3636_v56  ;;  %v3639_v61 = vld [vmem:[%s5663_s2 + $0x24] ss:$8 sps:$4 sm:$0xff]   ;;  %v3641_v0 = vld [vmem:[%s5663_s2 + $0x20] ss:$8 sps:$4 sm:$0xff]  }
  0x31   :  { %3497 = vmatmul.mubr.msk.bf16.gmra.mrb[20].mxu0 %vm139_vm1, %v3625_v8  ;;  %v4040_v23 = vrot.slane %v28_v21, %v4031_v20  ;;  %v4043_v24 = vrot.slane %v28_v21, %v4037_v22  ;;  %v3645_v16 = vld [vmem:[%s5663_s2 + $0x44] ss:$8 sps:$4 sm:$0xff]   ;;  %v3647_v21 = vld [vmem:[%s5663_s2 + $0x40] ss:$8 sps:$4 sm:$0xff]  }
  0x32   :  { %3500 = vmatprep.mubr.msk.bf16.mxu0 %vm3891_vm0, %v3890_v1 }
  0x33   :  { %868 = vmatpush1.bf16.msra.mxu1 %v3638_v57 }
  0x34   :  { %869 = vmatprep.subr.bf16.mxu1 %v3639_v61  ;;  %v3892_v61 = vmov 0  }
  0x35   :  { %897 = vmatprep.mubr.bf16.mxu1 %v3892_v61  ;;  %1342 = vmatprep.subr.bf16.mxu0 %v3892_v61 }
  0x37   :  { %870 = vmatpush1.bf16.msra.mxu1 %v3641_v0 }
  0x39   :  { %3501 = vmatmul.mubr.msk.bf16.gmra.mrb[24].mxu0 %vm139_vm1, %v3626_v9  ;;  %v3642_v9 = vld [vmem:[%s5663_s2 + $0x34] ss:$8 sps:$4 sm:$0xff]  }
  0x3a   :  { %3504 = vmatprep.mubr.msk.bf16.mxu0 %vm3891_vm0, %v3890_v1  ;;  %871 = vmatprep.subr.bf16.mxu1 %v3642_v9 }
  0x41   :  { %3505 = vmatmul.mubr.msk.bf16.gmra.mrb[28].mxu0 %vm139_vm1, %v3627_v10 }
  0x42   :  { %3508 = vmatprep.mubr.msk.bf16.mxu0 %vm3891_vm0, %v3890_v1 }
  0x49   :  { %3509 = vmatmul.mubr.msk.bf16.gmra.mrb[32].mxu0 %vm139_vm1, %v3628_v11 }
  0x4a   :  { %3512 = vmatprep.mubr.msk.bf16.mxu0 %vm3891_vm0, %v3890_v1 }
  0x51   :  { %3513 = vmatmul.mubr.msk.bf16.gmra.mrb[36].mxu0 %vm139_vm1, %v3629_v12  ;;  %v3644_v12 = vld [vmem:[%s5663_s2 + $0x30] ss:$8 sps:$4 sm:$0xff]  }
  0x52   :  { %3516 = vmatprep.mubr.msk.bf16.mxu0 %vm3891_vm0, %v3890_v1  ;;  %872 = vmatpush1.bf16.msra.mxu1 %v3644_v12 }
  0x53   :  { %873 = vmatprep.subr.bf16.mxu1 %v3645_v16 }
  0x56   :  { %874 = vmatpush1.bf16.msra.mxu1 %v3647_v21 }
  0x59   :  { %3517 = vmatmul.mubr.msk.bf16.gmra.mrb[40].mxu0 %vm139_vm1, %v3630_v13 }
  0x5a   :  { %3520 = vmatprep.mubr.msk.bf16.mxu0 %vm3891_vm0, %v3890_v1 }
  0x61   :  { %3521 = vmatmul.mubr.msk.bf16.gmra.mrb[44].mxu0 %vm139_vm1, %v3631_v14 }
  0x62   :  { %3524 = vmatprep.mubr.msk.bf16.mxu0 %vm3891_vm0, %v3890_v1 }
  0x69   :  { %3525 = vmatmul.mubr.msk.bf16.gmra.mrb[48].mxu0 %vm139_vm1, %v3632_v15 }
  0xdc   :  { %v213_v25 = vpop.f32.mrb[0].mxu0 }
  0xdd   :  { %v214_v26 = vadd.f32 %v213_v25, %v4040_v23  ;;  %v3478_v27 = vpop.f32.mrb[1].mxu0 }
  0xde   :  { %v216_v28 = vpop.f32.mrb[2].mxu0 }
  0xdf   :  { %v344_v29 = vmul.f32 %v4043_v24, %v214_v26  ;;  %v217_v30 = vadd.f32 %v216_v28, %v4040_v23  ;;  %v3479_v31 = vpop.f32.mrb[3].mxu0  ;;  %vm315_vm2 = vcmp.ge.f32.partialorder %v214_v26, 0.0 }
  0xe1   :  { %v345_v32 = vmul.f32 %v4043_v24, %v217_v30  ;;  %v4049_v33 = vsel %vm315_vm2, %v214_v26, %v344_v29  ;;  %vm316_vm3 = vcmp.ge.f32.partialorder %v217_v30, 0.0 }
  0xe2   :  { %394 = vadd.xlane.f32.xlu0 %v4049_v33  ;;  %v470_v34 = vmul.f32 %v4049_v33, %v4049_v33 }
  0xe3   :  { %v4054_v35 = vsel %vm316_vm3, %v217_v30, %v345_v32  ;;  %v3648_v30 = vld [vmem:[%s5663_s2 + $0x54] ss:$8 sps:$4 sm:$0xff]  }
  0xe4   :  { %v221_v36 = vpop.f32.mrb[4].mxu0  ;;  %495 = vadd.xlane.f32.xlu1 %v470_v34  ;;  %v471_v40 = vmul.f32 %v4054_v35, %v4054_v35  ;;  %v3650_v34 = vld [vmem:[%s5663_s2 + $0x50] ss:$8 sps:$4 sm:$0xff]   ;;  %875 = vmatprep.subr.bf16.mxu1 %v3648_v30 }
  0xe5   :  { %v222_v37 = vadd.f32 %v221_v36, %v4040_v23  ;;  %v3482_v38 = vpop.f32.mrb[5].mxu0  ;;  %876 = vmatpush1.bf16.msra.mxu1 %v3650_v34 }
  0xe6   :  { %v224_v39 = vpop.f32.mrb[6].mxu0  ;;  %396 = vadd.xlane.f32.xlu0 %v4054_v35 }
  0xe7   :  { %v346_v41 = vmul.f32 %v4043_v24, %v222_v37  ;;  %v225_v42 = vadd.f32 %v224_v39, %v4040_v23  ;;  %v3483_v43 = vpop.f32.mrb[7].mxu0  ;;  %vm317_vm4 = vcmp.ge.f32.partialorder %v222_v37, 0.0  ;;  %v3651_v39 = vld [vmem:[%s5663_s2 + $0x64] ss:$8 sps:$4 sm:$0xff]  }
  0xe8   :  { %497 = vadd.xlane.f32.xlu1 %v471_v40  ;;  %877 = vmatprep.subr.bf16.mxu1 %v3651_v39 }
  0xe9   :  { %v347_v44 = vmul.f32 %v4043_v24, %v225_v42  ;;  %v4063_v45 = vsel %vm317_vm4, %v222_v37, %v346_v41  ;;  %vm318_vm5 = vcmp.ge.f32.partialorder %v225_v42, 0.0 }
  0xea   :  { %398 = vadd.xlane.f32.xlu0 %v4063_v45  ;;  %v472_v48 = vmul.f32 %v4063_v45, %v4063_v45 }
  0xeb   :  { %v4066_v46 = vsel %vm318_vm5, %v225_v42, %v347_v44  ;;  %v3653_v42 = vld [vmem:[%s5663_s2 + $0x60] ss:$8 sps:$4 sm:$0xff]  }
  0xec   :  { %v229_v47 = vpop.f32.mrb[8].mxu0  ;;  %400 = vadd.xlane.f32.xlu1 %v4066_v46  ;;  %v473_v52 = vmul.f32 %v4066_v46, %v4066_v46  ;;  %878 = vmatpush1.bf16.msra.mxu1 %v3653_v42 }
  0xed   :  { %v230_v49 = vadd.f32 %v229_v47, %v4040_v23  ;;  %v3486_v50 = vpop.f32.mrb[9].mxu0 }
  0xee   :  { %v232_v51 = vpop.f32.mrb[10].mxu0  ;;  %499 = vadd.xlane.f32.xlu0 %v472_v48  ;;  %v3654_v50 = vld [vmem:[%s5663_s2 + $0x74] ss:$8 sps:$4 sm:$0xff]  }
  0xef   :  { %v348_v53 = vmul.f32 %v4043_v24, %v230_v49  ;;  %v233_v54 = vadd.f32 %v232_v51, %v4040_v23  ;;  %v3487_v55 = vpop.f32.mrb[11].mxu0  ;;  %vm319_vm6 = vcmp.ge.f32.partialorder %v230_v49, 0.0  ;;  %879 = vmatprep.subr.bf16.mxu1 %v3654_v50 }
  0xf0   :  { %501 = vadd.xlane.f32.xlu1 %v473_v52 }
  0xf1   :  { %v349_v58 = vmul.f32 %v4043_v24, %v233_v54  ;;  %v4083_v59 = vsel %vm319_vm6, %v230_v49, %v348_v53  ;;  %vm320_vm7 = vcmp.ge.f32.partialorder %v233_v54, 0.0  ;;  %v3656_v53 = vld [vmem:[%s5663_s2 + $0x70] ss:$8 sps:$4 sm:$0xff]  }
  0xf2   :  { %402 = vadd.xlane.f32.xlu0 %v4083_v59  ;;  %v474_v63 = vmul.f32 %v4083_v59, %v4083_v59  ;;  %880 = vmatpush1.bf16.msra.mxu1 %v3656_v53 }
  0xf3   :  { %v4086_v60 = vsel %vm320_vm7, %v233_v54, %v349_v58 }
  0xf4   :  { %v237_v62 = vpop.f32.mrb[12].mxu0  ;;  %404 = vadd.xlane.f32.xlu1 %v4086_v60  ;;  %v475_v5 = vmul.f32 %v4086_v60, %v4086_v60 }
  0xf5   :  { %v238_v2 = vadd.f32 %v237_v62, %v4040_v23  ;;  %v3490_v3 = vpop.f32.mrb[13].mxu0 }
  0xf6   :  { %v240_v4 = vpop.f32.mrb[14].mxu0  ;;  %503 = vadd.xlane.f32.xlu0 %v474_v63 }
  0xf7   :  { %v350_v6 = vmul.f32 %v4043_v24, %v238_v2  ;;  %v241_v7 = vadd.f32 %v240_v4, %v4040_v23  ;;  %v3491_v8 = vpop.f32.mrb[15].mxu0  ;;  %vm321_vm8 = vcmp.ge.f32.partialorder %v238_v2, 0.0 }
  0xf8   :  { %505 = vadd.xlane.f32.xlu1 %v475_v5 }
  0xf9   :  { %v351_v10 = vmul.f32 %v4043_v24, %v241_v7  ;;  %v4106_v11 = vsel %vm321_vm8, %v238_v2, %v350_v6  ;;  %vm322_vm9 = vcmp.ge.f32.partialorder %v241_v7, 0.0 }
  0xfa   :  { %406 = vadd.xlane.f32.xlu0 %v4106_v11  ;;  %v476_v15 = vmul.f32 %v4106_v11, %v4106_v11 }
  0xfb   :  { %v4112_v13 = vsel %vm322_vm9, %v241_v7, %v351_v10 }
  0xfc   :  { %v245_v14 = vpop.f32.mrb[16].mxu0  ;;  %408 = vadd.xlane.f32.xlu1 %v4112_v13  ;;  %v477_v26 = vmul.f32 %v4112_v13, %v4112_v13 }
  0xfd   :  { %v246_v17 = vadd.f32 %v245_v14, %v4040_v23  ;;  %v3494_v18 = vpop.f32.mrb[17].mxu0 }
  0xfe   :  { %v248_v25 = vpop.f32.mrb[18].mxu0  ;;  %507 = vadd.xlane.f32.xlu0 %v476_v15 }
  0xff   :  { %v352_v27 = vmul.f32 %v4043_v24, %v246_v17  ;;  %v249_v28 = vadd.f32 %v248_v25, %v4040_v23  ;;  %v3495_v29 = vpop.f32.mrb[19].mxu0  ;;  %vm323_vm10 = vcmp.ge.f32.partialorder %v246_v17, 0.0 }
 0x100   :  { %509 = vadd.xlane.f32.xlu1 %v477_v26 }
 0x101   :  { %v353_v31 = vmul.f32 %v4043_v24, %v249_v28  ;;  %v4132_v32 = vsel %vm323_vm10, %v246_v17, %v352_v27  ;;  %vm324_vm11 = vcmp.ge.f32.partialorder %v249_v28, 0.0 }
 0x102   :  { %410 = vadd.xlane.f32.xlu0 %v4132_v32  ;;  %v478_v38 = vmul.f32 %v4132_v32, %v4132_v32 }
 0x103   :  { %v4138_v36 = vsel %vm324_vm11, %v249_v28, %v353_v31 }
 0x104   :  { %v253_v37 = vpop.f32.mrb[20].mxu0  ;;  %412 = vadd.xlane.f32.xlu1 %v4138_v36  ;;  %v479_v44 = vmul.f32 %v4138_v36, %v4138_v36 }
 0x105   :  { %v254_v40 = vadd.f32 %v253_v37, %v4040_v23  ;;  %v3498_v41 = vpop.f32.mrb[21].mxu0 }
 0x106   :  { %v256_v43 = vpop.f32.mrb[22].mxu0  ;;  %511 = vadd.xlane.f32.xlu0 %v478_v38 }
 0x107   :  { %v354_v47 = vmul.f32 %v4043_v24, %v254_v40  ;;  %v257_v48 = vadd.f32 %v256_v43, %v4040_v23  ;;  %v3499_v49 = vpop.f32.mrb[23].mxu0  ;;  %vm325_vm12 = vcmp.ge.f32.partialorder %v254_v40, 0.0 }
 0x108   :  { %513 = vadd.xlane.f32.xlu1 %v479_v44 }
 0x109   :  { %v355_v51 = vmul.f32 %v4043_v24, %v257_v48  ;;  %v4158_v52 = vsel %vm325_vm12, %v254_v40, %v354_v47  ;;  %vm326_vm13 = vcmp.ge.f32.partialorder %v257_v48, 0.0 }
 0x10a   :  { %414 = vadd.xlane.f32.xlu0 %v4158_v52  ;;  %v480_v56 = vmul.f32 %v4158_v52, %v4158_v52 }
 0x10b   :  { %v4164_v54 = vsel %vm326_vm13, %v257_v48, %v355_v51 }
 0x10c   :  { %v261_v55 = vpop.f32.mrb[24].mxu0  ;;  %416 = vadd.xlane.f32.xlu1 %v4164_v54  ;;  %v481_v63 = vmul.f32 %v4164_v54, %v4164_v54 }
 0x10d   :  { %v262_v57 = vadd.f32 %v261_v55, %v4040_v23  ;;  %v3502_v58 = vpop.f32.mrb[25].mxu0 }
 0x10e   :  { %v264_v62 = vpop.f32.mrb[26].mxu0  ;;  %515 = vadd.xlane.f32.xlu0 %v480_v56 }
 0x10f   :  { %v356_v0 = vmul.f32 %v4043_v24, %v262_v57  ;;  %v265_v2 = vadd.f32 %v264_v62, %v4040_v23  ;;  %v3503_v3 = vpop.f32.mrb[27].mxu0  ;;  %vm327_vm14 = vcmp.ge.f32.partialorder %v262_v57, 0.0 }
 0x110   :  { %517 = vadd.xlane.f32.xlu1 %v481_v63 }
 0x111   :  { %v357_v4 = vmul.f32 %v4043_v24, %v265_v2  ;;  %v4177_v5 = vsel %vm327_vm14, %v262_v57, %v356_v0  ;;  %vm328_vm15 = vcmp.ge.f32.partialorder %v265_v2, 0.0 }
 0x112   :  { %418 = vadd.xlane.f32.xlu0 %v4177_v5  ;;  %v482_v8 = vmul.f32 %v4177_v5, %v4177_v5 }
 0x113   :  { %v4180_v6 = vsel %vm328_vm15, %v265_v2, %v357_v4 }
 0x114   :  { %v269_v7 = vpop.f32.mrb[28].mxu0  ;;  %420 = vadd.xlane.f32.xlu1 %v4180_v6  ;;  %v483_v14 = vmul.f32 %v4180_v6, %v4180_v6 }
 0x115   :  { %v270_v9 = vadd.f32 %v269_v7, %v4040_v23  ;;  %v3506_v10 = vpop.f32.mrb[29].mxu0 }
 0x116   :  { %v272_v12 = vpop.f32.mrb[30].mxu0  ;;  %519 = vadd.xlane.f32.xlu0 %v482_v8 }
 0x117   :  { %v358_v15 = vmul.f32 %v4043_v24, %v270_v9  ;;  %v273_v16 = vadd.f32 %v272_v12, %v4040_v23  ;;  %v3507_v17 = vpop.f32.mrb[31].mxu0  ;;  %vm329_vm1 = vcmp.ge.f32.partialorder %v270_v9, 0.0 }
 0x118   :  { %521 = vadd.xlane.f32.xlu1 %v483_v14 }
 0x119   :  { %v359_v18 = vmul.f32 %v4043_v24, %v273_v16  ;;  %v4191_v21 = vsel %vm329_vm1, %v270_v9, %v358_v15  ;;  %vm330_vm2 = vcmp.ge.f32.partialorder %v273_v16, 0.0  ;;  %vm1302_vm1 = vcmask 523264  }
 0x11a   :  { %422 = vadd.xlane.f32.xlu0 %v4191_v21  ;;  %v484_v27 = vmul.f32 %v4191_v21, %v4191_v21 }
 0x11b   :  { %v4194_v25 = vsel %vm330_vm2, %v273_v16, %v359_v18 }
 0x11c   :  { %v277_v26 = vpop.f32.mrb[32].mxu0  ;;  %424 = vadd.xlane.f32.xlu1 %v4194_v25  ;;  %v485_v31 = vmul.f32 %v4194_v25, %v4194_v25 }
 0x11d   :  { %v278_v28 = vadd.f32 %v277_v26, %v4040_v23  ;;  %v3510_v29 = vpop.f32.mrb[33].mxu0 }
 0x11e   :  { %v280_v30 = vpop.f32.mrb[34].mxu0  ;;  %523 = vadd.xlane.f32.xlu0 %v484_v27 }
 0x11f   :  { %v360_v34 = vmul.f32 %v4043_v24, %v278_v28  ;;  %v281_v37 = vadd.f32 %v280_v30, %v4040_v23  ;;  %v3511_v38 = vpop.f32.mrb[35].mxu0  ;;  %vm331_vm3 = vcmp.ge.f32.partialorder %v278_v28, 0.0 }
 0x120   :  { %525 = vadd.xlane.f32.xlu1 %v485_v31 }
 0x121   :  { %v361_v39 = vmul.f32 %v4043_v24, %v281_v37  ;;  %v4205_v40 = vsel %vm331_vm3, %v278_v28, %v360_v34  ;;  %vm332_vm4 = vcmp.ge.f32.partialorder %v281_v37, 0.0 }
 0x122   :  { %426 = vadd.xlane.f32.xlu0 %v4205_v40  ;;  %v486_v43 = vmul.f32 %v4205_v40, %v4205_v40 }
 0x123   :  { %v4208_v41 = vsel %vm332_vm4, %v281_v37, %v361_v39 }
 0x124   :  { %v285_v42 = vpop.f32.mrb[36].mxu0  ;;  %428 = vadd.xlane.f32.xlu1 %v4208_v41  ;;  %v487_v49 = vmul.f32 %v4208_v41, %v4208_v41 }
 0x125   :  { %v286_v44 = vadd.f32 %v285_v42, %v4040_v23  ;;  %v3514_v47 = vpop.f32.mrb[37].mxu0 }
 0x126   :  { %v288_v48 = vpop.f32.mrb[38].mxu0  ;;  %527 = vadd.xlane.f32.xlu0 %v486_v43 }
 0x127   :  { %v362_v50 = vmul.f32 %v4043_v24, %v286_v44  ;;  %v289_v51 = vadd.f32 %v288_v48, %v4040_v23  ;;  %v3515_v53 = vpop.f32.mrb[39].mxu0  ;;  %vm333_vm5 = vcmp.ge.f32.partialorder %v286_v44, 0.0 }
 0x128   :  { %529 = vadd.xlane.f32.xlu1 %v487_v49 }
 0x129   :  { %v363_v55 = vmul.f32 %v4043_v24, %v289_v51  ;;  %v4219_v56 = vsel %vm333_vm5, %v286_v44, %v362_v50  ;;  %vm334_vm6 = vcmp.ge.f32.partialorder %v289_v51, 0.0 }
 0x12a   :  { %430 = vadd.xlane.f32.xlu0 %v4219_v56  ;;  %v488_v62 = vmul.f32 %v4219_v56, %v4219_v56 }
 0x12b   :  { %v4222_v57 = vsel %vm334_vm6, %v289_v51, %v363_v55 }
 0x12c   :  { %v293_v58 = vpop.f32.mrb[40].mxu0  ;;  %432 = vadd.xlane.f32.xlu1 %v4222_v57  ;;  %v489_v3 = vmul.f32 %v4222_v57, %v4222_v57 }
 0x12d   :  { %v294_v63 = vadd.f32 %v293_v58, %v4040_v23  ;;  %v3518_v0 = vpop.f32.mrb[41].mxu0 }
 0x12e   :  { %v296_v2 = vpop.f32.mrb[42].mxu0  ;;  %531 = vadd.xlane.f32.xlu0 %v488_v62  ;;  %v3659_v0 = vld [vmem:[%s5664_s3 + $0x10] sm:$0xff]  }
 0x12f   :  { %v364_v4 = vmul.f32 %v4043_v24, %v294_v63  ;;  %v297_v7 = vadd.f32 %v296_v2, %v4040_v23  ;;  %v3519_v8 = vpop.f32.mrb[43].mxu0  ;;  %vm335_vm7 = vcmp.ge.f32.partialorder %v294_v63, 0.0 }
 0x130   :  { %533 = vadd.xlane.f32.xlu1 %v489_v3 }
 0x131   :  { %v365_v9 = vmul.f32 %v4043_v24, %v297_v7  ;;  %v4233_v10 = vsel %vm335_vm7, %v294_v63, %v364_v4  ;;  %vm336_vm8 = vcmp.ge.f32.partialorder %v297_v7, 0.0 }
 0x132   :  { %434 = vadd.xlane.f32.xlu0 %v4233_v10  ;;  %v490_v15 = vmul.f32 %v4233_v10, %v4233_v10 }
 0x133   :  { %v4236_v12 = vsel %vm336_vm8, %v297_v7, %v365_v9 }
 0x134   :  { %v301_v14 = vpop.f32.mrb[44].mxu0  ;;  %436 = vadd.xlane.f32.xlu1 %v4236_v12  ;;  %v491_v26 = vmul.f32 %v4236_v12, %v4236_v12 }
 0x135   :  { %v302_v16 = vadd.f32 %v301_v14, %v4040_v23  ;;  %v3522_v17 = vpop.f32.mrb[45].mxu0 }
 0x136   :  { %v304_v18 = vpop.f32.mrb[46].mxu0  ;;  %535 = vadd.xlane.f32.xlu0 %v490_v15  ;;  %v3660_v15 = vld [vmem:[%s5664_s3 + $0x18] sm:$0xff]  }
 0x137   :  { %v366_v27 = vmul.f32 %v4043_v24, %v302_v16  ;;  %v305_v28 = vadd.f32 %v304_v18, %v4040_v23  ;;  %v3523_v29 = vpop.f32.mrb[47].mxu0  ;;  %vm337_vm9 = vcmp.ge.f32.partialorder %v302_v16, 0.0 }
 0x138   :  { %537 = vadd.xlane.f32.xlu1 %v491_v26 }
 0x139   :  { %v367_v30 = vmul.f32 %v4043_v24, %v305_v28  ;;  %v4247_v31 = vsel %vm337_vm9, %v302_v16, %v366_v27  ;;  %vm338_vm10 = vcmp.ge.f32.partialorder %v305_v28, 0.0 }
 0x13a   :  { %438 = vadd.xlane.f32.xlu0 %v4247_v31  ;;  %v492_v38 = vmul.f32 %v4247_v31, %v4247_v31 }
 0x13b   :  { %v4250_v34 = vsel %vm338_vm10, %v305_v28, %v367_v30  ;;  %v3661_v30 = vld [vmem:[%s5664_s3 + $0x20] sm:$0xff]  }
 0x13c   :  { %v309_v37 = vpop.f32.mrb[48].mxu0  ;;  %440 = vadd.xlane.f32.xlu1 %v4250_v34  ;;  %v493_v43 = vmul.f32 %v4250_v34, %v4250_v34 }
 0x13d   :  { %v310_v39 = vadd.f32 %v309_v37, %v4040_v23  ;;  %v3526_v42 = vpop.f32.mrb[49].mxu0  ;;  %v3657_v23 = vld [vmem:[%s5664_s3] sm:$0xff]  }
 0x13e   :  { %539 = vadd.xlane.f32.xlu0 %v492_v38  ;;  %v312_v44 = vpop.f32.mrb[50].mxu0  ;;  %1343 = vmatpush1.bf16.msra.mxu0 %v3657_v23 }
 0x13f   :  { %v368_v47 = vmul.f32 %v4043_v24, %v310_v39  ;;  %vm339_vm11 = vcmp.ge.f32.partialorder %v310_v39, 0.0  ;;  %v3527_v48 = vpop.f32.mrb[51].mxu0  ;;  %v3658_v24 = vld [vmem:[%s5664_s3 + $0x8] sm:$0xff]   ;;  %1344 = vmatprep.subr.bf16.mxu0 %v3892_v61 }
 0x140   :  { %541 = vadd.xlane.f32.xlu1 %v493_v43 }
 0x141   :  { %v4259_v49 = vsel %vm339_vm11, %v310_v39, %v368_v47 }
 0x142   :  { %442 = vadd.xlane.f32.xlu0 %v4259_v49  ;;  %v494_v50 = vmul.f32 %v4259_v49, %v4259_v49  ;;  %1345 = vmatpush1.bf16.msra.mxu0 %v3658_v24 }
 0x143   :  { %1346 = vmatprep.subr.bf16.mxu0 %v3892_v61 }
 0x144   :  { %543 = vadd.xlane.f32.xlu1 %v494_v50  ;;  %v3662_v50 = vld [vmem:[%s5664_s3 + $0x28] sm:$0xff]  }
 0x146   :  { %1347 = vmatpush1.bf16.msra.mxu0 %v3659_v0 }
 0x147   :  { %1348 = vmatprep.subr.bf16.mxu0 %v3892_v61 }
 0x14a   :  { %1349 = vmatpush1.bf16.msra.mxu0 %v3660_v15 }
 0x14b   :  { %1350 = vmatprep.subr.bf16.mxu0 %v3892_v61 }
 0x14e   :  { %1351 = vmatpush1.bf16.msra.mxu0 %v3661_v30  ;;  %v3664_v30 = vld [vmem:[%s5664_s3 + $0x38] sm:$0xff]  }
 0x14f   :  { %1352 = vmatprep.subr.bf16.mxu0 %v3892_v61 }
 0x152   :  { %1353 = vmatpush1.bf16.msra.mxu0 %v3662_v50  ;;  %v3665_v50 = vld [vmem:[%s5664_s3 + $0x40] sm:$0xff]  }
 0x153   :  { %1354 = vmatprep.subr.bf16.mxu0 %v3892_v61 }
 0x16f   :  { %v395_v51 = vpop.xlane.xlu0 %394 }
 0x170   :  { %v4270_v53 = vmul.f32 0.0078125, %v395_v51 }
 0x171   :  { %v496_v55 = vpop.xlane.xlu1 %495 }
 0x172   :  { %v570_v58 = vmul.f32 %v4270_v53, %v4270_v53  ;;  %v545_v62 = vmul.f32 0.0078125, %v496_v55 }
 0x173   :  { %v397_v63 = vpop.xlane.xlu0 %396 }
 0x174   :  { %v595_v2 = vsub.f32 %v545_v62, %v570_v58  ;;  %v4278_v3 = vmul.f32 0.0078125, %v397_v63 }
 0x175   :  { %v498_v4 = vpop.xlane.xlu1 %497 }
 0x176   :  { %v620_v7 = vmax.f32 %v595_v2, 0.0  ;;  %v571_v8 = vmul.f32 %v4278_v3, %v4278_v3  ;;  %v546_v9 = vmul.f32 0.0078125, %v498_v4  ;;  %v3663_v2 = vld [vmem:[%s5664_s3 + $0x30] sm:$0xff]  }
 0x177   :  { %v399_v14 = vpop.xlane.xlu0 %398  ;;  %1355 = vmatpush1.bf16.msra.mxu0 %v3663_v2 }
 0x178   :  { %v670_v16 = vadd.f32 1e-05, %v620_v7  ;;  %v596_v17 = vsub.f32 %v546_v9, %v571_v8  ;;  %v4286_v18 = vmul.f32 0.0078125, %v399_v14  ;;  %1356 = vmatprep.subr.bf16.mxu0 %v3892_v61 }
 0x179   :  { %v401_v26 = vpop.xlane.xlu1 %400 }
 0x17a   :  { %v621_v27 = vmax.f32 %v596_v17, 0.0  ;;  %v4289_v28 = vmul.f32 0.0078125, %v401_v26  ;;  %3713 = vrsqrt.f32 %v670_v16  ;;  %v572_v38 = vmul.f32 %v4286_v18, %v4286_v18 }
 0x17b   :  { %v500_v29 = vpop.xlane.xlu0 %499  ;;  %v645_v26 = vsub.f32 %v4049_v33, %v4270_v53  ;;  %1357 = vmatpush1.bf16.msra.mxu0 %v3664_v30 }
 0x17c   :  { %v671_v37 = vadd.f32 1e-05, %v621_v27  ;;  %v547_v39 = vmul.f32 0.0078125, %v500_v29  ;;  %v573_v43 = vmul.f32 %v4289_v28, %v4289_v28  ;;  %v646_v27 = vsub.f32 %v4054_v35, %v4278_v3  ;;  %1358 = vmatprep.subr.bf16.mxu0 %v3892_v61 }
 0x17d   :  { %v502_v42 = vpop.xlane.xlu1 %501 }
 0x17e   :  { %3715 = vrsqrt.f32 %v671_v37  ;;  %v597_v44 = vsub.f32 %v547_v39, %v572_v38  ;;  %v548_v47 = vmul.f32 0.0078125, %v502_v42 }
 0x17f   :  { %v403_v48 = vpop.xlane.xlu0 %402  ;;  %1359 = vmatpush1.bf16.msra.mxu0 %v3665_v50 }
 0x180   :  { %v622_v23 = vmax.f32 %v597_v44, 0.0  ;;  %v598_v51 = vsub.f32 %v548_v47, %v573_v43  ;;  %v4302_v24 = vmul.f32 0.0078125, %v403_v48  ;;  %1360 = vmatprep.subr.bf16.mxu0 %v3892_v61 }
 0x181   :  { %v405_v55 = vpop.xlane.xlu1 %404 }
 0x182   :  { %v672_v58 = vadd.f32 1e-05, %v622_v23  ;;  %v623_v62 = vmax.f32 %v598_v51, 0.0  ;;  %v4305_v63 = vmul.f32 0.0078125, %v405_v55  ;;  %v574_v7 = vmul.f32 %v4302_v24, %v4302_v24 }
 0x183   :  { %v504_v0 = vpop.xlane.xlu0 %503 }
 0x184   :  { %3717 = vrsqrt.f32 %v672_v58  ;;  %v673_v4 = vadd.f32 1e-05, %v623_v62  ;;  %v549_v8 = vmul.f32 0.0078125, %v504_v0  ;;  %v3714_v14 = vpop.eup %3713  ;;  %v575_v15 = vmul.f32 %v4305_v63, %v4305_v63 }
 0x185   :  { %v506_v9 = vpop.xlane.xlu1 %505  ;;  %v4325_v44 = vmul.f32 %v3714_v14, %v645_v26  ;;  %v3666_v14 = vld [vmem:[%s5664_s3 + $0x48] sm:$0xff]  }
 0x186   :  { %3719 = vrsqrt.f32 %v673_v4  ;;  %v599_v16 = vsub.f32 %v549_v8, %v574_v7  ;;  %v550_v17 = vmul.f32 0.0078125, %v506_v9  ;;  %v647_v7 = vsub.f32 %v4063_v45, %v4286_v18  ;;  %1361 = vmatpush1.bf16.msra.mxu0 %v3666_v14 }
 0x187   :  { %v407_v29 = vpop.xlane.xlu0 %406  ;;  %v648_v8 = vsub.f32 %v4066_v46, %v4289_v28  ;;  %1362 = vmatprep.subr.bf16.mxu0 %v3892_v61 }
 0x188   :  { %v3716_v37 = vpop.eup %3715  ;;  %v624_v38 = vmax.f32 %v599_v16, 0.0  ;;  %v600_v39 = vsub.f32 %v550_v17, %v575_v15  ;;  %v4322_v42 = vmul.f32 0.0078125, %v407_v29 }
 0x189   :  { %v409_v43 = vpop.xlane.xlu1 %408  ;;  %v4327_v33 = vmul.f32 %v3716_v37, %v646_v27 }
 0x18a   :  { %v674_v53 = vadd.f32 1e-05, %v624_v38  ;;  %v625_v35 = vmax.f32 %v600_v39, 0.0  ;;  %v4329_v3 = vmul.f32 0.0078125, %v409_v43  ;;  %v576_v51 = vmul.f32 %v4322_v42, %v4322_v42  ;;  %v3667_v38 = vld [vmem:[%s5664_s3 + $0x50] sm:$0xff]  }
 0x18b   :  { %v508_v47 = vpop.xlane.xlu0 %507  ;;  %v745_v48 = vpack.c.bf16 %v4327_v33, %v4325_v44  ;;  %1363 = vmatpush1.bf16.msra.mxu0 %v3667_v38  ;;  %v651_v38 = vsub.f32 %v4106_v11, %v4322_v42 }
 0x18c   :  { %3721 = vrsqrt.f32 %v674_v53  ;;  %v675_v23 = vadd.f32 1e-05, %v625_v35  ;;  %v551_v55 = vmul.f32 0.0078125, %v508_v47  ;;  %v577_v0 = vmul.f32 %v4329_v3, %v4329_v3  ;;  %1364 = vmatprep.subr.bf16.mxu0 %v3892_v61 }
 0x18d   :  { %898 = vmatmul.mubr.bf16.vlgmr.msra.gmra.mrb[0].mxu1 %v745_v48  ;;  %v510_v58 = vpop.xlane.xlu1 %509 }
 0x18e   :  { %v3718_v62 = vpop.eup %3717  ;;  %3723 = vrsqrt.f32 %v675_v23  ;;  %v601_v2 = vsub.f32 %v551_v55, %v576_v51  ;;  %v552_v4 = vmul.f32 0.0078125, %v510_v58  ;;  %907 = vmatprep.mubr.bf16.mxu1 %v3892_v61  ;;  %v649_v51 = vsub.f32 %v4083_v59, %v4302_v24 }
 0x18f   :  { %v411_v9 = vpop.xlane.xlu0 %410  ;;  %v4352_v29 = vmul.f32 %v3718_v62, %v647_v7  ;;  %v650_v55 = vsub.f32 %v4086_v60, %v4305_v63 }
 0x190   :  { %v3720_v15 = vpop.eup %3719  ;;  %v626_v16 = vmax.f32 %v601_v2, 0.0  ;;  %v602_v17 = vsub.f32 %v552_v4, %v577_v0  ;;  %v4349_v26 = vmul.f32 0.0078125, %v411_v9 }
 0x191   :  { %v413_v27 = vpop.xlane.xlu1 %412  ;;  %v4354_v45 = vmul.f32 %v3720_v15, %v648_v8 }
 0x192   :  { %v676_v18 = vadd.f32 1e-05, %v626_v16  ;;  %v627_v46 = vmax.f32 %v602_v17, 0.0  ;;  %v4356_v28 = vmul.f32 0.0078125, %v413_v27  ;;  %v578_v43 = vmul.f32 %v4349_v26, %v4349_v26 }
 0x193   :  { %v512_v30 = vpop.xlane.xlu0 %511  ;;  %v746_v37 = vpack.c.bf16 %v4354_v45, %v4352_v29 }
 0x194   :  { %3725 = vrsqrt.f32 %v676_v18  ;;  %v677_v39 = vadd.f32 1e-05, %v627_v46  ;;  %v553_v53 = vmul.f32 0.0078125, %v512_v30  ;;  %v579_v48 = vmul.f32 %v4356_v28, %v4356_v28 }
 0x195   :  { %908 = vmatmul.mubr.bf16.gmra.mrb[4].mxu1 %v746_v37  ;;  %v514_v35 = vpop.xlane.xlu1 %513 }
 0x196   :  { %v3722_v47 = vpop.eup %3721  ;;  %3727 = vrsqrt.f32 %v677_v39  ;;  %v603_v50 = vsub.f32 %v553_v53, %v578_v43  ;;  %v554_v23 = vmul.f32 0.0078125, %v514_v35  ;;  %917 = vmatprep.mubr.bf16.mxu1 %v3892_v61  ;;  %v652_v39 = vsub.f32 %v4112_v13, %v4329_v3 }
 0x197   :  { %v415_v58 = vpop.xlane.xlu0 %414  ;;  %v4376_v8 = vmul.f32 %v3722_v47, %v649_v51 }
 0x198   :  { %v3724_v62 = vpop.eup %3723  ;;  %v628_v0 = vmax.f32 %v603_v50, 0.0  ;;  %v604_v2 = vsub.f32 %v554_v23, %v579_v48  ;;  %v4373_v4 = vmul.f32 0.0078125, %v415_v58 }
 0x199   :  { %v417_v7 = vpop.xlane.xlu1 %416  ;;  %v4378_v9 = vmul.f32 %v3724_v62, %v650_v55 }
 0x19a   :  { %v678_v14 = vadd.f32 1e-05, %v628_v0  ;;  %v629_v15 = vmax.f32 %v604_v2, 0.0  ;;  %v4380_v59 = vmul.f32 0.0078125, %v417_v7  ;;  %v580_v16 = vmul.f32 %v4373_v4, %v4373_v4 }
 0x19b   :  { %v516_v24 = vpop.xlane.xlu0 %515  ;;  %v747_v60 = vpack.c.bf16 %v4378_v9, %v4376_v8 }
 0x19c   :  { %3729 = vrsqrt.f32 %v678_v14  ;;  %v679_v63 = vadd.f32 1e-05, %v629_v15  ;;  %v555_v17 = vmul.f32 0.0078125, %v516_v24  ;;  %v581_v46 = vmul.f32 %v4380_v59, %v4380_v59 }
 0x19d   :  { %918 = vmatmul.mubr.bf16.gmra.mrb[8].mxu1 %v747_v60  ;;  %v518_v27 = vpop.xlane.xlu1 %517  ;;  %v653_v60 = vsub.f32 %v4132_v32, %v4349_v26 }
 0x19e   :  { %v3726_v18 = vpop.eup %3725  ;;  %3731 = vrsqrt.f32 %v679_v63  ;;  %v605_v30 = vsub.f32 %v555_v17, %v580_v16  ;;  %v556_v37 = vmul.f32 0.0078125, %v518_v27  ;;  %927 = vmatprep.mubr.bf16.mxu1 %v3892_v61  ;;  %v654_v63 = vsub.f32 %v4138_v36, %v4356_v28 }
 0x19f   :  { %v419_v43 = vpop.xlane.xlu0 %418  ;;  %v4395_v23 = vmul.f32 %v3726_v18, %v651_v38 }
 0x1a0   :  { %v3728_v53 = vpop.eup %3727  ;;  %v630_v35 = vmax.f32 %v605_v30, 0.0  ;;  %v606_v47 = vsub.f32 %v556_v37, %v581_v46  ;;  %v4393_v48 = vmul.f32 0.0078125, %v419_v43 }
 0x1a1   :  { %v421_v50 = vpop.xlane.xlu1 %420  ;;  %v4397_v51 = vmul.f32 %v3728_v53, %v652_v39 }
 0x1a2   :  { %v680_v55 = vadd.f32 1e-05, %v630_v35  ;;  %v631_v58 = vmax.f32 %v606_v47, 0.0  ;;  %v4399_v62 = vmul.f32 0.0078125, %v421_v50  ;;  %v582_v42 = vmul.f32 %v4393_v48, %v4393_v48 }
 0x1a3   :  { %v520_v0 = vpop.xlane.xlu0 %519  ;;  %v748_v11 = vpack.c.bf16 %v4397_v51, %v4395_v23 }
 0x1a4   :  { %3733 = vrsqrt.f32 %v680_v55  ;;  %v681_v13 = vadd.f32 1e-05, %v631_v58  ;;  %v557_v3 = vmul.f32 0.0078125, %v520_v0  ;;  %v583_v14 = vmul.f32 %v4399_v62, %v4399_v62 }
 0x1a5   :  { %928 = vmatmul.mubr.bf16.gmra.mrb[12].mxu1 %v748_v11  ;;  %v522_v2 = vpop.xlane.xlu1 %521  ;;  %v655_v11 = vsub.f32 %v4158_v52, %v4373_v4 }
 0x1a6   :  { %v3730_v7 = vpop.eup %3729  ;;  %3735 = vrsqrt.f32 %v681_v13  ;;  %v607_v15 = vsub.f32 %v557_v3, %v582_v42  ;;  %v558_v24 = vmul.f32 0.0078125, %v522_v2  ;;  %937 = vmatprep.mubr.bf16.mxu1 %v3892_v61  ;;  %v656_v13 = vsub.f32 %v4164_v54, %v4380_v59 }
 0x1a7   :  { %v423_v16 = vpop.xlane.xlu0 %422  ;;  %v4414_v37 = vmul.f32 %v3730_v7, %v653_v60 }
 0x1a8   :  { %v3732_v17 = vpop.eup %3731  ;;  %v632_v27 = vmax.f32 %v607_v15, 0.0  ;;  %v608_v18 = vsub.f32 %v558_v24, %v583_v14  ;;  %v4412_v46 = vmul.f32 0.0078125, %v423_v16 }
 0x1a9   :  { %v425_v30 = vpop.xlane.xlu1 %424  ;;  %v4416_v38 = vmul.f32 %v3732_v17, %v654_v63 }
 0x1aa   :  { %v682_v39 = vadd.f32 1e-05, %v632_v27  ;;  %v633_v43 = vmax.f32 %v608_v18, 0.0  ;;  %v4418_v53 = vmul.f32 0.0078125, %v425_v30  ;;  %v584_v26 = vmul.f32 %v4412_v46, %v4412_v46 }
 0x1ab   :  { %v524_v35 = vpop.xlane.xlu0 %523  ;;  %v749_v32 = vpack.c.bf16 %v4416_v38, %v4414_v37 }
 0x1ac   :  { %3737 = vrsqrt.f32 %v682_v39  ;;  %v683_v36 = vadd.f32 1e-05, %v633_v43  ;;  %v559_v28 = vmul.f32 0.0078125, %v524_v35  ;;  %v585_v55 = vmul.f32 %v4418_v53, %v4418_v53 }
 0x1ad   :  { %938 = vmatmul.mubr.bf16.gmra.mrb[16].mxu1 %v749_v32  ;;  %v526_v47 = vpop.xlane.xlu1 %525  ;;  %v657_v32 = vsub.f32 %v4177_v5, %v4393_v48 }
 0x1ae   :  { %v3734_v50 = vpop.eup %3733  ;;  %3739 = vrsqrt.f32 %v683_v36  ;;  %v609_v58 = vsub.f32 %v559_v28, %v584_v26  ;;  %v560_v0 = vmul.f32 0.0078125, %v526_v47  ;;  %947 = vmatprep.mubr.bf16.mxu1 %v3892_v61  ;;  %v658_v36 = vsub.f32 %v4180_v6, %v4399_v62 }
 0x1af   :  { %v427_v42 = vpop.xlane.xlu0 %426  ;;  %v4433_v24 = vmul.f32 %v3734_v50, %v655_v11 }
 0x1b0   :  { %v3736_v3 = vpop.eup %3735  ;;  %v634_v2 = vmax.f32 %v609_v58, 0.0  ;;  %v610_v7 = vsub.f32 %v560_v0, %v585_v55  ;;  %v4431_v14 = vmul.f32 0.0078125, %v427_v42 }
 0x1b1   :  { %v429_v15 = vpop.xlane.xlu1 %428  ;;  %v4435_v60 = vmul.f32 %v3736_v3, %v656_v13 }
 0x1b2   :  { %v684_v63 = vadd.f32 1e-05, %v634_v2  ;;  %v635_v16 = vmax.f32 %v610_v7, 0.0  ;;  %v4437_v17 = vmul.f32 0.0078125, %v429_v15  ;;  %v586_v4 = vmul.f32 %v4431_v14, %v4431_v14 }
 0x1b3   :  { %v528_v27 = vpop.xlane.xlu0 %527  ;;  %v750_v52 = vpack.c.bf16 %v4435_v60, %v4433_v24 }
 0x1b4   :  { %3741 = vrsqrt.f32 %v684_v63  ;;  %v685_v54 = vadd.f32 1e-05, %v635_v16  ;;  %v561_v59 = vmul.f32 0.0078125, %v528_v27  ;;  %v587_v39 = vmul.f32 %v4437_v17, %v4437_v17 }
 0x1b5   :  { %948 = vmatmul.mubr.bf16.gmra.mrb[20].mxu1 %v750_v52  ;;  %v530_v18 = vpop.xlane.xlu1 %529  ;;  %v659_v52 = vsub.f32 %v4191_v21, %v4412_v46 }
 0x1b6   :  { %v3738_v30 = vpop.eup %3737  ;;  %3743 = vrsqrt.f32 %v685_v54  ;;  %v611_v43 = vsub.f32 %v561_v59, %v586_v4  ;;  %v562_v35 = vmul.f32 0.0078125, %v530_v18  ;;  %957 = vmatprep.mubr.bf16.mxu1 %v3892_v61  ;;  %v660_v54 = vsub.f32 %v4194_v25, %v4418_v53 }
 0x1b7   :  { %v431_v26 = vpop.xlane.xlu0 %430  ;;  %v4452_v0 = vmul.f32 %v3738_v30, %v657_v32 }
 0x1b8   :  { %v3740_v28 = vpop.eup %3739  ;;  %v636_v47 = vmax.f32 %v611_v43, 0.0  ;;  %v612_v50 = vsub.f32 %v562_v35, %v587_v39  ;;  %v4450_v55 = vmul.f32 0.0078125, %v431_v26 }
 0x1b9   :  { %v433_v58 = vpop.xlane.xlu1 %432  ;;  %v4454_v11 = vmul.f32 %v3740_v28, %v658_v36 }
 0x1ba   :  { %v686_v13 = vadd.f32 1e-05, %v636_v47  ;;  %v637_v42 = vmax.f32 %v612_v50, 0.0  ;;  %v4456_v3 = vmul.f32 0.0078125, %v433_v58  ;;  %v588_v48 = vmul.f32 %v4450_v55, %v4450_v55 }
 0x1bb   :  { %v532_v2 = vpop.xlane.xlu0 %531  ;;  %v751_v5 = vpack.c.bf16 %v4454_v11, %v4452_v0 }
 0x1bc   :  { %3745 = vrsqrt.f32 %v686_v13  ;;  %v687_v6 = vadd.f32 1e-05, %v637_v42  ;;  %v563_v62 = vmul.f32 0.0078125, %v532_v2  ;;  %v589_v63 = vmul.f32 %v4456_v3, %v4456_v3 }
 0x1bd   :  { %958 = vmatmul.mubr.bf16.gmra.mrb[24].mxu1 %v751_v5  ;;  %v534_v7 = vpop.xlane.xlu1 %533  ;;  %v661_v5 = vsub.f32 %v4205_v40, %v4431_v14 }
 0x1be   :  { %v3742_v15 = vpop.eup %3741  ;;  %3747 = vrsqrt.f32 %v687_v6  ;;  %v613_v16 = vsub.f32 %v563_v62, %v588_v48  ;;  %v564_v27 = vmul.f32 0.0078125, %v534_v7  ;;  %967 = vmatprep.mubr.bf16.mxu1 %v3892_v61  ;;  %v662_v6 = vsub.f32 %v4208_v41, %v4437_v17 }
 0x1bf   :  { %v435_v4 = vpop.xlane.xlu0 %434  ;;  %v4471_v35 = vmul.f32 %v3742_v15, %v659_v52 }
 0x1c0   :  { %v3744_v59 = vpop.eup %3743  ;;  %v638_v18 = vmax.f32 %v613_v16, 0.0  ;;  %v614_v30 = vsub.f32 %v564_v27, %v589_v63  ;;  %v4469_v39 = vmul.f32 0.0078125, %v435_v4 }
 0x1c1   :  { %v437_v43 = vpop.xlane.xlu1 %436  ;;  %v4473_v32 = vmul.f32 %v3744_v59, %v660_v54 }
 0x1c2   :  { %v688_v36 = vadd.f32 1e-05, %v638_v18  ;;  %v639_v26 = vmax.f32 %v614_v30, 0.0  ;;  %v4475_v28 = vmul.f32 0.0078125, %v437_v43  ;;  %v590_v46 = vmul.f32 %v4469_v39, %v4469_v39 }
 0x1c3   :  { %v536_v47 = vpop.xlane.xlu0 %535  ;;  %v752_v21 = vpack.c.bf16 %v4473_v32, %v4471_v35 }
 0x1c4   :  { %3749 = vrsqrt.f32 %v688_v36  ;;  %v689_v25 = vadd.f32 1e-05, %v639_v26  ;;  %v565_v53 = vmul.f32 0.0078125, %v536_v47  ;;  %v591_v13 = vmul.f32 %v4475_v28, %v4475_v28 }
 0x1c5   :  { %968 = vmatmul.mubr.bf16.gmra.mrb[28].mxu1 %v752_v21  ;;  %v538_v50 = vpop.xlane.xlu1 %537  ;;  %v663_v21 = vsub.f32 %v4219_v56, %v4450_v55 }
 0x1c6   :  { %v3746_v58 = vpop.eup %3745  ;;  %3751 = vrsqrt.f32 %v689_v25  ;;  %v615_v42 = vsub.f32 %v565_v53, %v590_v46  ;;  %v566_v2 = vmul.f32 0.0078125, %v538_v50  ;;  %977 = vmatprep.mubr.bf16.mxu1 %v3892_v61  ;;  %v664_v25 = vsub.f32 %v4222_v57, %v4456_v3 }
 0x1c7   :  { %v439_v48 = vpop.xlane.xlu0 %438  ;;  %v4488_v27 = vmul.f32 %v3746_v58, %v661_v5 }
 0x1c8   :  { %v3748_v62 = vpop.eup %3747  ;;  %v640_v7 = vmax.f32 %v615_v42, 0.0  ;;  %v616_v15 = vsub.f32 %v566_v2, %v591_v13  ;;  %v467_v63 = vmul.f32 0.0078125, %v439_v48 }
 0x1c9   :  { %v441_v16 = vpop.xlane.xlu1 %440  ;;  %v4490_v52 = vmul.f32 %v3748_v62, %v662_v6 }
 0x1ca   :  { %v690_v54 = vadd.f32 1e-05, %v640_v7  ;;  %v641_v4 = vmax.f32 %v616_v15, 0.0  ;;  %v468_v59 = vmul.f32 0.0078125, %v441_v16  ;;  %v592_v41 = vmul.f32 %v467_v63, %v467_v63 }
 0x1cb   :  { %v540_v18 = vpop.xlane.xlu0 %539  ;;  %v753_v40 = vpack.c.bf16 %v4490_v52, %v4488_v27  ;;  %v665_v15 = vsub.f32 %v4233_v10, %v4469_v39  ;;  %v666_v16 = vsub.f32 %v4236_v12, %v4475_v28  ;;  %v667_v10 = vsub.f32 %v4247_v31, %v467_v63  ;;  %v3668_v31 = vld [vmem:[%s5664_s3 + $0x58] sm:$0xff]  }
 0x1cc   :  { %3753 = vrsqrt.f32 %v690_v54  ;;  %v691_v14 = vadd.f32 1e-05, %v641_v4  ;;  %v567_v17 = vmul.f32 0.0078125, %v540_v18  ;;  %v593_v36 = vmul.f32 %v468_v59, %v468_v59  ;;  %1365 = vmatpush1.bf16.msra.mxu0 %v3668_v31 }
 0x1cd   :  { %978 = vmatmul.mubr.bf16.gmra.mrb[32].mxu1 %v753_v40  ;;  %v542_v30 = vpop.xlane.xlu1 %541  ;;  %v668_v39 = vsub.f32 %v4250_v34, %v468_v59  ;;  %2480 = vmatprep.subr.bf16.mxu0 %v3892_v61 }
 0x1ce   :  { %v3750_v43 = vpop.eup %3749  ;;  %3755 = vrsqrt.f32 %v691_v14  ;;  %v617_v26 = vsub.f32 %v567_v17, %v592_v41  ;;  %v568_v47 = vmul.f32 0.0078125, %v542_v30  ;;  %987 = vmatprep.mubr.bf16.mxu1 %v3892_v61 }
 0x1cf   :  { %v443_v46 = vpop.xlane.xlu0 %442  ;;  %v4499_v2 = vmul.f32 %v3750_v43, %v663_v21 }
 0x1d0   :  { %v3752_v53 = vpop.eup %3751  ;;  %v642_v50 = vmax.f32 %v617_v26, 0.0  ;;  %v618_v58 = vsub.f32 %v568_v47, %v593_v36  ;;  %v469_v13 = vmul.f32 0.0078125, %v443_v46 }
 0x1d1   :  { %v544_v42 = vpop.xlane.xlu1 %543  ;;  %v4501_v5 = vmul.f32 %v3752_v53, %v664_v25 }
 0x1d2   :  { %v692_v6 = vadd.f32 1e-05, %v642_v50  ;;  %v643_v48 = vmax.f32 %v618_v58, 0.0  ;;  %v594_v62 = vmul.f32 %v469_v13, %v469_v13  ;;  %v569_v7 = vmul.f32 0.0078125, %v544_v42 }
 0x1d3   :  { %v754_v56 = vpack.c.bf16 %v4501_v5, %v4499_v2  ;;  %v669_v26 = vsub.f32 %v4259_v49, %v469_v13  ;;  %v29_v49 = vld [vmem:[%s5667_s6] sm:$0x3] }
 0x1d4   :  { %3757 = vrsqrt.f32 %v692_v6  ;;  %v693_v55 = vadd.f32 1e-05, %v643_v48  ;;  %v619_v57 = vsub.f32 %v569_v7, %v594_v62  ;;  %v4540_v63 = vrot.slane %v29_v49, %v4031_v20 }
 0x1d5   :  { %988 = vmatmul.mubr.bf16.gmra.mrb[36].mxu1 %v754_v56  ;;  %v4543_v59 = vrot.slane %v29_v49, %v4037_v22 }
 0x1d6   :  { %v3754_v3 = vpop.eup %3753  ;;  %3759 = vrsqrt.f32 %v693_v55  ;;  %997 = vmatprep.mubr.bf16.mxu1 %v3892_v61  ;;  %v644_v54 = vmax.f32 %v619_v57, 0.0 }
 0x1d7   :  { %v4510_v40 = vmul.f32 %v3754_v3, %v665_v15 }
 0x1d8   :  { %v3756_v4 = vpop.eup %3755  ;;  %v694_v18 = vadd.f32 1e-05, %v644_v54 }
 0x1d9   :  { %v4512_v14 = vmul.f32 %v3756_v4, %v666_v16 }
 0x1da   :  { %3761 = vrsqrt.f32 %v694_v18 }
 0x1db   :  { %v755_v41 = vpack.c.bf16 %v4512_v14, %v4510_v40 }
 0x1dd   :  { %998 = vmatmul.mubr.bf16.gmra.mrb[40].mxu1 %v755_v41 }
 0x1de   :  { %v3758_v17 = vpop.eup %3757  ;;  %1007 = vmatprep.mubr.bf16.mxu1 %v3892_v61 }
 0x1df   :  { %v4519_v28 = vmul.f32 %v3758_v17, %v667_v10 }
 0x1e0   :  { %v3760_v12 = vpop.eup %3759 }
 0x1e1   :  { %v4521_v30 = vmul.f32 %v3760_v12, %v668_v39 }
 0x1e3   :  { %v756_v43 = vpack.c.bf16 %v4521_v30, %v4519_v28 }
 0x1e4   :  { %v3762_v36 = vpop.eup %3761 }
 0x1e5   :  { %1008 = vmatmul.mubr.bf16.gmra.mrb[44].mxu1 %v756_v43  ;;  %v4527_v47 = vmul.f32 %v3762_v36, %v669_v26 }
 0x1e6   :  { %1017 = vmatprep.mubr.bf16.mxu1 %v3892_v61 }
 0x1e7   :  { %v757_v34 = vpack.c.bf16 %v4527_v47, %v4527_v47 }
 0x1ed   :  { %1018 = vmatmul.mubr.bf16.gmra.mrb[48].mxu1 %v757_v34 }
 0x1ee   :  { %2035 = vmatprep.mubr.bf16.mxu1 %v3892_v61 }
 0x260   :  { %v899_v21 = vpop.f32.mrb[0].mxu1 }
 0x261   :  { %v900_v25 = vadd.f32 %v899_v21, %v4540_v63  ;;  %v901_v46 = vpop.f32.mrb[1].mxu1 }
 0x262   :  { %v902_v53 = vadd.f32 %v901_v46, %v4543_v59  ;;  %v903_v50 = vpop.f32.mrb[2].mxu1 }
 0x263   :  { %v1076_v58 = vmul.f32 0.1, %v900_v25  ;;  %v904_v13 = vadd.f32 %v903_v50, %v4540_v63  ;;  %v905_v42 = vpop.f32.mrb[3].mxu1  ;;  %vm1026_vm12 = vcmp.ge.f32.partialorder %v900_v25, 0.0 }
 0x264   :  { %v1077_v6 = vmul.f32 0.1, %v902_v53  ;;  %v906_v48 = vadd.f32 %v905_v42, %v4543_v59  ;;  %vm1027_vm13 = vcmp.ge.f32.partialorder %v902_v53, 0.0 }
 0x265   :  { %vm1028_vm14 = vcmp.ge.f32.partialorder %v904_v13, 0.0  ;;  %v1078_v62 = vmul.f32 0.1, %v904_v13  ;;  %v1126_v56 = vsel %vm1026_vm12, %v900_v25, %v1076_v58 }
 0x266   :  { %vm1029_vm15 = vcmp.ge.f32.partialorder %v906_v48, 0.0  ;;  %v1079_v7 = vmul.f32 0.1, %v906_v48  ;;  %v1127_v57 = vsel %vm1027_vm13, %v902_v53, %v1077_v6 }
 0x267   :  { %v1128_v55 = vsel %vm1028_vm14, %v904_v13, %v1078_v62 }
 0x268   :  { %v1176_v3 = vpack.c.bf16 %v1128_v55, %v1126_v56  ;;  %v1129_v15 = vsel %vm1029_vm15, %v906_v48, %v1079_v7  ;;  %v909_v16 = vpop.f32.mrb[4].mxu1 }
 0x269   :  { %v1177_v54 = vpack.c.bf16 %v1129_v15, %v1127_v57  ;;  %v910_v4 = vadd.f32 %v909_v16, %v4540_v63  ;;  %v911_v18 = vpop.f32.mrb[5].mxu1 }
 0x26a   :  { %v912_v41 = vadd.f32 %v911_v18, %v4543_v59  ;;  %v913_v17 = vpop.f32.mrb[6].mxu1 }
 0x26b   :  { %v1080_v10 = vmul.f32 0.1, %v910_v4  ;;  %v914_v39 = vadd.f32 %v913_v17, %v4540_v63  ;;  %v915_v12 = vpop.f32.mrb[7].mxu1  ;;  %3334 = vmatprep.mubr.msk.bf16.mxu0 %vm1302_vm1, %v1177_v54  ;;  %vm1030_vm2 = vcmp.ge.f32.partialorder %v910_v4, 0.0 }
 0x26c   :  { %v1081_v43 = vmul.f32 0.1, %v912_v41  ;;  %v916_v36 = vadd.f32 %v915_v12, %v4543_v59  ;;  %1375 = vmatmul.mubr.bf16.vlgmr.msra.gmra.mrb[52].mxu0 %v1176_v3  ;;  %vm1031_vm3 = vcmp.ge.f32.partialorder %v912_v41, 0.0 }
 0x26d   :  { %vm1032_vm4 = vcmp.ge.f32.partialorder %v914_v39, 0.0  ;;  %v1082_v26 = vmul.f32 0.1, %v914_v39  ;;  %v1130_v34 = vsel %vm1030_vm2, %v910_v4, %v1080_v10 }
 0x26e   :  { %vm1033_vm5 = vcmp.ge.f32.partialorder %v916_v36, 0.0  ;;  %v1083_v31 = vmul.f32 0.1, %v916_v36  ;;  %v1131_v21 = vsel %vm1031_vm3, %v912_v41, %v1081_v43 }
 0x26f   :  { %v1132_v49 = vsel %vm1032_vm4, %v914_v39, %v1082_v26 }
 0x270   :  { %v1133_v25 = vsel %vm1033_vm5, %v916_v36, %v1083_v31  ;;  %v919_v46 = vpop.f32.mrb[8].mxu1  ;;  %v1178_v53 = vpack.c.bf16 %v1132_v49, %v1130_v34 }
 0x271   :  { %v1179_v50 = vpack.c.bf16 %v1133_v25, %v1131_v21  ;;  %v920_v58 = vadd.f32 %v919_v46, %v4540_v63  ;;  %v921_v13 = vpop.f32.mrb[9].mxu1 }
 0x272   :  { %v922_v42 = vadd.f32 %v921_v13, %v4543_v59  ;;  %v923_v6 = vpop.f32.mrb[10].mxu1 }
 0x273   :  { %v1084_v48 = vmul.f32 0.1, %v920_v58  ;;  %v924_v62 = vadd.f32 %v923_v6, %v4540_v63  ;;  %v925_v7 = vpop.f32.mrb[11].mxu1  ;;  %3335 = vmatprep.mubr.msk.bf16.mxu0 %vm1302_vm1, %v1179_v50  ;;  %vm1034_vm6 = vcmp.ge.f32.partialorder %v920_v58, 0.0 }
 0x274   :  { %v1085_v56 = vmul.f32 0.1, %v922_v42  ;;  %v926_v55 = vadd.f32 %v925_v7, %v4543_v59  ;;  %1383 = vmatmul.mubr.bf16.gmra.mrb[56].mxu0 %v1178_v53  ;;  %vm1035_vm7 = vcmp.ge.f32.partialorder %v922_v42, 0.0 }
 0x275   :  { %vm1036_vm8 = vcmp.ge.f32.partialorder %v924_v62, 0.0  ;;  %v1086_v57 = vmul.f32 0.1, %v924_v62  ;;  %v1134_v15 = vsel %vm1034_vm6, %v920_v58, %v1084_v48 }
 0x276   :  { %vm1037_vm9 = vcmp.ge.f32.partialorder %v926_v55, 0.0  ;;  %v1087_v3 = vmul.f32 0.1, %v926_v55  ;;  %v1135_v54 = vsel %vm1035_vm7, %v922_v42, %v1085_v56 }
 0x277   :  { %v1136_v16 = vsel %vm1036_vm8, %v924_v62, %v1086_v57 }
 0x278   :  { %v1137_v4 = vsel %vm1037_vm9, %v926_v55, %v1087_v3  ;;  %v929_v18 = vpop.f32.mrb[12].mxu1  ;;  %v1180_v41 = vpack.c.bf16 %v1136_v16, %v1134_v15 }
 0x279   :  { %v1181_v17 = vpack.c.bf16 %v1137_v4, %v1135_v54  ;;  %v930_v10 = vadd.f32 %v929_v18, %v4540_v63  ;;  %v931_v39 = vpop.f32.mrb[13].mxu1 }
 0x27a   :  { %v932_v12 = vadd.f32 %v931_v39, %v4543_v59  ;;  %v933_v43 = vpop.f32.mrb[14].mxu1 }
 0x27b   :  { %v1088_v36 = vmul.f32 0.1, %v930_v10  ;;  %v934_v26 = vadd.f32 %v933_v43, %v4540_v63  ;;  %v935_v31 = vpop.f32.mrb[15].mxu1  ;;  %3336 = vmatprep.mubr.msk.bf16.mxu0 %vm1302_vm1, %v1181_v17  ;;  %vm1038_vm10 = vcmp.ge.f32.partialorder %v930_v10, 0.0 }
 0x27c   :  { %v1089_v34 = vmul.f32 0.1, %v932_v12  ;;  %v936_v49 = vadd.f32 %v935_v31, %v4543_v59  ;;  %1391 = vmatmul.mubr.bf16.gmra.mrb[60].mxu0 %v1180_v41  ;;  %vm1039_vm11 = vcmp.ge.f32.partialorder %v932_v12, 0.0 }
 0x27d   :  { %vm1040_vm12 = vcmp.ge.f32.partialorder %v934_v26, 0.0  ;;  %v1090_v21 = vmul.f32 0.1, %v934_v26  ;;  %v1138_v46 = vsel %vm1038_vm10, %v930_v10, %v1088_v36 }
 0x27e   :  { %vm1041_vm13 = vcmp.ge.f32.partialorder %v936_v49, 0.0  ;;  %v1091_v25 = vmul.f32 0.1, %v936_v49  ;;  %v1139_v50 = vsel %vm1039_vm11, %v932_v12, %v1089_v34 }
 0x27f   :  { %v1140_v53 = vsel %vm1040_vm12, %v934_v26, %v1090_v21 }
 0x280   :  { %v1141_v58 = vsel %vm1041_vm13, %v936_v49, %v1091_v25  ;;  %v939_v13 = vpop.f32.mrb[16].mxu1  ;;  %v1182_v42 = vpack.c.bf16 %v1140_v53, %v1138_v46 }
 0x281   :  { %v1183_v6 = vpack.c.bf16 %v1141_v58, %v1139_v50  ;;  %v940_v48 = vadd.f32 %v939_v13, %v4540_v63  ;;  %v941_v62 = vpop.f32.mrb[17].mxu1 }
 0x282   :  { %v942_v7 = vadd.f32 %v941_v62, %v4543_v59  ;;  %v943_v56 = vpop.f32.mrb[18].mxu1 }
 0x283   :  { %v1092_v55 = vmul.f32 0.1, %v940_v48  ;;  %v944_v57 = vadd.f32 %v943_v56, %v4540_v63  ;;  %v945_v3 = vpop.f32.mrb[19].mxu1  ;;  %3337 = vmatprep.mubr.msk.bf16.mxu0 %vm1302_vm1, %v1183_v6  ;;  %vm1042_vm14 = vcmp.ge.f32.partialorder %v940_v48, 0.0 }
 0x284   :  { %v1093_v15 = vmul.f32 0.1, %v942_v7  ;;  %v946_v16 = vadd.f32 %v945_v3, %v4543_v59  ;;  %1399 = vmatmul.mubr.bf16.gmra.mrb[64].mxu0 %v1182_v42  ;;  %vm1043_vm15 = vcmp.ge.f32.partialorder %v942_v7, 0.0 }
 0x285   :  { %vm1044_vm2 = vcmp.ge.f32.partialorder %v944_v57, 0.0  ;;  %v1094_v54 = vmul.f32 0.1, %v944_v57  ;;  %v1142_v18 = vsel %vm1042_vm14, %v940_v48, %v1092_v55 }
 0x286   :  { %vm1045_vm3 = vcmp.ge.f32.partialorder %v946_v16, 0.0  ;;  %v1095_v4 = vmul.f32 0.1, %v946_v16  ;;  %v1143_v17 = vsel %vm1043_vm15, %v942_v7, %v1093_v15 }
 0x287   :  { %v1144_v41 = vsel %vm1044_vm2, %v944_v57, %v1094_v54 }
 0x288   :  { %v1145_v10 = vsel %vm1045_vm3, %v946_v16, %v1095_v4  ;;  %v949_v39 = vpop.f32.mrb[20].mxu1  ;;  %v1184_v12 = vpack.c.bf16 %v1144_v41, %v1142_v18 }
 0x289   :  { %v1185_v43 = vpack.c.bf16 %v1145_v10, %v1143_v17  ;;  %v950_v36 = vadd.f32 %v949_v39, %v4540_v63  ;;  %v951_v26 = vpop.f32.mrb[21].mxu1 }
 0x28a   :  { %v952_v31 = vadd.f32 %v951_v26, %v4543_v59  ;;  %v953_v34 = vpop.f32.mrb[22].mxu1 }
 0x28b   :  { %v1096_v49 = vmul.f32 0.1, %v950_v36  ;;  %v954_v21 = vadd.f32 %v953_v34, %v4540_v63  ;;  %v955_v25 = vpop.f32.mrb[23].mxu1  ;;  %3338 = vmatprep.mubr.msk.bf16.mxu0 %vm1302_vm1, %v1185_v43  ;;  %vm1046_vm4 = vcmp.ge.f32.partialorder %v950_v36, 0.0 }
 0x28c   :  { %v1097_v46 = vmul.f32 0.1, %v952_v31  ;;  %v956_v53 = vadd.f32 %v955_v25, %v4543_v59  ;;  %1407 = vmatmul.mubr.bf16.gmra.mrb[68].mxu0 %v1184_v12  ;;  %vm1047_vm5 = vcmp.ge.f32.partialorder %v952_v31, 0.0 }
 0x28d   :  { %vm1048_vm6 = vcmp.ge.f32.partialorder %v954_v21, 0.0  ;;  %v1098_v50 = vmul.f32 0.1, %v954_v21  ;;  %v1146_v13 = vsel %vm1046_vm4, %v950_v36, %v1096_v49 }
 0x28e   :  { %vm1049_vm7 = vcmp.ge.f32.partialorder %v956_v53, 0.0  ;;  %v1099_v58 = vmul.f32 0.1, %v956_v53  ;;  %v1147_v6 = vsel %vm1047_vm5, %v952_v31, %v1097_v46 }
 0x28f   :  { %v1148_v42 = vsel %vm1048_vm6, %v954_v21, %v1098_v50 }
 0x290   :  { %v1149_v48 = vsel %vm1049_vm7, %v956_v53, %v1099_v58  ;;  %v959_v62 = vpop.f32.mrb[24].mxu1  ;;  %v1186_v7 = vpack.c.bf16 %v1148_v42, %v1146_v13 }
 0x291   :  { %v1187_v56 = vpack.c.bf16 %v1149_v48, %v1147_v6  ;;  %v960_v55 = vadd.f32 %v959_v62, %v4540_v63  ;;  %v961_v57 = vpop.f32.mrb[25].mxu1 }
 0x292   :  { %v962_v3 = vadd.f32 %v961_v57, %v4543_v59  ;;  %v963_v15 = vpop.f32.mrb[26].mxu1 }
 0x293   :  { %v1100_v16 = vmul.f32 0.1, %v960_v55  ;;  %v964_v54 = vadd.f32 %v963_v15, %v4540_v63  ;;  %v965_v4 = vpop.f32.mrb[27].mxu1  ;;  %3339 = vmatprep.mubr.msk.bf16.mxu0 %vm1302_vm1, %v1187_v56  ;;  %vm1050_vm8 = vcmp.ge.f32.partialorder %v960_v55, 0.0 }
 0x294   :  { %v1101_v18 = vmul.f32 0.1, %v962_v3  ;;  %v966_v41 = vadd.f32 %v965_v4, %v4543_v59  ;;  %1415 = vmatmul.mubr.bf16.gmra.mrb[72].mxu0 %v1186_v7  ;;  %vm1051_vm9 = vcmp.ge.f32.partialorder %v962_v3, 0.0 }
 0x295   :  { %vm1052_vm10 = vcmp.ge.f32.partialorder %v964_v54, 0.0  ;;  %v1102_v17 = vmul.f32 0.1, %v964_v54  ;;  %v1150_v39 = vsel %vm1050_vm8, %v960_v55, %v1100_v16 }
 0x296   :  { %vm1053_vm11 = vcmp.ge.f32.partialorder %v966_v41, 0.0  ;;  %v1103_v10 = vmul.f32 0.1, %v966_v41  ;;  %v1151_v43 = vsel %vm1051_vm9, %v962_v3, %v1101_v18 }
 0x297   :  { %v1152_v12 = vsel %vm1052_vm10, %v964_v54, %v1102_v17 }
 0x298   :  { %v1153_v36 = vsel %vm1053_vm11, %v966_v41, %v1103_v10  ;;  %v969_v26 = vpop.f32.mrb[28].mxu1  ;;  %v1188_v31 = vpack.c.bf16 %v1152_v12, %v1150_v39 }
 0x299   :  { %v1189_v34 = vpack.c.bf16 %v1153_v36, %v1151_v43  ;;  %v970_v49 = vadd.f32 %v969_v26, %v4540_v63  ;;  %v971_v21 = vpop.f32.mrb[29].mxu1 }
 0x29a   :  { %v972_v25 = vadd.f32 %v971_v21, %v4543_v59  ;;  %v973_v46 = vpop.f32.mrb[30].mxu1 }
 0x29b   :  { %v1104_v53 = vmul.f32 0.1, %v970_v49  ;;  %v974_v50 = vadd.f32 %v973_v46, %v4540_v63  ;;  %v975_v58 = vpop.f32.mrb[31].mxu1  ;;  %3340 = vmatprep.mubr.msk.bf16.mxu0 %vm1302_vm1, %v1189_v34  ;;  %vm1054_vm12 = vcmp.ge.f32.partialorder %v970_v49, 0.0 }
 0x29c   :  { %v1105_v13 = vmul.f32 0.1, %v972_v25  ;;  %v976_v42 = vadd.f32 %v975_v58, %v4543_v59  ;;  %1423 = vmatmul.mubr.bf16.gmra.mrb[76].mxu0 %v1188_v31  ;;  %vm1055_vm13 = vcmp.ge.f32.partialorder %v972_v25, 0.0 }
 0x29d   :  { %vm1056_vm14 = vcmp.ge.f32.partialorder %v974_v50, 0.0  ;;  %v1106_v6 = vmul.f32 0.1, %v974_v50  ;;  %v1154_v62 = vsel %vm1054_vm12, %v970_v49, %v1104_v53 }
 0x29e   :  { %vm1057_vm15 = vcmp.ge.f32.partialorder %v976_v42, 0.0  ;;  %v1107_v48 = vmul.f32 0.1, %v976_v42  ;;  %v1155_v56 = vsel %vm1055_vm13, %v972_v25, %v1105_v13 }
 0x29f   :  { %v1156_v7 = vsel %vm1056_vm14, %v974_v50, %v1106_v6 }
 0x2a0   :  { %v1157_v55 = vsel %vm1057_vm15, %v976_v42, %v1107_v48  ;;  %v979_v57 = vpop.f32.mrb[32].mxu1  ;;  %v1190_v3 = vpack.c.bf16 %v1156_v7, %v1154_v62 }
 0x2a1   :  { %v1191_v15 = vpack.c.bf16 %v1157_v55, %v1155_v56  ;;  %v980_v16 = vadd.f32 %v979_v57, %v4540_v63  ;;  %v981_v54 = vpop.f32.mrb[33].mxu1 }
 0x2a2   :  { %v982_v4 = vadd.f32 %v981_v54, %v4543_v59  ;;  %v983_v18 = vpop.f32.mrb[34].mxu1 }
 0x2a3   :  { %v1108_v41 = vmul.f32 0.1, %v980_v16  ;;  %v984_v17 = vadd.f32 %v983_v18, %v4540_v63  ;;  %v985_v10 = vpop.f32.mrb[35].mxu1  ;;  %3341 = vmatprep.mubr.msk.bf16.mxu0 %vm1302_vm1, %v1191_v15  ;;  %vm1058_vm2 = vcmp.ge.f32.partialorder %v980_v16, 0.0 }
 0x2a4   :  { %v1109_v39 = vmul.f32 0.1, %v982_v4  ;;  %v986_v12 = vadd.f32 %v985_v10, %v4543_v59  ;;  %1431 = vmatmul.mubr.bf16.gmra.mrb[80].mxu0 %v1190_v3  ;;  %vm1059_vm3 = vcmp.ge.f32.partialorder %v982_v4, 0.0 }
 0x2a5   :  { %vm1060_vm4 = vcmp.ge.f32.partialorder %v984_v17, 0.0  ;;  %v1110_v43 = vmul.f32 0.1, %v984_v17  ;;  %v1158_v26 = vsel %vm1058_vm2, %v980_v16, %v1108_v41 }
 0x2a6   :  { %vm1061_vm5 = vcmp.ge.f32.partialorder %v986_v12, 0.0  ;;  %v1111_v36 = vmul.f32 0.1, %v986_v12  ;;  %v1159_v34 = vsel %vm1059_vm3, %v982_v4, %v1109_v39 }
 0x2a7   :  { %v1160_v31 = vsel %vm1060_vm4, %v984_v17, %v1110_v43 }
 0x2a8   :  { %v1161_v49 = vsel %vm1061_vm5, %v986_v12, %v1111_v36  ;;  %v989_v21 = vpop.f32.mrb[36].mxu1  ;;  %v1192_v25 = vpack.c.bf16 %v1160_v31, %v1158_v26 }
 0x2a9   :  { %v1193_v46 = vpack.c.bf16 %v1161_v49, %v1159_v34  ;;  %v990_v53 = vadd.f32 %v989_v21, %v4540_v63  ;;  %v991_v50 = vpop.f32.mrb[37].mxu1 }
 0x2aa   :  { %v992_v58 = vadd.f32 %v991_v50, %v4543_v59  ;;  %v993_v13 = vpop.f32.mrb[38].mxu1 }
 0x2ab   :  { %v1112_v42 = vmul.f32 0.1, %v990_v53  ;;  %v994_v6 = vadd.f32 %v993_v13, %v4540_v63  ;;  %v995_v48 = vpop.f32.mrb[39].mxu1  ;;  %3342 = vmatprep.mubr.msk.bf16.mxu0 %vm1302_vm1, %v1193_v46  ;;  %vm1062_vm6 = vcmp.ge.f32.partialorder %v990_v53, 0.0 }
 0x2ac   :  { %v1113_v62 = vmul.f32 0.1, %v992_v58  ;;  %v996_v7 = vadd.f32 %v995_v48, %v4543_v59  ;;  %1439 = vmatmul.mubr.bf16.gmra.mrb[84].mxu0 %v1192_v25  ;;  %vm1063_vm7 = vcmp.ge.f32.partialorder %v992_v58, 0.0 }
 0x2ad   :  { %vm1064_vm8 = vcmp.ge.f32.partialorder %v994_v6, 0.0  ;;  %v1114_v56 = vmul.f32 0.1, %v994_v6  ;;  %v1162_v57 = vsel %vm1062_vm6, %v990_v53, %v1112_v42 }
 0x2ae   :  { %vm1065_vm9 = vcmp.ge.f32.partialorder %v996_v7, 0.0  ;;  %v1115_v55 = vmul.f32 0.1, %v996_v7  ;;  %v1163_v15 = vsel %vm1063_vm7, %v992_v58, %v1113_v62 }
 0x2af   :  { %v1164_v3 = vsel %vm1064_vm8, %v994_v6, %v1114_v56 }
 0x2b0   :  { %v1165_v16 = vsel %vm1065_vm9, %v996_v7, %v1115_v55  ;;  %v999_v54 = vpop.f32.mrb[40].mxu1  ;;  %v1194_v4 = vpack.c.bf16 %v1164_v3, %v1162_v57 }
 0x2b1   :  { %v1195_v18 = vpack.c.bf16 %v1165_v16, %v1163_v15  ;;  %v1000_v41 = vadd.f32 %v999_v54, %v4540_v63  ;;  %v1001_v17 = vpop.f32.mrb[41].mxu1 }
 0x2b2   :  { %v1002_v10 = vadd.f32 %v1001_v17, %v4543_v59  ;;  %v1003_v39 = vpop.f32.mrb[42].mxu1 }
 0x2b3   :  { %v1116_v12 = vmul.f32 0.1, %v1000_v41  ;;  %v1004_v43 = vadd.f32 %v1003_v39, %v4540_v63  ;;  %v1005_v36 = vpop.f32.mrb[43].mxu1  ;;  %3343 = vmatprep.mubr.msk.bf16.mxu0 %vm1302_vm1, %v1195_v18  ;;  %vm1066_vm10 = vcmp.ge.f32.partialorder %v1000_v41, 0.0 }
 0x2b4   :  { %v1117_v26 = vmul.f32 0.1, %v1002_v10  ;;  %v1006_v31 = vadd.f32 %v1005_v36, %v4543_v59  ;;  %1447 = vmatmul.mubr.bf16.gmra.mrb[88].mxu0 %v1194_v4  ;;  %vm1067_vm11 = vcmp.ge.f32.partialorder %v1002_v10, 0.0 }
 0x2b5   :  { %vm1068_vm12 = vcmp.ge.f32.partialorder %v1004_v43, 0.0  ;;  %v1118_v34 = vmul.f32 0.1, %v1004_v43  ;;  %v1166_v21 = vsel %vm1066_vm10, %v1000_v41, %v1116_v12 }
 0x2b6   :  { %vm1069_vm13 = vcmp.ge.f32.partialorder %v1006_v31, 0.0  ;;  %v1119_v49 = vmul.f32 0.1, %v1006_v31  ;;  %v1167_v46 = vsel %vm1067_vm11, %v1002_v10, %v1117_v26 }
 0x2b7   :  { %v1168_v25 = vsel %vm1068_vm12, %v1004_v43, %v1118_v34 }
 0x2b8   :  { %v1169_v53 = vsel %vm1069_vm13, %v1006_v31, %v1119_v49  ;;  %v1009_v50 = vpop.f32.mrb[44].mxu1  ;;  %v1196_v58 = vpack.c.bf16 %v1168_v25, %v1166_v21 }
 0x2b9   :  { %v1197_v13 = vpack.c.bf16 %v1169_v53, %v1167_v46  ;;  %v1010_v42 = vadd.f32 %v1009_v50, %v4540_v63  ;;  %v1011_v6 = vpop.f32.mrb[45].mxu1  ;;  %v3672_v50 = vld [vmem:[%s5663_s2 + $0x90] ss:$8 sps:$4 sm:$0xff]  }
 0x2ba   :  { %v1012_v48 = vadd.f32 %v1011_v6, %v4543_v59  ;;  %v1013_v62 = vpop.f32.mrb[46].mxu1  ;;  %v3678_v6 = vld [vmem:[%s5663_s2 + $0xb0] ss:$8 sps:$4 sm:$0xff]  }
 0x2bb   :  { %v1120_v7 = vmul.f32 0.1, %v1010_v42  ;;  %v1014_v56 = vadd.f32 %v1013_v62, %v4540_v63  ;;  %v1015_v55 = vpop.f32.mrb[47].mxu1  ;;  %3344 = vmatprep.mubr.msk.bf16.mxu0 %vm1302_vm1, %v1197_v13  ;;  %vm1070_vm14 = vcmp.ge.f32.partialorder %v1010_v42, 0.0  ;;  %v3675_v13 = vld [vmem:[%s5663_s2 + $0xa0] ss:$8 sps:$4 sm:$0xff]  }
 0x2bc   :  { %v1121_v57 = vmul.f32 0.1, %v1012_v48  ;;  %v1016_v3 = vadd.f32 %v1015_v55, %v4543_v59  ;;  %1455 = vmatmul.mubr.bf16.gmra.mrb[92].mxu0 %v1196_v58  ;;  %vm1071_vm15 = vcmp.ge.f32.partialorder %v1012_v48, 0.0  ;;  %v3674_v58 = vld [vmem:[%s5663_s2 + $0x94] ss:$8 sps:$4 sm:$0xff]  }
 0x2bd   :  { %vm1072_vm2 = vcmp.ge.f32.partialorder %v1014_v56, 0.0  ;;  %v1122_v15 = vmul.f32 0.1, %v1014_v56  ;;  %v1170_v54 = vsel %vm1070_vm14, %v1010_v42, %v1120_v7  ;;  %v3677_v42 = vld [vmem:[%s5663_s2 + $0xa4] ss:$8 sps:$4 sm:$0xff]  }
 0x2be   :  { %vm1073_vm3 = vcmp.ge.f32.partialorder %v1016_v3, 0.0  ;;  %v1123_v16 = vmul.f32 0.1, %v1016_v3  ;;  %v1171_v18 = vsel %vm1071_vm15, %v1012_v48, %v1121_v57  ;;  %v3680_v48 = vld [vmem:[%s5663_s2 + $0xb4] ss:$8 sps:$4 sm:$0xff]   ;;  %v1228_v57 = vsub.s32 2, %v4028_v19 }
 0x2bf   :  { %v1172_v4 = vsel %vm1072_vm2, %v1014_v56, %v1122_v15  ;;  %v3683_v62 = vld [vmem:[%s5663_s2 + $0xc4] ss:$8 sps:$4 sm:$0xff]   ;;  %v3681_v7 = vld [vmem:[%s5663_s2 + $0xc0] ss:$8 sps:$4 sm:$0xff]   ;;  %v3686_v56 = vld [vmem:[%s5663_s2 + $0xd4] ss:$8 sps:$4 sm:$0xff]  }
 0x2c0   :  { %v1173_v41 = vsel %vm1073_vm3, %v1016_v3, %v1123_v16  ;;  %v1019_v17 = vpop.f32.mrb[48].mxu1  ;;  %v1198_v10 = vpack.c.bf16 %v1172_v4, %v1170_v54  ;;  %v3684_v55 = vld [vmem:[%s5663_s2 + $0xd0] ss:$8 sps:$4 sm:$0xff]   ;;  %v1480_v3 = vsub.s32 4, %v4028_v19  ;;  %v3863_v15 = vld [vmem:[%s5666_s5] sm:$0xff] }
 0x2c1   :  { %v1199_v39 = vpack.c.bf16 %v1173_v41, %v1171_v18  ;;  %v1020_v12 = vadd.f32 %v1019_v17, %v4540_v63  ;;  %v1021_v43 = vpop.f32.mrb[49].mxu1  ;;  %v3669_v63 = vld [vmem:[%s5663_s2 + $0x80] ss:$8 sps:$4 sm:$0xff]   ;;  %v4649_v16 = vrot.slane %v3863_v15, %v1228_v57 }
 0x2c2   :  { %v1022_v36 = vadd.f32 %v1021_v43, %v4543_v59  ;;  %v1023_v26 = vpop.f32.mrb[50].mxu1  ;;  %v3671_v59 = vld [vmem:[%s5663_s2 + $0x84] ss:$8 sps:$4 sm:$0xff]   ;;  %v4651_v54 = vrot.slane %v3863_v15, %v1480_v3  ;;  %v3687_v3 = vld [vmem:[%s5663_s2 + $0xe0] ss:$8 sps:$4 sm:$0xff]  }
 0x2c3   :  { %v1124_v31 = vmul.f32 0.1, %v1020_v12  ;;  %v1024_v34 = vpop.f32.mrb[51].mxu1  ;;  %3345 = vmatprep.mubr.msk.bf16.mxu0 %vm1302_vm1, %v1199_v39  ;;  %vm1074_vm4 = vcmp.ge.f32.partialorder %v1020_v12, 0.0  ;;  %2003 = vmatprep.subr.bf16.mxu1 %v3671_v59  ;;  %v3689_v15 = vld [vmem:[%s5663_s2 + $0xe4] ss:$8 sps:$4 sm:$0xff]  }
 0x2c4   :  { %vm1075_vm5 = vcmp.ge.f32.partialorder %v1022_v36, 0.0  ;;  %v1125_v49 = vmul.f32 0.1, %v1022_v36  ;;  %1463 = vmatmul.mubr.bf16.gmra.mrb[96].mxu0 %v1198_v10  ;;  %2004 = vmatpush1.bf16.msra.mxu1 %v3669_v63  ;;  %v1482_v41 = vmul.f32 %v4651_v54, %v4325_v44  ;;  %v1483_v43 = vmul.f32 %v4651_v54, %v4327_v33 }
 0x2c5   :  { %v1174_v46 = vsel %vm1074_vm4, %v1020_v12, %v1124_v31  ;;  %2005 = vmatprep.subr.bf16.mxu1 %v3674_v58  ;;  %v1485_v63 = vmul.f32 %v4651_v54, %v4354_v45 }
 0x2c6   :  { %v1175_v21 = vsel %vm1075_vm5, %v1022_v36, %v1125_v49  ;;  %v1200_v53 = vpack.c.bf16 %v1174_v46, %v1174_v46  ;;  %v1484_v49 = vmul.f32 %v4651_v54, %v4352_v29 }
 0x2c7   :  { %v1201_v25 = vpack.c.bf16 %v1175_v21, %v1175_v21 }
 0x2c8   :  { %2006 = vmatpush1.bf16.msra.mxu1 %v3672_v50 }
 0x2c9   :  { %3346 = vmatprep.mubr.msk.bf16.mxu0 %vm1302_vm1, %v1201_v25  ;;  %2007 = vmatprep.subr.bf16.mxu1 %v3677_v42  ;;  %v1486_v42 = vmul.f32 %v4651_v54, %v4376_v8 }
 0x2cc   :  { %1471 = vmatmul.mubr.bf16.gmra.mrb[100].mxu0 %v1200_v53  ;;  %2008 = vmatpush1.bf16.msra.mxu1 %v3675_v13 }
 0x2cd   :  { %2009 = vmatprep.subr.bf16.mxu1 %v3680_v48 }
 0x2d0   :  { %2010 = vmatpush1.bf16.msra.mxu1 %v3678_v6 }
 0x2d1   :  { %2011 = vmatprep.subr.bf16.mxu1 %v3683_v62 }
 0x2d4   :  { %2012 = vmatpush1.bf16.msra.mxu1 %v3681_v7 }
 0x2d5   :  { %2013 = vmatprep.subr.bf16.mxu1 %v3686_v56  ;;  %v1487_v56 = vmul.f32 %v4651_v54, %v4378_v9 }
 0x2d8   :  { %2014 = vmatpush1.bf16.msra.mxu1 %v3684_v55 }
 0x2d9   :  { %2015 = vmatprep.subr.bf16.mxu1 %v3689_v15 }
 0x2dc   :  { %2016 = vmatpush1.bf16.msra.mxu1 %v3687_v3 }
 0x33f   :  { %v1376_v4 = vpop.f32.mrb[52].mxu0 }
 0x340   :  { %v1377_v18 = vadd.f32 %v1376_v4, %v4649_v16  ;;  %v1378_v17 = vpop.f32.mrb[53].mxu0 }
 0x341   :  { %v1379_v10 = vpop.f32.mrb[54].mxu0 }
 0x342   :  { %v4656_v39 = vadd.f32 %v1482_v41, %v1377_v18  ;;  %v1380_v12 = vadd.f32 %v1379_v10, %v4649_v16  ;;  %v1381_v36 = vpop.f32.mrb[55].mxu0  ;;  %v1488_v18 = vmul.f32 %v4651_v54, %v4395_v23 }
 0x343   :  { %v1489_v36 = vmul.f32 %v4651_v54, %v4397_v51 }
 0x344   :  { %v4661_v26 = vadd.f32 %v1483_v43, %v1380_v12  ;;  %1532 = vadd.xlane.f32.xlu0 %v4656_v39  ;;  %v1607_v31 = vmul.f32 %v4656_v39, %v4656_v39 }
 0x346   :  { %1534 = vadd.xlane.f32.xlu1 %v4661_v26  ;;  %v1608_v33 = vmul.f32 %v4661_v26, %v4661_v26 }
 0x347   :  { %v1384_v44 = vpop.f32.mrb[56].mxu0 }
 0x348   :  { %v1385_v34 = vadd.f32 %v1384_v44, %v4649_v16  ;;  %1632 = vadd.xlane.f32.xlu0 %v1607_v31  ;;  %v1386_v21 = vpop.f32.mrb[57].mxu0 }
 0x349   :  { %v1387_v25 = vpop.f32.mrb[58].mxu0  ;;  %v1490_v21 = vmul.f32 %v4651_v54, %v4414_v37 }
 0x34a   :  { %v4672_v46 = vadd.f32 %v1484_v49, %v1385_v34  ;;  %v1388_v53 = vadd.f32 %v1387_v25, %v4649_v16  ;;  %1634 = vadd.xlane.f32.xlu1 %v1608_v33  ;;  %v1389_v59 = vpop.f32.mrb[59].mxu0 }
 0x34b   :  { %v1491_v59 = vmul.f32 %v4651_v54, %v4416_v38 }
 0x34c   :  { %v4677_v50 = vadd.f32 %v1485_v63, %v1388_v53  ;;  %1536 = vadd.xlane.f32.xlu0 %v4672_v46  ;;  %v1609_v29 = vmul.f32 %v4672_v46, %v4672_v46 }
 0x34e   :  { %1538 = vadd.xlane.f32.xlu1 %v4677_v50  ;;  %v1610_v45 = vmul.f32 %v4677_v50, %v4677_v50 }
 0x34f   :  { %v1392_v58 = vpop.f32.mrb[60].mxu0 }
 0x350   :  { %v1393_v13 = vadd.f32 %v1392_v58, %v4649_v16  ;;  %1636 = vadd.xlane.f32.xlu0 %v1609_v29  ;;  %v1394_v6 = vpop.f32.mrb[61].mxu0 }
 0x351   :  { %v1395_v48 = vpop.f32.mrb[62].mxu0  ;;  %v1492_v6 = vmul.f32 %v4651_v54, %v4433_v24  ;;  %v1493_v24 = vmul.f32 %v4651_v54, %v4435_v60  ;;  %v1494_v60 = vmul.f32 %v4651_v54, %v4452_v0 }
 0x352   :  { %v4688_v62 = vadd.f32 %v1486_v42, %v1393_v13  ;;  %v1396_v7 = vadd.f32 %v1395_v48, %v4649_v16  ;;  %1638 = vadd.xlane.f32.xlu1 %v1610_v45  ;;  %v1397_v55 = vpop.f32.mrb[63].mxu0  ;;  %v3690_v48 = vld [vmem:[%s5663_s2 + $0xf0] ss:$8 sps:$4 sm:$0xff]  }
 0x354   :  { %v4693_v57 = vadd.f32 %v1487_v56, %v1396_v7  ;;  %1540 = vadd.xlane.f32.xlu0 %v4688_v62  ;;  %v1611_v8 = vmul.f32 %v4688_v62, %v4688_v62  ;;  %v3692_v7 = vld [vmem:[%s5663_s2 + $0xf4] ss:$8 sps:$4 sm:$0xff]  }
 0x355   :  { %2017 = vmatprep.subr.bf16.mxu1 %v3692_v7 }
 0x356   :  { %1542 = vadd.xlane.f32.xlu1 %v4693_v57  ;;  %v1612_v17 = vmul.f32 %v4693_v57, %v4693_v57  ;;  %2018 = vmatpush1.bf16.msra.mxu1 %v3690_v48 }
 0x357   :  { %v1400_v9 = vpop.f32.mrb[64].mxu0  ;;  %3596 = vmatprep.subr.bf16.mxu1 %v3890_v1 }
 0x358   :  { %v1401_v4 = vadd.f32 %v1400_v9, %v4649_v16  ;;  %1640 = vadd.xlane.f32.xlu0 %v1611_v8  ;;  %v1402_v41 = vpop.f32.mrb[65].mxu0 }
 0x359   :  { %v1403_v10 = vpop.f32.mrb[66].mxu0 }
 0x35a   :  { %v4710_v12 = vadd.f32 %v1488_v18, %v1401_v4  ;;  %v1404_v43 = vadd.f32 %v1403_v10, %v4649_v16  ;;  %1642 = vadd.xlane.f32.xlu1 %v1612_v17  ;;  %v1405_v31 = vpop.f32.mrb[67].mxu0 }
 0x35b   :  { %v1495_v31 = vmul.f32 %v4651_v54, %v4454_v11 }
 0x35c   :  { %v4715_v44 = vadd.f32 %v1489_v36, %v1404_v43  ;;  %1544 = vadd.xlane.f32.xlu0 %v4710_v12  ;;  %v1613_v23 = vmul.f32 %v4710_v12, %v4710_v12 }
 0x35e   :  { %1546 = vadd.xlane.f32.xlu1 %v4715_v44  ;;  %v1614_v51 = vmul.f32 %v4715_v44, %v4715_v44 }
 0x35f   :  { %v1408_v34 = vpop.f32.mrb[68].mxu0 }
 0x360   :  { %v1409_v49 = vadd.f32 %v1408_v34, %v4649_v16  ;;  %1644 = vadd.xlane.f32.xlu0 %v1613_v23  ;;  %v1410_v33 = vpop.f32.mrb[69].mxu0 }
 0x361   :  { %v1411_v25 = vpop.f32.mrb[70].mxu0  ;;  %v1496_v33 = vmul.f32 %v4651_v54, %v4471_v35 }
 0x362   :  { %v4726_v53 = vadd.f32 %v1490_v21, %v1409_v49  ;;  %v1412_v63 = vadd.f32 %v1411_v25, %v4649_v16  ;;  %1646 = vadd.xlane.f32.xlu1 %v1614_v51  ;;  %v1413_v29 = vpop.f32.mrb[71].mxu0 }
 0x363   :  { %v1497_v29 = vmul.f32 %v4651_v54, %v4473_v32 }
 0x364   :  { %v4731_v58 = vadd.f32 %v1491_v59, %v1412_v63  ;;  %1548 = vadd.xlane.f32.xlu0 %v4726_v53  ;;  %v1615_v37 = vmul.f32 %v4726_v53, %v4726_v53 }
 0x366   :  { %1550 = vadd.xlane.f32.xlu1 %v4731_v58  ;;  %v1616_v38 = vmul.f32 %v4731_v58, %v4731_v58 }
 0x367   :  { %v1416_v13 = vpop.f32.mrb[72].mxu0 }
 0x368   :  { %v1417_v42 = vadd.f32 %v1416_v13, %v4649_v16  ;;  %1648 = vadd.xlane.f32.xlu0 %v1615_v37  ;;  %v1418_v45 = vpop.f32.mrb[73].mxu0 }
 0x369   :  { %v1419_v56 = vpop.f32.mrb[74].mxu0  ;;  %v1498_v45 = vmul.f32 %v4651_v54, %v4488_v27 }
 0x36a   :  { %v4748_v55 = vadd.f32 %v1492_v6, %v1417_v42  ;;  %v1420_v8 = vadd.f32 %v1419_v56, %v4649_v16  ;;  %1650 = vadd.xlane.f32.xlu1 %v1616_v38  ;;  %v1421_v3 = vpop.f32.mrb[75].mxu0 }
 0x36c   :  { %v4753_v15 = vadd.f32 %v1493_v24, %v1420_v8  ;;  %1552 = vadd.xlane.f32.xlu0 %v4748_v55  ;;  %v1617_v9 = vmul.f32 %v4748_v55, %v4748_v55  ;;  %v1499_v8 = vmul.f32 %v4651_v54, %v4490_v52 }
 0x36e   :  { %1554 = vadd.xlane.f32.xlu1 %v4753_v15  ;;  %v1618_v17 = vmul.f32 %v4753_v15, %v4753_v15 }
 0x36f   :  { %v1424_v4 = vpop.f32.mrb[76].mxu0 }
 0x370   :  { %v1425_v18 = vadd.f32 %v1424_v4, %v4649_v16  ;;  %1652 = vadd.xlane.f32.xlu0 %v1617_v9  ;;  %v1426_v41 = vpop.f32.mrb[77].mxu0 }
 0x371   :  { %v1427_v10 = vpop.f32.mrb[78].mxu0 }
 0x372   :  { %v4765_v43 = vadd.f32 %v1494_v60, %v1425_v18  ;;  %v1428_v36 = vadd.f32 %v1427_v10, %v4649_v16  ;;  %1654 = vadd.xlane.f32.xlu1 %v1618_v17  ;;  %v1429_v23 = vpop.f32.mrb[79].mxu0  ;;  %v1500_v18 = vmul.f32 %v4651_v54, %v4499_v2 }
 0x374   :  { %v4770_v34 = vadd.f32 %v1495_v31, %v1428_v36  ;;  %1556 = vadd.xlane.f32.xlu0 %v4765_v43  ;;  %v1619_v0 = vmul.f32 %v4765_v43, %v4765_v43  ;;  %v1501_v36 = vmul.f32 %v4651_v54, %v4501_v5 }
 0x376   :  { %1558 = vadd.xlane.f32.xlu1 %v4770_v34  ;;  %v1620_v11 = vmul.f32 %v4770_v34, %v4770_v34 }
 0x377   :  { %v1432_v49 = vpop.f32.mrb[80].mxu0 }
 0x378   :  { %v1433_v21 = vadd.f32 %v1432_v49, %v4649_v16  ;;  %1656 = vadd.xlane.f32.xlu0 %v1619_v0  ;;  %v1434_v51 = vpop.f32.mrb[81].mxu0 }
 0x379   :  { %v1435_v25 = vpop.f32.mrb[82].mxu0 }
 0x37a   :  { %v4781_v63 = vadd.f32 %v1496_v33, %v1433_v21  ;;  %v1436_v59 = vadd.f32 %v1435_v25, %v4649_v16  ;;  %1658 = vadd.xlane.f32.xlu1 %v1620_v11  ;;  %v1437_v37 = vpop.f32.mrb[83].mxu0  ;;  %v1502_v21 = vmul.f32 %v4651_v54, %v4510_v40 }
 0x37c   :  { %v4786_v13 = vadd.f32 %v1497_v29, %v1436_v59  ;;  %1560 = vadd.xlane.f32.xlu0 %v4781_v63  ;;  %v1621_v35 = vmul.f32 %v4781_v63, %v4781_v63  ;;  %v1503_v59 = vmul.f32 %v4651_v54, %v4512_v14 }
 0x37e   :  { %1562 = vadd.xlane.f32.xlu1 %v4786_v13  ;;  %v1622_v32 = vmul.f32 %v4786_v13, %v4786_v13 }
 0x37f   :  { %v1440_v42 = vpop.f32.mrb[84].mxu0 }
 0x380   :  { %v1441_v6 = vadd.f32 %v1440_v42, %v4649_v16  ;;  %1660 = vadd.xlane.f32.xlu0 %v1621_v35  ;;  %v1442_v38 = vpop.f32.mrb[85].mxu0 }
 0x381   :  { %v1443_v48 = vpop.f32.mrb[86].mxu0 }
 0x382   :  { %v4797_v7 = vadd.f32 %v1498_v45, %v1441_v6  ;;  %v1444_v56 = vadd.f32 %v1443_v48, %v4649_v16  ;;  %1662 = vadd.xlane.f32.xlu1 %v1622_v32  ;;  %v1445_v24 = vpop.f32.mrb[87].mxu0  ;;  %v1504_v6 = vmul.f32 %v4651_v54, %v4519_v28 }
 0x384   :  { %v4802_v3 = vadd.f32 %v1499_v8, %v1444_v56  ;;  %1564 = vadd.xlane.f32.xlu0 %v4797_v7  ;;  %v1623_v27 = vmul.f32 %v4797_v7, %v4797_v7  ;;  %v1505_v56 = vmul.f32 %v4651_v54, %v4521_v30 }
 0x386   :  { %1566 = vadd.xlane.f32.xlu1 %v4802_v3  ;;  %v1624_v52 = vmul.f32 %v4802_v3, %v4802_v3 }
 0x387   :  { %v1448_v9 = vpop.f32.mrb[88].mxu0 }
 0x388   :  { %v1449_v4 = vadd.f32 %v1448_v9, %v4649_v16  ;;  %1664 = vadd.xlane.f32.xlu0 %v1623_v27  ;;  %v1450_v60 = vpop.f32.mrb[89].mxu0 }
 0x389   :  { %v1451_v41 = vpop.f32.mrb[90].mxu0 }
 0x38a   :  { %v4813_v17 = vadd.f32 %v1500_v18, %v1449_v4  ;;  %v1452_v10 = vadd.f32 %v1451_v41, %v4649_v16  ;;  %1666 = vadd.xlane.f32.xlu1 %v1624_v52  ;;  %v1453_v31 = vpop.f32.mrb[91].mxu0  ;;  %v1506_v4 = vmul.f32 %v4651_v54, %v4527_v47  ;;  %v3693_v47 = vld [vmem:[%s5664_s3 + $0x60] sm:$0xff]   ;;  %v3694_v54 = vld [vmem:[%s5664_s3 + $0x68] sm:$0xff]  }
 0x38b   :  { %2481 = vmatpush1.bf16.msra.mxu0 %v3693_v47 }
 0x38c   :  { %v4818_v23 = vadd.f32 %v1501_v36, %v1452_v10  ;;  %1568 = vadd.xlane.f32.xlu0 %v4813_v17  ;;  %v1625_v2 = vmul.f32 %v4813_v17, %v4813_v17  ;;  %2482 = vmatprep.subr.bf16.mxu0 %v3892_v61 }
 0x38e   :  { %1570 = vadd.xlane.f32.xlu1 %v4818_v23  ;;  %v1626_v5 = vmul.f32 %v4818_v23, %v4818_v23 }
 0x38f   :  { %v1456_v0 = vpop.f32.mrb[92].mxu0  ;;  %2483 = vmatpush1.bf16.msra.mxu0 %v3694_v54 }
 0x390   :  { %v1457_v49 = vadd.f32 %v1456_v0, %v4649_v16  ;;  %1668 = vadd.xlane.f32.xlu0 %v1625_v2  ;;  %v1458_v33 = vpop.f32.mrb[93].mxu0  ;;  %2484 = vmatprep.subr.bf16.mxu0 %v3892_v61 }
 0x391   :  { %v1459_v51 = vpop.f32.mrb[94].mxu0 }
 0x392   :  { %v4829_v11 = vadd.f32 %v1502_v21, %v1457_v49  ;;  %v1460_v25 = vadd.f32 %v1459_v51, %v4649_v16  ;;  %1670 = vadd.xlane.f32.xlu1 %v1626_v5  ;;  %v1461_v29 = vpop.f32.mrb[95].mxu0  ;;  %v3695_v49 = vld [vmem:[%s5664_s3 + $0x70] sm:$0xff]  }
 0x393   :  { %2485 = vmatpush1.bf16.msra.mxu0 %v3695_v49 }
 0x394   :  { %v4834_v37 = vadd.f32 %v1503_v59, %v1460_v25  ;;  %1572 = vadd.xlane.f32.xlu0 %v4829_v11  ;;  %v1627_v40 = vmul.f32 %v4829_v11, %v4829_v11  ;;  %2486 = vmatprep.subr.bf16.mxu0 %v3892_v61 }
 0x396   :  { %1574 = vadd.xlane.f32.xlu1 %v4834_v37  ;;  %v1628_v14 = vmul.f32 %v4834_v37, %v4834_v37 }
 0x397   :  { %v1464_v35 = vpop.f32.mrb[96].mxu0 }
 0x398   :  { %v1465_v42 = vadd.f32 %v1464_v35, %v4649_v16  ;;  %1672 = vadd.xlane.f32.xlu0 %v1627_v40  ;;  %v1466_v45 = vpop.f32.mrb[97].mxu0  ;;  %v3696_v40 = vld [vmem:[%s5664_s3 + $0x78] sm:$0xff]  }
 0x399   :  { %v1467_v38 = vpop.f32.mrb[98].mxu0  ;;  %2487 = vmatpush1.bf16.msra.mxu0 %v3696_v40 }
 0x39a   :  { %v4845_v32 = vadd.f32 %v1504_v6, %v1465_v42  ;;  %v1468_v48 = vadd.f32 %v1467_v38, %v4649_v16  ;;  %1674 = vadd.xlane.f32.xlu1 %v1628_v14  ;;  %v1469_v8 = vpop.f32.mrb[99].mxu0  ;;  %2488 = vmatprep.subr.bf16.mxu0 %v3892_v61 }
 0x39b   :  { %v3697_v8 = vld [vmem:[%s5664_s3 + $0x80] sm:$0xff]  }
 0x39c   :  { %v4850_v24 = vadd.f32 %v1505_v56, %v1468_v48  ;;  %1576 = vadd.xlane.f32.xlu0 %v4845_v32  ;;  %v1629_v28 = vmul.f32 %v4845_v32, %v4845_v32 }
 0x39d   :  { %2489 = vmatpush1.bf16.msra.mxu0 %v3697_v8  ;;  %v3700_v8 = vld [vmem:[%s5664_s3 + $0x98] sm:$0xff]  }
 0x39e   :  { %1578 = vadd.xlane.f32.xlu1 %v4850_v24  ;;  %v1630_v30 = vmul.f32 %v4850_v24, %v4850_v24  ;;  %2490 = vmatprep.subr.bf16.mxu0 %v3892_v61 }
 0x39f   :  { %v1472_v27 = vpop.f32.mrb[100].mxu0 }
 0x3a0   :  { %v1473_v9 = vadd.f32 %v1472_v27, %v4649_v16  ;;  %1676 = vadd.xlane.f32.xlu0 %v1629_v28  ;;  %v1474_v18 = vpop.f32.mrb[101].mxu0 }
 0x3a1   :  { %v1475_v60 = vpop.f32.mrb[102].mxu0 }
 0x3a2   :  { %v4861_v52 = vadd.f32 %v1506_v4, %v1473_v9  ;;  %1678 = vadd.xlane.f32.xlu1 %v1630_v30  ;;  %v1476_v41 = vpop.f32.mrb[103].mxu0 }
 0x3a4   :  { %1580 = vadd.xlane.f32.xlu0 %v4861_v52  ;;  %v1631_v10 = vmul.f32 %v4861_v52, %v4861_v52 }
 0x3a6   :  { %1680 = vadd.xlane.f32.xlu1 %v1631_v10  ;;  %v3698_v10 = vld [vmem:[%s5664_s3 + $0x88] sm:$0xff]  }
 0x3a7   :  { %2491 = vmatpush1.bf16.msra.mxu0 %v3698_v10  ;;  %v3701_v10 = vld [vmem:[%s5664_s3 + $0xa0] sm:$0xff]  }
 0x3a8   :  { %2492 = vmatprep.subr.bf16.mxu0 %v3892_v61 }
 0x3d1   :  { %v1533_v16 = vpop.xlane.xlu0 %1532 }
 0x3d2   :  { %v4872_v36 = vmul.f32 0.0078125, %v1533_v16 }
 0x3d3   :  { %v1535_v31 = vpop.xlane.xlu1 %1534 }
 0x3d4   :  { %v4875_v2 = vmul.f32 0.0078125, %v1535_v31  ;;  %v1707_v21 = vmul.f32 %v4872_v36, %v4872_v36 }
 0x3d5   :  { %v1633_v0 = vpop.xlane.xlu0 %1632 }
 0x3d6   :  { %v1682_v33 = vmul.f32 0.0078125, %v1633_v0  ;;  %v1708_v51 = vmul.f32 %v4875_v2, %v4875_v2 }
 0x3d7   :  { %v1635_v5 = vpop.xlane.xlu1 %1634 }
 0x3d8   :  { %v1732_v25 = vsub.f32 %v1682_v33, %v1707_v21  ;;  %v1683_v59 = vmul.f32 0.0078125, %v1635_v5  ;;  %v3699_v5 = vld [vmem:[%s5664_s3 + $0x90] sm:$0xff]  }
 0x3d9   :  { %v1537_v29 = vpop.xlane.xlu0 %1536  ;;  %2493 = vmatpush1.bf16.msra.mxu0 %v3699_v5 }
 0x3da   :  { %v1757_v35 = vmax.f32 %v1732_v25, 0.0  ;;  %v1733_v42 = vsub.f32 %v1683_v59, %v1708_v51  ;;  %v4888_v6 = vmul.f32 0.0078125, %v1537_v29  ;;  %2494 = vmatprep.subr.bf16.mxu0 %v3892_v61 }
 0x3db   :  { %v1539_v45 = vpop.xlane.xlu1 %1538 }
 0x3dc   :  { %v1807_v14 = vadd.f32 1e-05, %v1757_v35  ;;  %v1758_v38 = vmax.f32 %v1733_v42, 0.0  ;;  %v4891_v48 = vmul.f32 0.0078125, %v1539_v45  ;;  %v1709_v27 = vmul.f32 %v4888_v6, %v4888_v6 }
 0x3dd   :  { %v1637_v56 = vpop.xlane.xlu0 %1636  ;;  %2495 = vmatpush1.bf16.msra.mxu0 %v3700_v8 }
 0x3de   :  { %3763 = vrsqrt.f32 %v1807_v14  ;;  %v1808_v28 = vadd.f32 1e-05, %v1758_v38  ;;  %v1684_v9 = vmul.f32 0.0078125, %v1637_v56  ;;  %v1710_v18 = vmul.f32 %v4891_v48, %v4891_v48  ;;  %2496 = vmatprep.subr.bf16.mxu0 %v3892_v61 }
 0x3df   :  { %v1639_v4 = vpop.xlane.xlu1 %1638  ;;  %v1782_v14 = vsub.f32 %v4656_v39, %v4872_v36  ;;  %v1783_v38 = vsub.f32 %v4661_v26, %v4875_v2 }
 0x3e0   :  { %3765 = vrsqrt.f32 %v1808_v28  ;;  %v1734_v30 = vsub.f32 %v1684_v9, %v1709_v27  ;;  %v1685_v60 = vmul.f32 0.0078125, %v1639_v4 }
 0x3e1   :  { %v1541_v41 = vpop.xlane.xlu0 %1540  ;;  %2497 = vmatpush1.bf16.msra.mxu0 %v3701_v10 }
 0x3e2   :  { %v1759_v47 = vmax.f32 %v1734_v30, 0.0  ;;  %v1735_v16 = vsub.f32 %v1685_v60, %v1710_v18  ;;  %v4904_v54 = vmul.f32 0.0078125, %v1541_v41  ;;  %2498 = vmatprep.subr.bf16.mxu0 %v3892_v61 }
 0x3e3   :  { %v1543_v31 = vpop.xlane.xlu1 %1542 }
 0x3e4   :  { %v1809_v0 = vadd.f32 1e-05, %v1759_v47  ;;  %v1760_v49 = vmax.f32 %v1735_v16, 0.0  ;;  %v4907_v21 = vmul.f32 0.0078125, %v1543_v31  ;;  %v1711_v25 = vmul.f32 %v4904_v54, %v4904_v54 }
 0x3e5   :  { %v1641_v33 = vpop.xlane.xlu0 %1640 }
 0x3e6   :  { %3767 = vrsqrt.f32 %v1809_v0  ;;  %v1810_v51 = vadd.f32 1e-05, %v1760_v49  ;;  %v1686_v59 = vmul.f32 0.0078125, %v1641_v33  ;;  %v1712_v35 = vmul.f32 %v4907_v21, %v4907_v21 }
 0x3e7   :  { %v1643_v29 = vpop.xlane.xlu1 %1642 }
 0x3e8   :  { %v3764_v40 = vpop.eup %3763  ;;  %3769 = vrsqrt.f32 %v1810_v51  ;;  %v1736_v42 = vsub.f32 %v1686_v59, %v1711_v25  ;;  %v1687_v45 = vmul.f32 0.0078125, %v1643_v29  ;;  %v1784_v25 = vsub.f32 %v4672_v46, %v4888_v6 }
 0x3e9   :  { %v1545_v56 = vpop.xlane.xlu0 %1544  ;;  %v4927_v30 = vmul.f32 %v3764_v40, %v1782_v14  ;;  %v1785_v59 = vsub.f32 %v4677_v50, %v4891_v48  ;;  %v3702_v40 = vld [vmem:[%s5664_s3 + $0xa8] sm:$0xff]  }
 0x3ea   :  { %v3766_v28 = vpop.eup %3765  ;;  %v1761_v27 = vmax.f32 %v1736_v42, 0.0  ;;  %v1737_v9 = vsub.f32 %v1687_v45, %v1712_v35  ;;  %v4924_v4 = vmul.f32 0.0078125, %v1545_v56  ;;  %2499 = vmatpush1.bf16.msra.mxu0 %v3702_v40 }
 0x3eb   :  { %v1547_v18 = vpop.xlane.xlu1 %1546  ;;  %v4929_v39 = vmul.f32 %v3766_v28, %v1783_v38  ;;  %2500 = vmatprep.subr.bf16.mxu0 %v3892_v61 }
 0x3ec   :  { %v1811_v36 = vadd.f32 1e-05, %v1761_v27  ;;  %v1762_v26 = vmax.f32 %v1737_v9, 0.0  ;;  %v4931_v2 = vmul.f32 0.0078125, %v1547_v18  ;;  %v1713_v16 = vmul.f32 %v4924_v4, %v4924_v4  ;;  %v3703_v27 = vld [vmem:[%s5664_s3 + $0xb0] sm:$0xff]  }
 0x3ed   :  { %v1645_v60 = vpop.xlane.xlu0 %1644  ;;  %v1882_v41 = vpack.c.bf16 %v4929_v39, %v4927_v30 }
 0x3ee   :  { %3771 = vrsqrt.f32 %v1811_v36  ;;  %v1812_v47 = vadd.f32 1e-05, %v1762_v26  ;;  %v1688_v31 = vmul.f32 0.0078125, %v1645_v60  ;;  %v1714_v33 = vmul.f32 %v4931_v2, %v4931_v2  ;;  %2501 = vmatpush1.bf16.msra.mxu0 %v3703_v27 }
 0x3ef   :  { %2036 = vmatmul.mubr.bf16.vlgmr.msra.gmra.mrb[52].mxu1 %v1882_v41  ;;  %v1647_v0 = vpop.xlane.xlu1 %1646  ;;  %2502 = vmatprep.subr.bf16.mxu0 %v3892_v61  ;;  %v1788_v27 = vsub.f32 %v4710_v12, %v4924_v4 }
 0x3f0   :  { %v3768_v49 = vpop.eup %3767  ;;  %3773 = vrsqrt.f32 %v1812_v47  ;;  %v1738_v5 = vsub.f32 %v1688_v31, %v1713_v16  ;;  %v1689_v51 = vmul.f32 0.0078125, %v1647_v0  ;;  %2045 = vmatprep.mubr.bf16.mxu1 %v3892_v61  ;;  %v1786_v16 = vsub.f32 %v4688_v62, %v4904_v54 }
 0x3f1   :  { %v1549_v29 = vpop.xlane.xlu0 %1548  ;;  %v4954_v56 = vmul.f32 %v3768_v49, %v1784_v25  ;;  %v1787_v31 = vsub.f32 %v4693_v57, %v4907_v21 }
 0x3f2   :  { %v3770_v35 = vpop.eup %3769  ;;  %v1763_v42 = vmax.f32 %v1738_v5, 0.0  ;;  %v1739_v45 = vsub.f32 %v1689_v51, %v1714_v33  ;;  %v4951_v14 = vmul.f32 0.0078125, %v1549_v29 }
 0x3f3   :  { %v1551_v38 = vpop.xlane.xlu1 %1550  ;;  %v4956_v46 = vmul.f32 %v3770_v35, %v1785_v59 }
 0x3f4   :  { %v1813_v6 = vadd.f32 1e-05, %v1763_v42  ;;  %v1764_v50 = vmax.f32 %v1739_v45, 0.0  ;;  %v4958_v48 = vmul.f32 0.0078125, %v1551_v38  ;;  %v1715_v18 = vmul.f32 %v4951_v14, %v4951_v14 }
 0x3f5   :  { %v1649_v8 = vpop.xlane.xlu0 %1648  ;;  %v1883_v28 = vpack.c.bf16 %v4956_v46, %v4954_v56 }
 0x3f6   :  { %3775 = vrsqrt.f32 %v1813_v6  ;;  %v1814_v9 = vadd.f32 1e-05, %v1764_v50  ;;  %v1690_v36 = vmul.f32 0.0078125, %v1649_v8  ;;  %v1716_v41 = vmul.f32 %v4958_v48, %v4958_v48 }
 0x3f7   :  { %2046 = vmatmul.mubr.bf16.gmra.mrb[56].mxu1 %v1883_v28  ;;  %v1651_v26 = vpop.xlane.xlu1 %1650 }
 0x3f8   :  { %v3772_v60 = vpop.eup %3771  ;;  %3777 = vrsqrt.f32 %v1814_v9  ;;  %v1740_v10 = vsub.f32 %v1690_v36, %v1715_v18  ;;  %v1691_v47 = vmul.f32 0.0078125, %v1651_v26  ;;  %2055 = vmatprep.mubr.bf16.mxu1 %v3892_v61  ;;  %v1789_v9 = vsub.f32 %v4715_v44, %v4931_v2 }
 0x3f9   :  { %v1553_v0 = vpop.xlane.xlu0 %1552  ;;  %v4978_v59 = vmul.f32 %v3772_v60, %v1786_v16 }
 0x3fa   :  { %v3774_v49 = vpop.eup %3773  ;;  %v1765_v33 = vmax.f32 %v1740_v10, 0.0  ;;  %v1741_v5 = vsub.f32 %v1691_v47, %v1716_v41  ;;  %v4975_v51 = vmul.f32 0.0078125, %v1553_v0 }
 0x3fb   :  { %v1555_v25 = vpop.xlane.xlu1 %1554  ;;  %v4980_v29 = vmul.f32 %v3774_v49, %v1787_v31 }
 0x3fc   :  { %v1815_v40 = vadd.f32 1e-05, %v1765_v33  ;;  %v1766_v35 = vmax.f32 %v1741_v5, 0.0  ;;  %v4982_v62 = vmul.f32 0.0078125, %v1555_v25  ;;  %v1717_v42 = vmul.f32 %v4975_v51, %v4975_v51 }
 0x3fd   :  { %v1653_v54 = vpop.xlane.xlu0 %1652  ;;  %v1884_v57 = vpack.c.bf16 %v4980_v29, %v4978_v59 }
 0x3fe   :  { %3779 = vrsqrt.f32 %v1815_v40  ;;  %v1816_v21 = vadd.f32 1e-05, %v1766_v35  ;;  %v1692_v45 = vmul.f32 0.0078125, %v1653_v54  ;;  %v1718_v50 = vmul.f32 %v4982_v62, %v4982_v62 }
 0x3ff   :  { %2056 = vmatmul.mubr.bf16.gmra.mrb[60].mxu1 %v1884_v57  ;;  %v1655_v38 = vpop.xlane.xlu1 %1654  ;;  %v1790_v57 = vsub.f32 %v4726_v53, %v4951_v14 }
 0x400   :  { %v3776_v6 = vpop.eup %3775  ;;  %3781 = vrsqrt.f32 %v1816_v21  ;;  %v1742_v8 = vsub.f32 %v1692_v45, %v1717_v42  ;;  %v1693_v28 = vmul.f32 0.0078125, %v1655_v38  ;;  %2065 = vmatprep.mubr.bf16.mxu1 %v3892_v61  ;;  %v1791_v21 = vsub.f32 %v4731_v58, %v4958_v48 }
 0x401   :  { %v1557_v18 = vpop.xlane.xlu0 %1556  ;;  %v4997_v47 = vmul.f32 %v3776_v6, %v1788_v27 }
 0x402   :  { %v3778_v36 = vpop.eup %3777  ;;  %v1767_v26 = vmax.f32 %v1742_v8, 0.0  ;;  %v1743_v60 = vsub.f32 %v1693_v28, %v1718_v50  ;;  %v4995_v41 = vmul.f32 0.0078125, %v1557_v18 }
 0x403   :  { %v1559_v10 = vpop.xlane.xlu1 %1558  ;;  %v4999_v16 = vmul.f32 %v3778_v36, %v1789_v9 }
 0x404   :  { %v1817_v31 = vadd.f32 1e-05, %v1767_v26  ;;  %v1768_v0 = vmax.f32 %v1743_v60, 0.0  ;;  %v5001_v49 = vmul.f32 0.0078125, %v1559_v10  ;;  %v1719_v4 = vmul.f32 %v4995_v41, %v4995_v41 }
 0x405   :  { %v1657_v33 = vpop.xlane.xlu0 %1656  ;;  %v1885_v12 = vpack.c.bf16 %v4999_v16, %v4997_v47 }
 0x406   :  { %3783 = vrsqrt.f32 %v1817_v31  ;;  %v1818_v44 = vadd.f32 1e-05, %v1768_v0  ;;  %v1694_v2 = vmul.f32 0.0078125, %v1657_v33  ;;  %v1720_v40 = vmul.f32 %v5001_v49, %v5001_v49 }
 0x407   :  { %2066 = vmatmul.mubr.bf16.gmra.mrb[64].mxu1 %v1885_v12  ;;  %v1659_v5 = vpop.xlane.xlu1 %1658  ;;  %v1792_v12 = vsub.f32 %v4748_v55, %v4975_v51 }
 0x408   :  { %v3780_v25 = vpop.eup %3779  ;;  %3785 = vrsqrt.f32 %v1818_v44  ;;  %v1744_v35 = vsub.f32 %v1694_v2, %v1719_v4  ;;  %v1695_v54 = vmul.f32 0.0078125, %v1659_v5  ;;  %2075 = vmatprep.mubr.bf16.mxu1 %v3892_v61  ;;  %v1793_v44 = vsub.f32 %v4753_v15, %v4982_v62 }
 0x409   :  { %v1561_v42 = vpop.xlane.xlu0 %1560  ;;  %v5016_v28 = vmul.f32 %v3780_v25, %v1790_v57 }
 0x40a   :  { %v3782_v45 = vpop.eup %3781  ;;  %v1769_v38 = vmax.f32 %v1744_v35, 0.0  ;;  %v1745_v6 = vsub.f32 %v1695_v54, %v1720_v40  ;;  %v5014_v50 = vmul.f32 0.0078125, %v1561_v42 }
 0x40b   :  { %v1563_v8 = vpop.xlane.xlu1 %1562  ;;  %v5018_v27 = vmul.f32 %v3782_v45, %v1791_v21 }
 0x40c   :  { %v1819_v9 = vadd.f32 1e-05, %v1769_v38  ;;  %v1770_v18 = vmax.f32 %v1745_v6, 0.0  ;;  %v5020_v36 = vmul.f32 0.0078125, %v1563_v8  ;;  %v1721_v14 = vmul.f32 %v5014_v50, %v5014_v50 }
 0x40d   :  { %v1661_v26 = vpop.xlane.xlu0 %1660  ;;  %v1886_v53 = vpack.c.bf16 %v5018_v27, %v5016_v28 }
 0x40e   :  { %3787 = vrsqrt.f32 %v1819_v9  ;;  %v1820_v58 = vadd.f32 1e-05, %v1770_v18  ;;  %v1696_v48 = vmul.f32 0.0078125, %v1661_v26  ;;  %v1722_v31 = vmul.f32 %v5020_v36, %v5020_v36 }
 0x40f   :  { %2076 = vmatmul.mubr.bf16.gmra.mrb[68].mxu1 %v1886_v53  ;;  %v1663_v60 = vpop.xlane.xlu1 %1662  ;;  %v1794_v53 = vsub.f32 %v4765_v43, %v4995_v41 }
 0x410   :  { %v3784_v10 = vpop.eup %3783  ;;  %3789 = vrsqrt.f32 %v1820_v58  ;;  %v1746_v0 = vsub.f32 %v1696_v48, %v1721_v14  ;;  %v1697_v33 = vmul.f32 0.0078125, %v1663_v60  ;;  %2085 = vmatprep.mubr.bf16.mxu1 %v3892_v61  ;;  %v1795_v58 = vsub.f32 %v4770_v34, %v5001_v49 }
 0x411   :  { %v1565_v4 = vpop.xlane.xlu0 %1564  ;;  %v5035_v54 = vmul.f32 %v3784_v10, %v1792_v12 }
 0x412   :  { %v3786_v2 = vpop.eup %3785  ;;  %v1771_v5 = vmax.f32 %v1746_v0, 0.0  ;;  %v1747_v25 = vsub.f32 %v1697_v33, %v1722_v31  ;;  %v5033_v40 = vmul.f32 0.0078125, %v1565_v4 }
 0x413   :  { %v1567_v35 = vpop.xlane.xlu1 %1566  ;;  %v5037_v57 = vmul.f32 %v3786_v2, %v1793_v44 }
 0x414   :  { %v1821_v21 = vadd.f32 1e-05, %v1771_v5  ;;  %v1772_v42 = vmax.f32 %v1747_v25, 0.0  ;;  %v5039_v45 = vmul.f32 0.0078125, %v1567_v35  ;;  %v1723_v51 = vmul.f32 %v5033_v40, %v5033_v40 }
 0x415   :  { %v1665_v38 = vpop.xlane.xlu0 %1664  ;;  %v1887_v55 = vpack.c.bf16 %v5037_v57, %v5035_v54 }
 0x416   :  { %3791 = vrsqrt.f32 %v1821_v21  ;;  %v1822_v15 = vadd.f32 1e-05, %v1772_v42  ;;  %v1698_v62 = vmul.f32 0.0078125, %v1665_v38  ;;  %v1724_v9 = vmul.f32 %v5039_v45, %v5039_v45 }
 0x417   :  { %2086 = vmatmul.mubr.bf16.gmra.mrb[72].mxu1 %v1887_v55  ;;  %v1667_v6 = vpop.xlane.xlu1 %1666  ;;  %v1796_v55 = vsub.f32 %v4781_v63, %v5014_v50 }
 0x418   :  { %v3788_v8 = vpop.eup %3787  ;;  %3793 = vrsqrt.f32 %v1822_v15  ;;  %v1748_v18 = vsub.f32 %v1698_v62, %v1723_v51  ;;  %v1699_v26 = vmul.f32 0.0078125, %v1667_v6  ;;  %2095 = vmatprep.mubr.bf16.mxu1 %v3892_v61  ;;  %v1797_v15 = vsub.f32 %v4786_v13, %v5020_v36 }
 0x419   :  { %v1569_v14 = vpop.xlane.xlu0 %1568  ;;  %v5054_v33 = vmul.f32 %v3788_v8, %v1794_v53 }
 0x41a   :  { %v3790_v48 = vpop.eup %3789  ;;  %v1773_v60 = vmax.f32 %v1748_v18, 0.0  ;;  %v1749_v10 = vsub.f32 %v1699_v26, %v1724_v9  ;;  %v5052_v31 = vmul.f32 0.0078125, %v1569_v14 }
 0x41b   :  { %v1571_v0 = vpop.xlane.xlu1 %1570  ;;  %v5056_v12 = vmul.f32 %v3790_v48, %v1795_v58 }
 0x41c   :  { %v1823_v44 = vadd.f32 1e-05, %v1773_v60  ;;  %v1774_v4 = vmax.f32 %v1749_v10, 0.0  ;;  %v5058_v2 = vmul.f32 0.0078125, %v1571_v0  ;;  %v1725_v41 = vmul.f32 %v5052_v31, %v5052_v31 }
 0x41d   :  { %v1669_v5 = vpop.xlane.xlu0 %1668  ;;  %v1888_v43 = vpack.c.bf16 %v5056_v12, %v5054_v33 }
 0x41e   :  { %3795 = vrsqrt.f32 %v1823_v44  ;;  %v1824_v34 = vadd.f32 1e-05, %v1774_v4  ;;  %v1700_v49 = vmul.f32 0.0078125, %v1669_v5  ;;  %v1726_v21 = vmul.f32 %v5058_v2, %v5058_v2 }
 0x41f   :  { %2096 = vmatmul.mubr.bf16.gmra.mrb[76].mxu1 %v1888_v43  ;;  %v1671_v25 = vpop.xlane.xlu1 %1670  ;;  %v1798_v43 = vsub.f32 %v4797_v7, %v5033_v40 }
 0x420   :  { %v3792_v35 = vpop.eup %3791  ;;  %3797 = vrsqrt.f32 %v1824_v34  ;;  %v1750_v42 = vsub.f32 %v1700_v49, %v1725_v41  ;;  %v1701_v38 = vmul.f32 0.0078125, %v1671_v25  ;;  %2105 = vmatprep.mubr.bf16.mxu1 %v3892_v61  ;;  %v1799_v34 = vsub.f32 %v4802_v3, %v5039_v45 }
 0x421   :  { %v1573_v51 = vpop.xlane.xlu0 %1572  ;;  %v5073_v26 = vmul.f32 %v3792_v35, %v1796_v55 }
 0x422   :  { %v3794_v62 = vpop.eup %3793  ;;  %v1775_v6 = vmax.f32 %v1750_v42, 0.0  ;;  %v1751_v8 = vsub.f32 %v1701_v38, %v1726_v21  ;;  %v5071_v9 = vmul.f32 0.0078125, %v1573_v51 }
 0x423   :  { %v1575_v18 = vpop.xlane.xlu1 %1574  ;;  %v5075_v53 = vmul.f32 %v3794_v62, %v1797_v15 }
 0x424   :  { %v1825_v58 = vadd.f32 1e-05, %v1775_v6  ;;  %v1776_v14 = vmax.f32 %v1751_v8, 0.0  ;;  %v5077_v48 = vmul.f32 0.0078125, %v1575_v18  ;;  %v1727_v50 = vmul.f32 %v5071_v9, %v5071_v9 }
 0x425   :  { %v1673_v60 = vpop.xlane.xlu0 %1672  ;;  %v1889_v63 = vpack.c.bf16 %v5075_v53, %v5073_v26 }
 0x426   :  { %3799 = vrsqrt.f32 %v1825_v58  ;;  %v1826_v13 = vadd.f32 1e-05, %v1776_v14  ;;  %v1702_v36 = vmul.f32 0.0078125, %v1673_v60  ;;  %v1728_v44 = vmul.f32 %v5077_v48, %v5077_v48 }
 0x427   :  { %2106 = vmatmul.mubr.bf16.gmra.mrb[80].mxu1 %v1889_v63  ;;  %v1675_v10 = vpop.xlane.xlu1 %1674  ;;  %v1800_v63 = vsub.f32 %v4813_v17, %v5052_v31 }
 0x428   :  { %v3796_v0 = vpop.eup %3795  ;;  %3801 = vrsqrt.f32 %v1826_v13  ;;  %v1752_v4 = vsub.f32 %v1702_v36, %v1727_v50  ;;  %v1703_v5 = vmul.f32 0.0078125, %v1675_v10  ;;  %2115 = vmatprep.mubr.bf16.mxu1 %v3892_v61  ;;  %v1801_v13 = vsub.f32 %v4818_v23, %v5058_v2 }
 0x429   :  { %v1577_v41 = vpop.xlane.xlu0 %1576  ;;  %v5090_v38 = vmul.f32 %v3796_v0, %v1798_v43 }
 0x42a   :  { %v3798_v49 = vpop.eup %3797  ;;  %v1777_v25 = vmax.f32 %v1752_v4, 0.0  ;;  %v1753_v35 = vsub.f32 %v1703_v5, %v1728_v44  ;;  %v1604_v21 = vmul.f32 0.0078125, %v1577_v41 }
 0x42b   :  { %v1579_v42 = vpop.xlane.xlu1 %1578  ;;  %v5092_v55 = vmul.f32 %v3798_v49, %v1799_v34 }
 0x42c   :  { %v1827_v15 = vadd.f32 1e-05, %v1777_v25  ;;  %v1778_v51 = vmax.f32 %v1753_v35, 0.0  ;;  %v1605_v62 = vmul.f32 0.0078125, %v1579_v42  ;;  %v1729_v3 = vmul.f32 %v1604_v21, %v1604_v21 }
 0x42d   :  { %v1677_v6 = vpop.xlane.xlu0 %1676  ;;  %v1890_v7 = vpack.c.bf16 %v5092_v55, %v5090_v38  ;;  %v1802_v35 = vsub.f32 %v4829_v11, %v5071_v9  ;;  %v1803_v42 = vsub.f32 %v4834_v37, %v5077_v48  ;;  %v1804_v11 = vsub.f32 %v4845_v32, %v1604_v21  ;;  %v3704_v32 = vld [vmem:[%s5664_s3 + $0xb8] sm:$0xff]  }
 0x42e   :  { %3803 = vrsqrt.f32 %v1827_v15  ;;  %v1828_v40 = vadd.f32 1e-05, %v1778_v51  ;;  %v1704_v45 = vmul.f32 0.0078125, %v1677_v6  ;;  %v1730_v58 = vmul.f32 %v1605_v62, %v1605_v62  ;;  %2503 = vmatpush1.bf16.msra.mxu0 %v3704_v32 }
 0x42f   :  { %2116 = vmatmul.mubr.bf16.gmra.mrb[84].mxu1 %v1890_v7  ;;  %v1679_v8 = vpop.xlane.xlu1 %1678  ;;  %v1805_v9 = vsub.f32 %v4850_v24, %v1605_v62  ;;  %3528 = vmatprep.subr.bf16.mxu0 %v3890_v1 }
 0x430   :  { %v3800_v18 = vpop.eup %3799  ;;  %3805 = vrsqrt.f32 %v1828_v40  ;;  %v1754_v14 = vsub.f32 %v1704_v45, %v1729_v3  ;;  %v1705_v60 = vmul.f32 0.0078125, %v1679_v8  ;;  %2125 = vmatprep.mubr.bf16.mxu1 %v3892_v61 }
 0x431   :  { %v1581_v50 = vpop.xlane.xlu0 %1580  ;;  %v5101_v5 = vmul.f32 %v3800_v18, %v1800_v63 }
 0x432   :  { %v3802_v36 = vpop.eup %3801  ;;  %v1779_v10 = vmax.f32 %v1754_v14, 0.0  ;;  %v1755_v0 = vsub.f32 %v1705_v60, %v1730_v58  ;;  %v1606_v44 = vmul.f32 0.0078125, %v1581_v50 }
 0x433   :  { %v1681_v4 = vpop.xlane.xlu1 %1680  ;;  %v5103_v43 = vmul.f32 %v3802_v36, %v1801_v13 }
 0x434   :  { %v1829_v34 = vadd.f32 1e-05, %v1779_v10  ;;  %v1780_v41 = vmax.f32 %v1755_v0, 0.0  ;;  %v1731_v49 = vmul.f32 %v1606_v44, %v1606_v44  ;;  %v1706_v25 = vmul.f32 0.0078125, %v1681_v4 }
 0x435   :  { %v1891_v17 = vpack.c.bf16 %v5103_v43, %v5101_v5  ;;  %v1806_v14 = vsub.f32 %v4861_v52, %v1606_v44 }
 0x436   :  { %3807 = vrsqrt.f32 %v1829_v34  ;;  %v1830_v31 = vadd.f32 1e-05, %v1780_v41  ;;  %v1756_v23 = vsub.f32 %v1706_v25, %v1731_v49 }
 0x437   :  { %2126 = vmatmul.mubr.bf16.gmra.mrb[88].mxu1 %v1891_v17 }
 0x438   :  { %v3804_v2 = vpop.eup %3803  ;;  %3809 = vrsqrt.f32 %v1830_v31  ;;  %2135 = vmatprep.mubr.bf16.mxu1 %v3892_v61  ;;  %v1781_v15 = vmax.f32 %v1756_v23, 0.0 }
 0x439   :  { %v5112_v7 = vmul.f32 %v3804_v2, %v1802_v35 }
 0x43a   :  { %v3806_v51 = vpop.eup %3805  ;;  %v1831_v6 = vadd.f32 1e-05, %v1781_v15 }
 0x43b   :  { %v5114_v40 = vmul.f32 %v3806_v51, %v1803_v42 }
 0x43c   :  { %3811 = vrsqrt.f32 %v1831_v6 }
 0x43d   :  { %v1892_v3 = vpack.c.bf16 %v5114_v40, %v5112_v7 }
 0x43f   :  { %2136 = vmatmul.mubr.bf16.gmra.mrb[92].mxu1 %v1892_v3 }
 0x440   :  { %v3808_v45 = vpop.eup %3807  ;;  %2145 = vmatprep.mubr.bf16.mxu1 %v3892_v61 }
 0x441   :  { %v5121_v48 = vmul.f32 %v3808_v45, %v1804_v11 }
 0x442   :  { %v3810_v37 = vpop.eup %3809 }
 0x443   :  { %v5123_v8 = vmul.f32 %v3810_v37, %v1805_v9 }
 0x445   :  { %v1893_v18 = vpack.c.bf16 %v5123_v8, %v5121_v48 }
 0x446   :  { %v3812_v58 = vpop.eup %3811 }
 0x447   :  { %2146 = vmatmul.mubr.bf16.gmra.mrb[96].mxu1 %v1893_v18  ;;  %v5129_v60 = vmul.f32 %v3812_v58, %v1806_v14 }
 0x448   :  { %2155 = vmatprep.mubr.bf16.mxu1 %v3892_v61  ;;  %v30_v61 = vld [vmem:[%s5667_s6 + $0x2] sm:$0x3] }
 0x449   :  { %v1894_v24 = vpack.c.bf16 %v5129_v60, %v5129_v60  ;;  %v5143_v52 = vrot.slane %v30_v61, %v4031_v20  ;;  %v5146_v21 = vrot.slane %v30_v61, %v4037_v22 }
 0x44f   :  { %2156 = vmatmul.mubr.bf16.gmra.mrb[100].mxu1 %v1894_v24 }
 0x450   :  { %3548 = vmatprep.mubr.msk.bf16.mxu1 %vm3891_vm0, %v3890_v1 }
 0x4c2   :  { %v2037_v62 = vpop.f32.mrb[52].mxu1 }
 0x4c3   :  { %v2038_v63 = vadd.f32 %v2037_v62, %v5143_v52  ;;  %v2039_v13 = vpop.f32.mrb[53].mxu1 }
 0x4c4   :  { %v2040_v50 = vadd.f32 %v2039_v13, %v5146_v21  ;;  %v2041_v36 = vpop.f32.mrb[54].mxu1 }
 0x4c5   :  { %v2214_v10 = vmul.f32 0.1, %v2038_v63  ;;  %v2042_v0 = vadd.f32 %v2041_v36, %v5143_v52  ;;  %v2043_v44 = vpop.f32.mrb[55].mxu1  ;;  %vm2164_vm6 = vcmp.ge.f32.partialorder %v2038_v63, 0.0 }
 0x4c6   :  { %v2215_v4 = vmul.f32 0.1, %v2040_v50  ;;  %v2044_v34 = vadd.f32 %v2043_v44, %v5146_v21  ;;  %vm2165_vm7 = vcmp.ge.f32.partialorder %v2040_v50, 0.0 }
 0x4c7   :  { %vm2166_vm8 = vcmp.ge.f32.partialorder %v2042_v0, 0.0  ;;  %v2216_v20 = vmul.f32 0.1, %v2042_v0  ;;  %v2264_v41 = vsel %vm2164_vm6, %v2038_v63, %v2214_v10 }
 0x4c8   :  { %vm2167_vm9 = vcmp.ge.f32.partialorder %v2044_v34, 0.0  ;;  %v2217_v22 = vmul.f32 0.1, %v2044_v34  ;;  %v2265_v25 = vsel %vm2165_vm7, %v2040_v50, %v2215_v4 }
 0x4c9   :  { %v2266_v49 = vsel %vm2166_vm8, %v2042_v0, %v2216_v20 }
 0x4ca   :  { %v2314_v17 = vpack.c.bf16 %v2266_v49, %v2264_v41  ;;  %v2267_v31 = vsel %vm2167_vm9, %v2044_v34, %v2217_v22  ;;  %v2047_v23 = vpop.f32.mrb[56].mxu1 }
 0x4cb   :  { %v2315_v2 = vpack.c.bf16 %v2267_v31, %v2265_v25  ;;  %v2048_v35 = vadd.f32 %v2047_v23, %v5143_v52  ;;  %v2049_v42 = vpop.f32.mrb[57].mxu1 }
 0x4cc   :  { %v2050_v15 = vadd.f32 %v2049_v42, %v5146_v21  ;;  %v2051_v51 = vpop.f32.mrb[58].mxu1 }
 0x4cd   :  { %v2218_v6 = vmul.f32 0.1, %v2048_v35  ;;  %v2052_v3 = vadd.f32 %v2051_v51, %v5143_v52  ;;  %v2053_v45 = vpop.f32.mrb[59].mxu1  ;;  %3415 = vmatprep.mubr.msk.bf16.mxu0 %vm1302_vm1, %v2315_v2  ;;  %vm2168_vm10 = vcmp.ge.f32.partialorder %v2048_v35, 0.0 }
 0x4ce   :  { %v2219_v11 = vmul.f32 0.1, %v2050_v15  ;;  %v2054_v9 = vadd.f32 %v2053_v45, %v5146_v21  ;;  %2513 = vmatmul.mubr.bf16.vlgmr.msra.gmra.mrb[104].mxu0 %v2314_v17  ;;  %vm2169_vm11 = vcmp.ge.f32.partialorder %v2050_v15, 0.0 }
 0x4cf   :  { %vm2170_vm12 = vcmp.ge.f32.partialorder %v2052_v3, 0.0  ;;  %v2220_v37 = vmul.f32 0.1, %v2052_v3  ;;  %v2268_v58 = vsel %vm2168_vm10, %v2048_v35, %v2218_v6 }
 0x4d0   :  { %vm2171_vm13 = vcmp.ge.f32.partialorder %v2054_v9, 0.0  ;;  %v2221_v18 = vmul.f32 0.1, %v2054_v9  ;;  %v2269_v32 = vsel %vm2169_vm11, %v2050_v15, %v2219_v11 }
 0x4d1   :  { %v2270_v14 = vsel %vm2170_vm12, %v2052_v3, %v2220_v37 }
 0x4d2   :  { %v2271_v24 = vsel %vm2171_vm13, %v2054_v9, %v2221_v18  ;;  %v2057_v61 = vpop.f32.mrb[60].mxu1  ;;  %v2316_v62 = vpack.c.bf16 %v2270_v14, %v2268_v58 }
 0x4d3   :  { %v2317_v63 = vpack.c.bf16 %v2271_v24, %v2269_v32  ;;  %v2058_v13 = vadd.f32 %v2057_v61, %v5143_v52  ;;  %v2059_v50 = vpop.f32.mrb[61].mxu1 }
 0x4d4   :  { %v2060_v36 = vadd.f32 %v2059_v50, %v5146_v21  ;;  %v2061_v10 = vpop.f32.mrb[62].mxu1 }
 0x4d5   :  { %v2222_v0 = vmul.f32 0.1, %v2058_v13  ;;  %v2062_v44 = vadd.f32 %v2061_v10, %v5143_v52  ;;  %v2063_v4 = vpop.f32.mrb[63].mxu1  ;;  %3416 = vmatprep.mubr.msk.bf16.mxu0 %vm1302_vm1, %v2317_v63  ;;  %vm2172_vm14 = vcmp.ge.f32.partialorder %v2058_v13, 0.0 }
 0x4d6   :  { %v2223_v34 = vmul.f32 0.1, %v2060_v36  ;;  %v2064_v20 = vadd.f32 %v2063_v4, %v5146_v21  ;;  %2521 = vmatmul.mubr.bf16.gmra.mrb[108].mxu0 %v2316_v62  ;;  %vm2173_vm15 = vcmp.ge.f32.partialorder %v2060_v36, 0.0 }
 0x4d7   :  { %vm2174_vm2 = vcmp.ge.f32.partialorder %v2062_v44, 0.0  ;;  %v2224_v22 = vmul.f32 0.1, %v2062_v44  ;;  %v2272_v49 = vsel %vm2172_vm14, %v2058_v13, %v2222_v0 }
 0x4d8   :  { %vm2175_vm3 = vcmp.ge.f32.partialorder %v2064_v20, 0.0  ;;  %v2225_v41 = vmul.f32 0.1, %v2064_v20  ;;  %v2273_v17 = vsel %vm2173_vm15, %v2060_v36, %v2223_v34 }
 0x4d9   :  { %v2274_v25 = vsel %vm2174_vm2, %v2062_v44, %v2224_v22 }
 0x4da   :  { %v2275_v31 = vsel %vm2175_vm3, %v2064_v20, %v2225_v41  ;;  %v2067_v23 = vpop.f32.mrb[64].mxu1  ;;  %v2318_v2 = vpack.c.bf16 %v2274_v25, %v2272_v49 }
 0x4db   :  { %v2319_v35 = vpack.c.bf16 %v2275_v31, %v2273_v17  ;;  %v2068_v42 = vadd.f32 %v2067_v23, %v5143_v52  ;;  %v2069_v15 = vpop.f32.mrb[65].mxu1 }
 0x4dc   :  { %v2070_v51 = vadd.f32 %v2069_v15, %v5146_v21  ;;  %v2071_v6 = vpop.f32.mrb[66].mxu1 }
 0x4dd   :  { %v2226_v3 = vmul.f32 0.1, %v2068_v42  ;;  %v2072_v45 = vadd.f32 %v2071_v6, %v5143_v52  ;;  %v2073_v11 = vpop.f32.mrb[67].mxu1  ;;  %3417 = vmatprep.mubr.msk.bf16.mxu0 %vm1302_vm1, %v2319_v35  ;;  %vm2176_vm4 = vcmp.ge.f32.partialorder %v2068_v42, 0.0 }
 0x4de   :  { %v2227_v9 = vmul.f32 0.1, %v2070_v51  ;;  %v2074_v37 = vadd.f32 %v2073_v11, %v5146_v21  ;;  %2529 = vmatmul.mubr.bf16.gmra.mrb[112].mxu0 %v2318_v2  ;;  %vm2177_vm5 = vcmp.ge.f32.partialorder %v2070_v51, 0.0 }
 0x4df   :  { %vm2178_vm6 = vcmp.ge.f32.partialorder %v2072_v45, 0.0  ;;  %v2228_v18 = vmul.f32 0.1, %v2072_v45  ;;  %v2276_v14 = vsel %vm2176_vm4, %v2068_v42, %v2226_v3 }
 0x4e0   :  { %vm2179_vm7 = vcmp.ge.f32.partialorder %v2074_v37, 0.0  ;;  %v2229_v58 = vmul.f32 0.1, %v2074_v37  ;;  %v2277_v24 = vsel %vm2177_vm5, %v2070_v51, %v2227_v9 }
 0x4e1   :  { %v2278_v32 = vsel %vm2178_vm6, %v2072_v45, %v2228_v18 }
 0x4e2   :  { %v2279_v61 = vsel %vm2179_vm7, %v2074_v37, %v2229_v58  ;;  %v2077_v62 = vpop.f32.mrb[68].mxu1  ;;  %v2320_v63 = vpack.c.bf16 %v2278_v32, %v2276_v14 }
 0x4e3   :  { %v2321_v13 = vpack.c.bf16 %v2279_v61, %v2277_v24  ;;  %v2078_v50 = vadd.f32 %v2077_v62, %v5143_v52  ;;  %v2079_v36 = vpop.f32.mrb[69].mxu1 }
 0x4e4   :  { %v2080_v10 = vadd.f32 %v2079_v36, %v5146_v21  ;;  %v2081_v0 = vpop.f32.mrb[70].mxu1 }
 0x4e5   :  { %v2230_v44 = vmul.f32 0.1, %v2078_v50  ;;  %v2082_v4 = vadd.f32 %v2081_v0, %v5143_v52  ;;  %v2083_v34 = vpop.f32.mrb[71].mxu1  ;;  %3418 = vmatprep.mubr.msk.bf16.mxu0 %vm1302_vm1, %v2321_v13  ;;  %vm2180_vm8 = vcmp.ge.f32.partialorder %v2078_v50, 0.0 }
 0x4e6   :  { %v2231_v20 = vmul.f32 0.1, %v2080_v10  ;;  %v2084_v22 = vadd.f32 %v2083_v34, %v5146_v21  ;;  %2537 = vmatmul.mubr.bf16.gmra.mrb[116].mxu0 %v2320_v63  ;;  %vm2181_vm9 = vcmp.ge.f32.partialorder %v2080_v10, 0.0 }
 0x4e7   :  { %vm2182_vm10 = vcmp.ge.f32.partialorder %v2082_v4, 0.0  ;;  %v2232_v41 = vmul.f32 0.1, %v2082_v4  ;;  %v2280_v25 = vsel %vm2180_vm8, %v2078_v50, %v2230_v44 }
 0x4e8   :  { %vm2183_vm11 = vcmp.ge.f32.partialorder %v2084_v22, 0.0  ;;  %v2233_v49 = vmul.f32 0.1, %v2084_v22  ;;  %v2281_v31 = vsel %vm2181_vm9, %v2080_v10, %v2231_v20 }
 0x4e9   :  { %v2282_v17 = vsel %vm2182_vm10, %v2082_v4, %v2232_v41 }
 0x4ea   :  { %v2283_v23 = vsel %vm2183_vm11, %v2084_v22, %v2233_v49  ;;  %v2087_v2 = vpop.f32.mrb[72].mxu1  ;;  %v2322_v35 = vpack.c.bf16 %v2282_v17, %v2280_v25 }
 0x4eb   :  { %v2323_v42 = vpack.c.bf16 %v2283_v23, %v2281_v31  ;;  %v2088_v15 = vadd.f32 %v2087_v2, %v5143_v52  ;;  %v2089_v51 = vpop.f32.mrb[73].mxu1 }
 0x4ec   :  { %v2090_v6 = vadd.f32 %v2089_v51, %v5146_v21  ;;  %v2091_v3 = vpop.f32.mrb[74].mxu1 }
 0x4ed   :  { %v2234_v45 = vmul.f32 0.1, %v2088_v15  ;;  %v2092_v11 = vadd.f32 %v2091_v3, %v5143_v52  ;;  %v2093_v9 = vpop.f32.mrb[75].mxu1  ;;  %3419 = vmatprep.mubr.msk.bf16.mxu0 %vm1302_vm1, %v2323_v42  ;;  %vm2184_vm12 = vcmp.ge.f32.partialorder %v2088_v15, 0.0 }
 0x4ee   :  { %v2235_v37 = vmul.f32 0.1, %v2090_v6  ;;  %v2094_v18 = vadd.f32 %v2093_v9, %v5146_v21  ;;  %2545 = vmatmul.mubr.bf16.gmra.mrb[120].mxu0 %v2322_v35  ;;  %vm2185_vm13 = vcmp.ge.f32.partialorder %v2090_v6, 0.0 }
 0x4ef   :  { %vm2186_vm14 = vcmp.ge.f32.partialorder %v2092_v11, 0.0  ;;  %v2236_v58 = vmul.f32 0.1, %v2092_v11  ;;  %v2284_v32 = vsel %vm2184_vm12, %v2088_v15, %v2234_v45 }
 0x4f0   :  { %vm2187_vm15 = vcmp.ge.f32.partialorder %v2094_v18, 0.0  ;;  %v2237_v14 = vmul.f32 0.1, %v2094_v18  ;;  %v2285_v61 = vsel %vm2185_vm13, %v2090_v6, %v2235_v37 }
 0x4f1   :  { %v2286_v24 = vsel %vm2186_vm14, %v2092_v11, %v2236_v58 }
 0x4f2   :  { %v2287_v62 = vsel %vm2187_vm15, %v2094_v18, %v2237_v14  ;;  %v2097_v63 = vpop.f32.mrb[76].mxu1  ;;  %v2324_v13 = vpack.c.bf16 %v2286_v24, %v2284_v32 }
 0x4f3   :  { %v2325_v50 = vpack.c.bf16 %v2287_v62, %v2285_v61  ;;  %v2098_v36 = vadd.f32 %v2097_v63, %v5143_v52  ;;  %v2099_v10 = vpop.f32.mrb[77].mxu1 }
 0x4f4   :  { %v2100_v0 = vadd.f32 %v2099_v10, %v5146_v21  ;;  %v2101_v44 = vpop.f32.mrb[78].mxu1 }
 0x4f5   :  { %v2238_v4 = vmul.f32 0.1, %v2098_v36  ;;  %v2102_v34 = vadd.f32 %v2101_v44, %v5143_v52  ;;  %v2103_v20 = vpop.f32.mrb[79].mxu1  ;;  %3420 = vmatprep.mubr.msk.bf16.mxu0 %vm1302_vm1, %v2325_v50  ;;  %vm2188_vm2 = vcmp.ge.f32.partialorder %v2098_v36, 0.0 }
 0x4f6   :  { %v2239_v22 = vmul.f32 0.1, %v2100_v0  ;;  %v2104_v41 = vadd.f32 %v2103_v20, %v5146_v21  ;;  %2553 = vmatmul.mubr.bf16.gmra.mrb[124].mxu0 %v2324_v13  ;;  %vm2189_vm3 = vcmp.ge.f32.partialorder %v2100_v0, 0.0 }
 0x4f7   :  { %vm2190_vm4 = vcmp.ge.f32.partialorder %v2102_v34, 0.0  ;;  %v2240_v49 = vmul.f32 0.1, %v2102_v34  ;;  %v2288_v17 = vsel %vm2188_vm2, %v2098_v36, %v2238_v4 }
 0x4f8   :  { %vm2191_vm5 = vcmp.ge.f32.partialorder %v2104_v41, 0.0  ;;  %v2241_v25 = vmul.f32 0.1, %v2104_v41  ;;  %v2289_v23 = vsel %vm2189_vm3, %v2100_v0, %v2239_v22 }
 0x4f9   :  { %v2290_v31 = vsel %vm2190_vm4, %v2102_v34, %v2240_v49 }
 0x4fa   :  { %v2291_v2 = vsel %vm2191_vm5, %v2104_v41, %v2241_v25  ;;  %v2107_v35 = vpop.f32.mrb[80].mxu1  ;;  %v2326_v42 = vpack.c.bf16 %v2290_v31, %v2288_v17 }
 0x4fb   :  { %v2327_v15 = vpack.c.bf16 %v2291_v2, %v2289_v23  ;;  %v2108_v51 = vadd.f32 %v2107_v35, %v5143_v52  ;;  %v2109_v6 = vpop.f32.mrb[81].mxu1 }
 0x4fc   :  { %v2110_v3 = vadd.f32 %v2109_v6, %v5146_v21  ;;  %v2111_v45 = vpop.f32.mrb[82].mxu1 }
 0x4fd   :  { %v2242_v11 = vmul.f32 0.1, %v2108_v51  ;;  %v2112_v9 = vadd.f32 %v2111_v45, %v5143_v52  ;;  %v2113_v37 = vpop.f32.mrb[83].mxu1  ;;  %3421 = vmatprep.mubr.msk.bf16.mxu0 %vm1302_vm1, %v2327_v15  ;;  %vm2192_vm6 = vcmp.ge.f32.partialorder %v2108_v51, 0.0 }
 0x4fe   :  { %v2243_v18 = vmul.f32 0.1, %v2110_v3  ;;  %v2114_v58 = vadd.f32 %v2113_v37, %v5146_v21  ;;  %2561 = vmatmul.mubr.bf16.gmra.mrb[128].mxu0 %v2326_v42  ;;  %vm2193_vm7 = vcmp.ge.f32.partialorder %v2110_v3, 0.0 }
 0x4ff   :  { %vm2194_vm8 = vcmp.ge.f32.partialorder %v2112_v9, 0.0  ;;  %v2244_v14 = vmul.f32 0.1, %v2112_v9  ;;  %v2292_v24 = vsel %vm2192_vm6, %v2108_v51, %v2242_v11 }
 0x500   :  { %vm2195_vm9 = vcmp.ge.f32.partialorder %v2114_v58, 0.0  ;;  %v2245_v32 = vmul.f32 0.1, %v2114_v58  ;;  %v2293_v62 = vsel %vm2193_vm7, %v2110_v3, %v2243_v18 }
 0x501   :  { %v2294_v61 = vsel %vm2194_vm8, %v2112_v9, %v2244_v14 }
 0x502   :  { %v2295_v63 = vsel %vm2195_vm9, %v2114_v58, %v2245_v32  ;;  %v2117_v13 = vpop.f32.mrb[84].mxu1  ;;  %v2328_v50 = vpack.c.bf16 %v2294_v61, %v2292_v24 }
 0x503   :  { %v2329_v36 = vpack.c.bf16 %v2295_v63, %v2293_v62  ;;  %v2118_v10 = vadd.f32 %v2117_v13, %v5143_v52  ;;  %v2119_v0 = vpop.f32.mrb[85].mxu1 }
 0x504   :  { %v2120_v44 = vadd.f32 %v2119_v0, %v5146_v21  ;;  %v2121_v4 = vpop.f32.mrb[86].mxu1 }
 0x505   :  { %v2246_v34 = vmul.f32 0.1, %v2118_v10  ;;  %v2122_v20 = vadd.f32 %v2121_v4, %v5143_v52  ;;  %v2123_v22 = vpop.f32.mrb[87].mxu1  ;;  %3422 = vmatprep.mubr.msk.bf16.mxu0 %vm1302_vm1, %v2329_v36  ;;  %vm2196_vm10 = vcmp.ge.f32.partialorder %v2118_v10, 0.0 }
 0x506   :  { %v2247_v41 = vmul.f32 0.1, %v2120_v44  ;;  %v2124_v49 = vadd.f32 %v2123_v22, %v5146_v21  ;;  %2569 = vmatmul.mubr.bf16.gmra.mrb[132].mxu0 %v2328_v50  ;;  %vm2197_vm11 = vcmp.ge.f32.partialorder %v2120_v44, 0.0 }
 0x507   :  { %vm2198_vm12 = vcmp.ge.f32.partialorder %v2122_v20, 0.0  ;;  %v2248_v25 = vmul.f32 0.1, %v2122_v20  ;;  %v2296_v31 = vsel %vm2196_vm10, %v2118_v10, %v2246_v34 }
 0x508   :  { %vm2199_vm13 = vcmp.ge.f32.partialorder %v2124_v49, 0.0  ;;  %v2249_v17 = vmul.f32 0.1, %v2124_v49  ;;  %v2297_v2 = vsel %vm2197_vm11, %v2120_v44, %v2247_v41 }
 0x509   :  { %v2298_v23 = vsel %vm2198_vm12, %v2122_v20, %v2248_v25 }
 0x50a   :  { %v2299_v35 = vsel %vm2199_vm13, %v2124_v49, %v2249_v17  ;;  %v2127_v42 = vpop.f32.mrb[88].mxu1  ;;  %v2330_v15 = vpack.c.bf16 %v2298_v23, %v2296_v31 }
 0x50b   :  { %v2331_v51 = vpack.c.bf16 %v2299_v35, %v2297_v2  ;;  %v2128_v6 = vadd.f32 %v2127_v42, %v5143_v52  ;;  %v2129_v3 = vpop.f32.mrb[89].mxu1 }
 0x50c   :  { %v2130_v45 = vadd.f32 %v2129_v3, %v5146_v21  ;;  %v2131_v11 = vpop.f32.mrb[90].mxu1 }
 0x50d   :  { %v2250_v9 = vmul.f32 0.1, %v2128_v6  ;;  %v2132_v37 = vadd.f32 %v2131_v11, %v5143_v52  ;;  %v2133_v18 = vpop.f32.mrb[91].mxu1  ;;  %3423 = vmatprep.mubr.msk.bf16.mxu0 %vm1302_vm1, %v2331_v51  ;;  %vm2200_vm14 = vcmp.ge.f32.partialorder %v2128_v6, 0.0 }
 0x50e   :  { %v2251_v58 = vmul.f32 0.1, %v2130_v45  ;;  %v2134_v14 = vadd.f32 %v2133_v18, %v5146_v21  ;;  %2577 = vmatmul.mubr.bf16.gmra.mrb[136].mxu0 %v2330_v15  ;;  %vm2201_vm15 = vcmp.ge.f32.partialorder %v2130_v45, 0.0 }
 0x50f   :  { %vm2202_vm2 = vcmp.ge.f32.partialorder %v2132_v37, 0.0  ;;  %v2252_v32 = vmul.f32 0.1, %v2132_v37  ;;  %v2300_v61 = vsel %vm2200_vm14, %v2128_v6, %v2250_v9 }
 0x510   :  { %vm2203_vm3 = vcmp.ge.f32.partialorder %v2134_v14, 0.0  ;;  %v2253_v24 = vmul.f32 0.1, %v2134_v14  ;;  %v2301_v63 = vsel %vm2201_vm15, %v2130_v45, %v2251_v58 }
 0x511   :  { %v2302_v62 = vsel %vm2202_vm2, %v2132_v37, %v2252_v32 }
 0x512   :  { %v2303_v13 = vsel %vm2203_vm3, %v2134_v14, %v2253_v24  ;;  %v2137_v50 = vpop.f32.mrb[92].mxu1  ;;  %v2332_v36 = vpack.c.bf16 %v2302_v62, %v2300_v61 }
 0x513   :  { %v2333_v10 = vpack.c.bf16 %v2303_v13, %v2301_v63  ;;  %v2138_v0 = vadd.f32 %v2137_v50, %v5143_v52  ;;  %v2139_v44 = vpop.f32.mrb[93].mxu1 }
 0x514   :  { %v2140_v4 = vadd.f32 %v2139_v44, %v5146_v21  ;;  %v2141_v34 = vpop.f32.mrb[94].mxu1 }
 0x515   :  { %v2254_v20 = vmul.f32 0.1, %v2138_v0  ;;  %v2142_v22 = vadd.f32 %v2141_v34, %v5143_v52  ;;  %v2143_v41 = vpop.f32.mrb[95].mxu1  ;;  %3424 = vmatprep.mubr.msk.bf16.mxu0 %vm1302_vm1, %v2333_v10  ;;  %vm2204_vm4 = vcmp.ge.f32.partialorder %v2138_v0, 0.0 }
 0x516   :  { %v2255_v49 = vmul.f32 0.1, %v2140_v4  ;;  %v2144_v25 = vadd.f32 %v2143_v41, %v5146_v21  ;;  %2585 = vmatmul.mubr.bf16.gmra.mrb[140].mxu0 %v2332_v36  ;;  %vm2205_vm5 = vcmp.ge.f32.partialorder %v2140_v4, 0.0 }
 0x517   :  { %vm2206_vm6 = vcmp.ge.f32.partialorder %v2142_v22, 0.0  ;;  %v2256_v17 = vmul.f32 0.1, %v2142_v22  ;;  %v2304_v23 = vsel %vm2204_vm4, %v2138_v0, %v2254_v20 }
 0x518   :  { %vm2207_vm7 = vcmp.ge.f32.partialorder %v2144_v25, 0.0  ;;  %v2257_v31 = vmul.f32 0.1, %v2144_v25  ;;  %v2305_v35 = vsel %vm2205_vm5, %v2140_v4, %v2255_v49 }
 0x519   :  { %v2306_v2 = vsel %vm2206_vm6, %v2142_v22, %v2256_v17 }
 0x51a   :  { %v2307_v42 = vsel %vm2207_vm7, %v2144_v25, %v2257_v31  ;;  %v2147_v15 = vpop.f32.mrb[96].mxu1  ;;  %v2334_v51 = vpack.c.bf16 %v2306_v2, %v2304_v23  ;;  %v3707_v2 = vld [vmem:[%s5665_s4 + $0x10] sm:$0xff]  }
 0x51b   :  { %v2335_v6 = vpack.c.bf16 %v2307_v42, %v2305_v35  ;;  %v2148_v3 = vadd.f32 %v2147_v15, %v5143_v52  ;;  %v2149_v45 = vpop.f32.mrb[97].mxu1  ;;  %v3708_v35 = vld [vmem:[%s5665_s4 + $0x18] sm:$0xff]   ;;  %v3709_v42 = vld [vmem:[%s5665_s4 + $0x20] sm:$0xff]   ;;  %v3710_v15 = vld [vmem:[%s5665_s4 + $0x28] sm:$0xff]  }
 0x51c   :  { %v2150_v11 = vadd.f32 %v2149_v45, %v5146_v21  ;;  %v2151_v9 = vpop.f32.mrb[98].mxu1 }
 0x51d   :  { %v2258_v37 = vmul.f32 0.1, %v2148_v3  ;;  %v2152_v18 = vadd.f32 %v2151_v9, %v5143_v52  ;;  %v2153_v58 = vpop.f32.mrb[99].mxu1  ;;  %3425 = vmatprep.mubr.msk.bf16.mxu0 %vm1302_vm1, %v2335_v6  ;;  %vm2208_vm8 = vcmp.ge.f32.partialorder %v2148_v3, 0.0  ;;  %v2618_v6 = vsub.s32 5, %v4028_v19 }
 0x51e   :  { %v2259_v14 = vmul.f32 0.1, %v2150_v11  ;;  %v2154_v32 = vadd.f32 %v2153_v58, %v5146_v21  ;;  %2593 = vmatmul.mubr.bf16.gmra.mrb[144].mxu0 %v2334_v51  ;;  %vm2209_vm9 = vcmp.ge.f32.partialorder %v2150_v11, 0.0  ;;  %v2367_v51 = vsub.s32 3, %v4028_v19 }
 0x51f   :  { %vm2210_vm10 = vcmp.ge.f32.partialorder %v2152_v18, 0.0  ;;  %v2260_v24 = vmul.f32 0.1, %v2152_v18  ;;  %v2308_v62 = vsel %vm2208_vm8, %v2148_v3, %v2258_v37  ;;  %v3864_v3 = vld [vmem:[%s5666_s5] sm:$0xff] }
 0x520   :  { %vm2211_vm11 = vcmp.ge.f32.partialorder %v2154_v32, 0.0  ;;  %v2261_v61 = vmul.f32 0.1, %v2154_v32  ;;  %v2309_v13 = vsel %vm2209_vm9, %v2150_v11, %v2259_v14  ;;  %v5248_v45 = vrot.slane %v3864_v3, %v2367_v51 }
 0x521   :  { %v2310_v63 = vsel %vm2210_vm10, %v2152_v18, %v2260_v24  ;;  %v5250_v11 = vrot.slane %v3864_v3, %v2618_v6 }
 0x522   :  { %v2311_v50 = vsel %vm2211_vm11, %v2154_v32, %v2261_v61  ;;  %v2157_v36 = vpop.f32.mrb[100].mxu1  ;;  %v2336_v10 = vpack.c.bf16 %v2310_v63, %v2308_v62 }
 0x523   :  { %v2337_v0 = vpack.c.bf16 %v2311_v50, %v2309_v13  ;;  %v2158_v44 = vadd.f32 %v2157_v36, %v5143_v52  ;;  %v2159_v4 = vpop.f32.mrb[101].mxu1  ;;  %v3705_v52 = vld [vmem:[%s5665_s4] sm:$0xff]   ;;  %v2620_v18 = vmul.f32 %v5250_v11, %v4927_v30  ;;  %v2621_v61 = vmul.f32 %v5250_v11, %v4929_v39 }
 0x524   :  { %v2160_v34 = vadd.f32 %v2159_v4, %v5146_v21  ;;  %v2161_v20 = vpop.f32.mrb[102].mxu1  ;;  %3604 = vmatpush3.bf16.msra.mxu1 %v3705_v52  ;;  %3529 = vmatpush3.bf16.msra.mxu0 %v3705_v52  ;;  %v3706_v21 = vld [vmem:[%s5665_s4 + $0x8] sm:$0xff]   ;;  %v2622_v30 = vmul.f32 %v5250_v11, %v4954_v56  ;;  %v2623_v39 = vmul.f32 %v5250_v11, %v4956_v46 }
 0x525   :  { %v2262_v22 = vmul.f32 0.1, %v2158_v44  ;;  %v2162_v41 = vpop.f32.mrb[103].mxu1  ;;  %3426 = vmatprep.mubr.msk.bf16.mxu0 %vm1302_vm1, %v2337_v0  ;;  %vm2212_vm12 = vcmp.ge.f32.partialorder %v2158_v44, 0.0  ;;  %3597 = vmatprep.subr.bf16.mxu1 %v3890_v1 }
 0x526   :  { %vm2213_vm13 = vcmp.ge.f32.partialorder %v2160_v34, 0.0  ;;  %v2263_v49 = vmul.f32 0.1, %v2160_v34  ;;  %2601 = vmatmul.mubr.bf16.gmra.mrb[148].mxu0 %v2336_v10  ;;  %3530 = vmatprep.subr.bf16.mxu0 %v3890_v1  ;;  %v2624_v41 = vmul.f32 %v5250_v11, %v4978_v59 }
 0x527   :  { %v2312_v31 = vsel %vm2212_vm12, %v2158_v44, %v2262_v22 }
 0x528   :  { %v2313_v25 = vsel %vm2213_vm13, %v2160_v34, %v2263_v49  ;;  %v2338_v23 = vpack.c.bf16 %v2312_v31, %v2312_v31  ;;  %3605 = vmatpush3.bf16.msra.mxu1 %v3706_v21  ;;  %3531 = vmatpush3.bf16.msra.mxu0 %v3706_v21 }
 0x529   :  { %v2339_v17 = vpack.c.bf16 %v2313_v25, %v2313_v25  ;;  %3598 = vmatprep.subr.bf16.mxu1 %v3890_v1  ;;  %3532 = vmatprep.subr.bf16.mxu0 %v3890_v1 }
 0x52b   :  { %3427 = vmatprep.mubr.msk.bf16.mxu0 %vm1302_vm1, %v2339_v17 }
 0x52c   :  { %3606 = vmatpush3.bf16.msra.mxu1 %v3707_v2  ;;  %3533 = vmatpush3.bf16.msra.mxu0 %v3707_v2 }
 0x52d   :  { %3599 = vmatprep.subr.bf16.mxu1 %v3890_v1  ;;  %3534 = vmatprep.subr.bf16.mxu0 %v3890_v1 }
 0x52e   :  { %2609 = vmatmul.mubr.bf16.gmra.mrb[152].mxu0 %v2338_v23  ;;  %v2625_v23 = vmul.f32 %v5250_v11, %v4980_v29 }
 0x52f   :  { %3544 = vmatprep.mubr.msk.bf16.mxu0 %vm3891_vm0, %v3890_v1 }
 0x530   :  { %3607 = vmatpush3.bf16.msra.mxu1 %v3708_v35  ;;  %3535 = vmatpush3.bf16.msra.mxu0 %v3708_v35 }
 0x531   :  { %3600 = vmatprep.subr.bf16.mxu1 %v3890_v1  ;;  %3536 = vmatprep.subr.bf16.mxu0 %v3890_v1 }
 0x534   :  { %3608 = vmatpush3.bf16.msra.mxu1 %v3709_v42  ;;  %3537 = vmatpush3.bf16.msra.mxu0 %v3709_v42  ;;  %v2626_v42 = vmul.f32 %v5250_v11, %v4997_v47 }
 0x535   :  { %3601 = vmatprep.subr.bf16.mxu1 %v3890_v1  ;;  %3538 = vmatprep.subr.bf16.mxu0 %v3890_v1 }
 0x538   :  { %3609 = vmatpush3.bf16.msra.mxu1 %v3710_v15  ;;  %3539 = vmatpush3.bf16.msra.mxu0 %v3710_v15 }
 0x539   :  { %3602 = vmatprep.subr.bf16.mxu1 %v3890_v1  ;;  %3540 = vmatprep.subr.bf16.mxu0 %v3890_v1 }
 0x5a1   :  { %v2514_v9 = vpop.f32.mrb[104].mxu0 }
 0x5a2   :  { %v2515_v37 = vadd.f32 %v2514_v9, %v5248_v45  ;;  %v2516_v58 = vpop.f32.mrb[105].mxu0  ;;  %v2627_v9 = vmul.f32 %v5250_v11, %v4999_v16  ;;  %v2628_v16 = vmul.f32 %v5250_v11, %v5016_v28 }
 0x5a3   :  { %v2517_v14 = vpop.f32.mrb[106].mxu0  ;;  %v3711_v58 = vld [vmem:[%s5665_s4 + $0x30] sm:$0xff]  }
 0x5a4   :  { %v5255_v32 = vadd.f32 %v2620_v18, %v2515_v37  ;;  %v2518_v24 = vadd.f32 %v2517_v14, %v5248_v45  ;;  %v2519_v62 = vpop.f32.mrb[107].mxu0  ;;  %3610 = vmatpush3.bf16.msra.mxu1 %v3711_v58  ;;  %3541 = vmatpush3.bf16.msra.mxu0 %v3711_v58  ;;  %v2634_v58 = vmul.f32 %v5250_v11, %v5073_v26 }
 0x5a5   :  { %3603 = vmatprep.subr.bf16.mxu1 %v3890_v1  ;;  %3542 = vmatprep.subr.bf16.mxu0 %v3890_v1 }
 0x5a6   :  { %v5260_v63 = vadd.f32 %v2621_v61, %v2518_v24  ;;  %2670 = vadd.xlane.f32.xlu0 %v5255_v32 }
 0x5a8   :  { %2672 = vadd.xlane.f32.xlu1 %v5260_v63 }
 0x5a9   :  { %v2522_v13 = vpop.f32.mrb[108].mxu0 }
 0x5aa   :  { %v2523_v50 = vadd.f32 %v2522_v13, %v5248_v45  ;;  %v2524_v36 = vpop.f32.mrb[109].mxu0 }
 0x5ab   :  { %v2525_v10 = vpop.f32.mrb[110].mxu0  ;;  %v2629_v36 = vmul.f32 %v5250_v11, %v5018_v27 }
 0x5ac   :  { %v5267_v0 = vadd.f32 %v2622_v30, %v2523_v50  ;;  %v2526_v44 = vadd.f32 %v2525_v10, %v5248_v45  ;;  %v2527_v4 = vpop.f32.mrb[111].mxu0 }
 0x5ae   :  { %v5272_v34 = vadd.f32 %v2623_v39, %v2526_v44  ;;  %2674 = vadd.xlane.f32.xlu0 %v5267_v0  ;;  %v2747_v20 = vmul.f32 %v5267_v0, %v5267_v0 }
 0x5b0   :  { %2676 = vadd.xlane.f32.xlu1 %v5272_v34  ;;  %v2748_v46 = vmul.f32 %v5272_v34, %v5272_v34 }
 0x5b1   :  { %v2530_v56 = vpop.f32.mrb[112].mxu0 }
 0x5b2   :  { %v2531_v22 = vadd.f32 %v2530_v56, %v5248_v45  ;;  %2774 = vadd.xlane.f32.xlu0 %v2747_v20  ;;  %v2532_v49 = vpop.f32.mrb[113].mxu0  ;;  %v2630_v20 = vmul.f32 %v5250_v11, %v5035_v54 }
 0x5b3   :  { %v2533_v25 = vpop.f32.mrb[114].mxu0 }
 0x5b4   :  { %v5283_v17 = vadd.f32 %v2624_v41, %v2531_v22  ;;  %v2534_v31 = vadd.f32 %v2533_v25, %v5248_v45  ;;  %2776 = vadd.xlane.f32.xlu1 %v2748_v46  ;;  %v2535_v52 = vpop.f32.mrb[115].mxu0  ;;  %v2631_v46 = vmul.f32 %v5250_v11, %v5037_v57 }
 0x5b6   :  { %v5288_v21 = vadd.f32 %v2625_v23, %v2534_v31  ;;  %2678 = vadd.xlane.f32.xlu0 %v5283_v17  ;;  %v2749_v59 = vmul.f32 %v5283_v17, %v5283_v17 }
 0x5b8   :  { %2680 = vadd.xlane.f32.xlu1 %v5288_v21  ;;  %v2750_v29 = vmul.f32 %v5288_v21, %v5288_v21 }
 0x5b9   :  { %v2538_v2 = vpop.f32.mrb[116].mxu0 }
 0x5ba   :  { %v2539_v35 = vadd.f32 %v2538_v2, %v5248_v45  ;;  %2778 = vadd.xlane.f32.xlu0 %v2749_v59  ;;  %v2540_v15 = vpop.f32.mrb[117].mxu0  ;;  %v2632_v59 = vmul.f32 %v5250_v11, %v5054_v33 }
 0x5bb   :  { %v2541_v51 = vpop.f32.mrb[118].mxu0 }
 0x5bc   :  { %v5299_v6 = vadd.f32 %v2626_v42, %v2539_v35  ;;  %v2542_v3 = vadd.f32 %v2541_v51, %v5248_v45  ;;  %2780 = vadd.xlane.f32.xlu1 %v2750_v29  ;;  %v2543_v37 = vpop.f32.mrb[119].mxu0  ;;  %v3712_v35 = vld [vmem:[%s5665_s4 + $0x38] sm:$0xff]   ;;  %v2633_v51 = vmul.f32 %v5250_v11, %v5056_v12 }
 0x5bd   :  { %3611 = vmatpush3.bf16.msra.mxu1 %v3712_v35  ;;  %3543 = vmatpush3.bf16.msra.mxu0 %v3712_v35 }
 0x5be   :  { %v5304_v18 = vadd.f32 %v2627_v9, %v2542_v3  ;;  %2682 = vadd.xlane.f32.xlu0 %v5299_v6  ;;  %v2751_v47 = vmul.f32 %v5299_v6, %v5299_v6 }
 0x5c0   :  { %2684 = vadd.xlane.f32.xlu1 %v5304_v18  ;;  %v2752_v62 = vmul.f32 %v5304_v18, %v5304_v18 }
 0x5c1   :  { %v2546_v14 = vpop.f32.mrb[120].mxu0 }
 0x5c2   :  { %v2547_v24 = vadd.f32 %v2546_v14, %v5248_v45  ;;  %2782 = vadd.xlane.f32.xlu0 %v2751_v47  ;;  %v2548_v61 = vpop.f32.mrb[121].mxu0 }
 0x5c3   :  { %v2549_v13 = vpop.f32.mrb[122].mxu0 }
 0x5c4   :  { %v5319_v50 = vadd.f32 %v2628_v16, %v2547_v24  ;;  %v2550_v30 = vadd.f32 %v2549_v13, %v5248_v45  ;;  %2784 = vadd.xlane.f32.xlu1 %v2752_v62  ;;  %v2551_v10 = vpop.f32.mrb[123].mxu0  ;;  %v2635_v62 = vmul.f32 %v5250_v11, %v5075_v53 }
 0x5c6   :  { %v5325_v28 = vadd.f32 %v2629_v36, %v2550_v30  ;;  %2686 = vadd.xlane.f32.xlu0 %v5319_v50  ;;  %v2753_v44 = vmul.f32 %v5319_v50, %v5319_v50 }
 0x5c8   :  { %2688 = vadd.xlane.f32.xlu1 %v5325_v28  ;;  %v2754_v56 = vmul.f32 %v5325_v28, %v5325_v28 }
 0x5c9   :  { %v2554_v39 = vpop.f32.mrb[124].mxu0 }
 0x5ca   :  { %v2555_v4 = vadd.f32 %v2554_v39, %v5248_v45  ;;  %2786 = vadd.xlane.f32.xlu0 %v2753_v44  ;;  %v2556_v27 = vpop.f32.mrb[125].mxu0  ;;  %v2636_v44 = vmul.f32 %v5250_v11, %v5090_v38 }
 0x5cb   :  { %v2557_v22 = vpop.f32.mrb[126].mxu0 }
 0x5cc   :  { %v5336_v41 = vadd.f32 %v2630_v20, %v2555_v4  ;;  %v2558_v49 = vadd.f32 %v2557_v22, %v5248_v45  ;;  %2788 = vadd.xlane.f32.xlu1 %v2754_v56  ;;  %v2559_v25 = vpop.f32.mrb[127].mxu0  ;;  %v2637_v56 = vmul.f32 %v5250_v11, %v5092_v55 }
 0x5ce   :  { %v5341_v31 = vadd.f32 %v2631_v46, %v2558_v49  ;;  %2690 = vadd.xlane.f32.xlu0 %v5336_v41  ;;  %v2755_v54 = vmul.f32 %v5336_v41, %v5336_v41 }
 0x5d0   :  { %2692 = vadd.xlane.f32.xlu1 %v5341_v31  ;;  %v2756_v57 = vmul.f32 %v5341_v31, %v5341_v31 }
 0x5d1   :  { %v2562_v23 = vpop.f32.mrb[128].mxu0 }
 0x5d2   :  { %v2563_v52 = vadd.f32 %v2562_v23, %v5248_v45  ;;  %2790 = vadd.xlane.f32.xlu0 %v2755_v54  ;;  %v2564_v2 = vpop.f32.mrb[129].mxu0  ;;  %v2638_v54 = vmul.f32 %v5250_v11, %v5101_v5 }
 0x5d3   :  { %v2565_v42 = vpop.f32.mrb[130].mxu0 }
 0x5d4   :  { %v5355_v15 = vadd.f32 %v2632_v59, %v2563_v52  ;;  %v2566_v29 = vadd.f32 %v2565_v42, %v5248_v45  ;;  %2792 = vadd.xlane.f32.xlu1 %v2756_v57  ;;  %v2567_v3 = vpop.f32.mrb[131].mxu0  ;;  %v2639_v57 = vmul.f32 %v5250_v11, %v5103_v43 }
 0x5d5   :  { %v2640_v3 = vmul.f32 %v5250_v11, %v5112_v7 }
 0x5d6   :  { %v5360_v33 = vadd.f32 %v2633_v51, %v2566_v29  ;;  %2694 = vadd.xlane.f32.xlu0 %v5355_v15  ;;  %v2757_v9 = vmul.f32 %v5355_v15, %v5355_v15 }
 0x5d8   :  { %2696 = vadd.xlane.f32.xlu1 %v5360_v33  ;;  %v2758_v14 = vmul.f32 %v5360_v33, %v5360_v33 }
 0x5d9   :  { %v2570_v37 = vpop.f32.mrb[132].mxu0 }
 0x5da   :  { %v2571_v47 = vadd.f32 %v2570_v37, %v5248_v45  ;;  %2794 = vadd.xlane.f32.xlu0 %v2757_v9  ;;  %v2572_v12 = vpop.f32.mrb[133].mxu0 }
 0x5db   :  { %v2573_v24 = vpop.f32.mrb[134].mxu0  ;;  %v2641_v12 = vmul.f32 %v5250_v11, %v5114_v40 }
 0x5dc   :  { %v5371_v16 = vadd.f32 %v2634_v58, %v2571_v47  ;;  %v2574_v61 = vadd.f32 %v2573_v24, %v5248_v45  ;;  %2796 = vadd.xlane.f32.xlu1 %v2758_v14  ;;  %v2575_v13 = vpop.f32.mrb[135].mxu0 }
 0x5dd   :  { %v2642_v13 = vmul.f32 %v5250_v11, %v5121_v48 }
 0x5de   :  { %v5376_v30 = vadd.f32 %v2635_v62, %v2574_v61  ;;  %2698 = vadd.xlane.f32.xlu0 %v5371_v16  ;;  %v2759_v26 = vmul.f32 %v5371_v16, %v5371_v16 }
 0x5e0   :  { %2700 = vadd.xlane.f32.xlu1 %v5376_v30  ;;  %v2760_v53 = vmul.f32 %v5376_v30, %v5376_v30 }
 0x5e1   :  { %v2578_v36 = vpop.f32.mrb[136].mxu0 }
 0x5e2   :  { %v2579_v10 = vadd.f32 %v2578_v36, %v5248_v45  ;;  %2798 = vadd.xlane.f32.xlu0 %v2759_v26  ;;  %v2580_v39 = vpop.f32.mrb[137].mxu0 }
 0x5e3   :  { %v2581_v4 = vpop.f32.mrb[138].mxu0  ;;  %v2643_v39 = vmul.f32 %v5250_v11, %v5123_v8 }
 0x5e4   :  { %v5387_v20 = vadd.f32 %v2636_v44, %v2579_v10  ;;  %v2582_v27 = vadd.f32 %v2581_v4, %v5248_v45  ;;  %2800 = vadd.xlane.f32.xlu1 %v2760_v53  ;;  %v2583_v22 = vpop.f32.mrb[139].mxu0 }
 0x5e5   :  { %v2644_v22 = vmul.f32 %v5250_v11, %v5129_v60 }
 0x5e6   :  { %v5392_v49 = vadd.f32 %v2637_v56, %v2582_v27  ;;  %2702 = vadd.xlane.f32.xlu0 %v5387_v20  ;;  %v2761_v38 = vmul.f32 %v5387_v20, %v5387_v20 }
 0x5e8   :  { %2704 = vadd.xlane.f32.xlu1 %v5392_v49  ;;  %v2762_v55 = vmul.f32 %v5392_v49, %v5392_v49 }
 0x5e9   :  { %v2586_v46 = vpop.f32.mrb[140].mxu0 }
 0x5ea   :  { %v2587_v25 = vadd.f32 %v2586_v46, %v5248_v45  ;;  %2802 = vadd.xlane.f32.xlu0 %v2761_v38  ;;  %v2588_v23 = vpop.f32.mrb[141].mxu0 }
 0x5eb   :  { %v2589_v52 = vpop.f32.mrb[142].mxu0  ;;  %v2745_v23 = vmul.f32 %v5255_v32, %v5255_v32 }
 0x5ec   :  { %v5403_v59 = vadd.f32 %v2638_v54, %v2587_v25  ;;  %v2590_v2 = vadd.f32 %v2589_v52, %v5248_v45  ;;  %2804 = vadd.xlane.f32.xlu1 %v2762_v55  ;;  %v2591_v35 = vpop.f32.mrb[143].mxu0 }
 0x5ee   :  { %v5408_v42 = vadd.f32 %v2639_v57, %v2590_v2  ;;  %2706 = vadd.xlane.f32.xlu0 %v5403_v59  ;;  %v2763_v5 = vmul.f32 %v5403_v59, %v5403_v59 }
 0x5f0   :  { %2708 = vadd.xlane.f32.xlu1 %v5408_v42  ;;  %v2764_v43 = vmul.f32 %v5408_v42, %v5408_v42 }
 0x5f1   :  { %v2594_v29 = vpop.f32.mrb[144].mxu0 }
 0x5f2   :  { %v2595_v51 = vadd.f32 %v2594_v29, %v5248_v45  ;;  %2806 = vadd.xlane.f32.xlu0 %v2763_v5  ;;  %v2596_v9 = vpop.f32.mrb[145].mxu0 }
 0x5f3   :  { %v2597_v37 = vpop.f32.mrb[146].mxu0 }
 0x5f4   :  { %v5419_v47 = vadd.f32 %v2640_v3, %v2595_v51  ;;  %v2598_v58 = vadd.f32 %v2597_v37, %v5248_v45  ;;  %2808 = vadd.xlane.f32.xlu1 %v2764_v43  ;;  %v2599_v14 = vpop.f32.mrb[147].mxu0 }
 0x5f6   :  { %v5424_v24 = vadd.f32 %v2641_v12, %v2598_v58  ;;  %2710 = vadd.xlane.f32.xlu0 %v5419_v47  ;;  %v2765_v7 = vmul.f32 %v5419_v47, %v5419_v47 }
 0x5f8   :  { %2712 = vadd.xlane.f32.xlu1 %v5424_v24  ;;  %v2766_v40 = vmul.f32 %v5424_v24, %v5424_v24 }
 0x5f9   :  { %v2602_v61 = vpop.f32.mrb[148].mxu0 }
 0x5fa   :  { %v2603_v62 = vadd.f32 %v2602_v61, %v5248_v45  ;;  %2810 = vadd.xlane.f32.xlu0 %v2765_v7  ;;  %v2604_v26 = vpop.f32.mrb[149].mxu0 }
 0x5fb   :  { %v2605_v36 = vpop.f32.mrb[150].mxu0 }
 0x5fc   :  { %v5435_v10 = vadd.f32 %v2642_v13, %v2603_v62  ;;  %v2606_v44 = vadd.f32 %v2605_v36, %v5248_v45  ;;  %2812 = vadd.xlane.f32.xlu1 %v2766_v40  ;;  %v2607_v53 = vpop.f32.mrb[151].mxu0 }
 0x5fe   :  { %v5440_v4 = vadd.f32 %v2643_v39, %v2606_v44  ;;  %2714 = vadd.xlane.f32.xlu0 %v5435_v10  ;;  %v2767_v48 = vmul.f32 %v5435_v10, %v5435_v10 }
 0x600   :  { %2716 = vadd.xlane.f32.xlu1 %v5440_v4  ;;  %v2768_v8 = vmul.f32 %v5440_v4, %v5440_v4 }
 0x601   :  { %v2610_v27 = vpop.f32.mrb[152].mxu0 }
 0x602   :  { %v2611_v56 = vadd.f32 %v2610_v27, %v5248_v45  ;;  %2814 = vadd.xlane.f32.xlu0 %v2767_v48  ;;  %v2612_v38 = vpop.f32.mrb[153].mxu0  ;;  %v2746_v45 = vmul.f32 %v5260_v63, %v5260_v63 }
 0x603   :  { %v2613_v46 = vpop.f32.mrb[154].mxu0 }
 0x604   :  { %v5451_v25 = vadd.f32 %v2644_v22, %v2611_v56  ;;  %2816 = vadd.xlane.f32.xlu1 %v2768_v8  ;;  %v2614_v54 = vpop.f32.mrb[155].mxu0 }
 0x606   :  { %2718 = vadd.xlane.f32.xlu0 %v5451_v25  ;;  %v2769_v60 = vmul.f32 %v5451_v25, %v5451_v25 }
 0x608   :  { %2770 = vadd.xlane.f32.xlu1 %v2745_v23 }
 0x60a   :  { %2772 = vadd.xlane.f32.xlu0 %v2746_v45 }
 0x60c   :  { %2818 = vadd.xlane.f32.xlu1 %v2769_v60 }
 0x633   :  { %v5460_v11 = vpop.xlane.xlu0 %2670 }
 0x635   :  { %v5462_v55 = vpop.xlane.xlu1 %2672 }
 0x63b   :  { %v2675_v52 = vpop.xlane.xlu0 %2674 }
 0x63c   :  { %v2722_v2 = vmul.f32 0.0078125, %v2675_v52 }
 0x63d   :  { %v2677_v57 = vpop.xlane.xlu1 %2676 }
 0x63e   :  { %v2723_v35 = vmul.f32 0.0078125, %v2677_v57  ;;  %v2847_v29 = vmul.f32 %v2722_v2, %v2722_v2 }
 0x63f   :  { %v2775_v5 = vpop.xlane.xlu0 %2774 }
 0x640   :  { %v2822_v51 = vmul.f32 0.0078125, %v2775_v5  ;;  %v2848_v9 = vmul.f32 %v2723_v35, %v2723_v35 }
 0x641   :  { %v2777_v3 = vpop.xlane.xlu1 %2776 }
 0x642   :  { %v2872_v43 = vsub.f32 %v2822_v51, %v2847_v29  ;;  %v2823_v37 = vmul.f32 0.0078125, %v2777_v3 }
 0x643   :  { %v2679_v58 = vpop.xlane.xlu0 %2678 }
 0x644   :  { %v2897_v12 = vmax.f32 %v2872_v43, 0.0  ;;  %v2873_v14 = vsub.f32 %v2823_v37, %v2848_v9  ;;  %v5464_v7 = vmul.f32 0.0078125, %v2679_v58  ;;  %v2922_v58 = vsub.f32 %v5267_v0, %v2722_v2 }
 0x645   :  { %v2681_v61 = vpop.xlane.xlu1 %2680 }
 0x646   :  { %v2947_v62 = vadd.f32 1e-05, %v2897_v12  ;;  %v2898_v13 = vmax.f32 %v2873_v14, 0.0  ;;  %v5466_v26 = vmul.f32 0.0078125, %v2681_v61  ;;  %v2849_v44 = vmul.f32 %v5464_v7, %v5464_v7 }
 0x647   :  { %v2779_v40 = vpop.xlane.xlu0 %2778  ;;  %v2923_v12 = vsub.f32 %v5272_v34, %v2723_v35 }
 0x648   :  { %3813 = vrsqrt.f32 %v2947_v62  ;;  %v2948_v36 = vadd.f32 1e-05, %v2898_v13  ;;  %v2824_v39 = vmul.f32 0.0078125, %v2779_v40  ;;  %v2850_v48 = vmul.f32 %v5466_v26, %v5466_v26 }
 0x649   :  { %v2781_v53 = vpop.xlane.xlu1 %2780 }
 0x64a   :  { %3815 = vrsqrt.f32 %v2948_v36  ;;  %v2874_v27 = vsub.f32 %v2824_v39, %v2849_v44  ;;  %v2825_v56 = vmul.f32 0.0078125, %v2781_v53 }
 0x64b   :  { %v2683_v22 = vpop.xlane.xlu0 %2682 }
 0x64c   :  { %v2899_v38 = vmax.f32 %v2874_v27, 0.0  ;;  %v2875_v8 = vsub.f32 %v2825_v56, %v2850_v48  ;;  %v5472_v46 = vmul.f32 0.0078125, %v2683_v22 }
 0x64d   :  { %v2685_v54 = vpop.xlane.xlu1 %2684 }
 0x64e   :  { %v2949_v23 = vadd.f32 1e-05, %v2899_v38  ;;  %v2900_v45 = vmax.f32 %v2875_v8, 0.0  ;;  %v5474_v60 = vmul.f32 0.0078125, %v2685_v54  ;;  %v2851_v5 = vmul.f32 %v5472_v46, %v5472_v46 }
 0x64f   :  { %v2783_v52 = vpop.xlane.xlu0 %2782 }
 0x650   :  { %3817 = vrsqrt.f32 %v2949_v23  ;;  %v2950_v57 = vadd.f32 1e-05, %v2900_v45  ;;  %v2826_v29 = vmul.f32 0.0078125, %v2783_v52  ;;  %v2852_v9 = vmul.f32 %v5474_v60, %v5474_v60 }
 0x651   :  { %v2785_v51 = vpop.xlane.xlu1 %2784  ;;  %v2924_v45 = vsub.f32 %v5283_v17, %v5464_v7  ;;  %v2925_v52 = vsub.f32 %v5288_v21, %v5466_v26 }
 0x652   :  { %v3814_v3 = vpop.eup %3813  ;;  %3819 = vrsqrt.f32 %v2950_v57  ;;  %v2876_v43 = vsub.f32 %v2826_v29, %v2851_v5  ;;  %v2827_v37 = vmul.f32 0.0078125, %v2785_v51 }
 0x653   :  { %v2687_v14 = vpop.xlane.xlu0 %2686  ;;  %v2997_v44 = vmul.f32 %v3814_v3, %v2922_v58 }
 0x654   :  { %v3816_v61 = vpop.eup %3815  ;;  %v2901_v62 = vmax.f32 %v2876_v43, 0.0  ;;  %v2877_v13 = vsub.f32 %v2827_v37, %v2852_v9  ;;  %v5482_v40 = vmul.f32 0.0078125, %v2687_v14 }
 0x655   :  { %v2689_v36 = vpop.xlane.xlu1 %2688  ;;  %v2998_v39 = vmul.f32 %v3816_v61, %v2923_v12 }
 0x656   :  { %v2951_v53 = vadd.f32 1e-05, %v2901_v62  ;;  %v2902_v48 = vmax.f32 %v2877_v13, 0.0  ;;  %v5484_v27 = vmul.f32 0.0078125, %v2689_v36  ;;  %v2853_v0 = vmul.f32 %v5482_v40, %v5482_v40 }
 0x657   :  { %v2787_v56 = vpop.xlane.xlu0 %2786  ;;  %v3021_v22 = vpack.c.bf16 %v2998_v39, %v2997_v44 }
 0x658   :  { %3821 = vrsqrt.f32 %v2951_v53  ;;  %v2952_v38 = vadd.f32 1e-05, %v2902_v48  ;;  %v2828_v34 = vmul.f32 0.0078125, %v2787_v56  ;;  %v2854_v8 = vmul.f32 %v5484_v27, %v5484_v27 }
 0x659   :  { %3549 = vmatmul.mubr.bf16.vlgmr.msra.gmra.mrb[104].mxu1 %v3021_v22  ;;  %v2789_v2 = vpop.xlane.xlu1 %2788  ;;  %v2926_v53 = vsub.f32 %v5299_v6, %v5472_v46  ;;  %v2927_v48 = vsub.f32 %v5304_v18, %v5474_v60 }
 0x65a   :  { %v3818_v35 = vpop.eup %3817  ;;  %3823 = vrsqrt.f32 %v2952_v38  ;;  %v2878_v54 = vsub.f32 %v2828_v34, %v2853_v0  ;;  %v2829_v23 = vmul.f32 0.0078125, %v2789_v2  ;;  %3552 = vmatprep.mubr.msk.bf16.mxu1 %vm3891_vm0, %v3890_v1 }
 0x65b   :  { %v2691_v57 = vpop.xlane.xlu0 %2690  ;;  %v2999_v43 = vmul.f32 %v3818_v35, %v2924_v45 }
 0x65c   :  { %v3820_v5 = vpop.eup %3819  ;;  %v2903_v29 = vmax.f32 %v2878_v54, 0.0  ;;  %v2879_v51 = vsub.f32 %v2829_v23, %v2854_v8  ;;  %v5496_v3 = vmul.f32 0.0078125, %v2691_v57 }
 0x65d   :  { %v2693_v9 = vpop.xlane.xlu1 %2692  ;;  %v3000_v37 = vmul.f32 %v3820_v5, %v2925_v52 }
 0x65e   :  { %v2953_v58 = vadd.f32 1e-05, %v2903_v29  ;;  %v2904_v12 = vmax.f32 %v2879_v51, 0.0  ;;  %v5498_v14 = vmul.f32 0.0078125, %v2693_v9  ;;  %v2855_v21 = vmul.f32 %v5496_v3, %v5496_v3 }
 0x65f   :  { %v2791_v61 = vpop.xlane.xlu0 %2790  ;;  %v3022_v62 = vpack.c.bf16 %v3000_v37, %v2999_v43  ;;  %v2928_v43 = vsub.f32 %v5319_v50, %v5482_v40  ;;  %v2929_v37 = vsub.f32 %v5325_v28, %v5484_v27 }
 0x660   :  { %3825 = vrsqrt.f32 %v2953_v58  ;;  %v2954_v17 = vadd.f32 1e-05, %v2904_v12  ;;  %v2830_v7 = vmul.f32 0.0078125, %v2791_v61  ;;  %v2856_v36 = vmul.f32 %v5498_v14, %v5498_v14 }
 0x661   :  { %3553 = vmatmul.mubr.bf16.gmra.mrb[108].mxu1 %v3022_v62  ;;  %v2793_v26 = vpop.xlane.xlu1 %2792 }
 0x662   :  { %v3822_v13 = vpop.eup %3821  ;;  %3827 = vrsqrt.f32 %v2954_v17  ;;  %v2880_v44 = vsub.f32 %v2830_v7, %v2855_v21  ;;  %v2831_v39 = vmul.f32 0.0078125, %v2793_v26  ;;  %3556 = vmatprep.mubr.msk.bf16.mxu1 %vm3891_vm0, %v3890_v1 }
 0x663   :  { %v2695_v56 = vpop.xlane.xlu0 %2694  ;;  %v3001_v35 = vmul.f32 %v3822_v13, %v2926_v53 }
 0x664   :  { %v3824_v22 = vpop.eup %3823  ;;  %v2905_v38 = vmax.f32 %v2880_v44, 0.0  ;;  %v2881_v0 = vsub.f32 %v2831_v39, %v2856_v36  ;;  %v5510_v34 = vmul.f32 0.0078125, %v2695_v56 }
 0x665   :  { %v2697_v2 = vpop.xlane.xlu1 %2696  ;;  %v3002_v8 = vmul.f32 %v3824_v22, %v2927_v48 }
 0x666   :  { %v2955_v54 = vadd.f32 1e-05, %v2905_v38  ;;  %v2906_v23 = vmax.f32 %v2881_v0, 0.0  ;;  %v5512_v45 = vmul.f32 0.0078125, %v2697_v2  ;;  %v2857_v18 = vmul.f32 %v5510_v34, %v5510_v34 }
 0x667   :  { %v2795_v52 = vpop.xlane.xlu0 %2794  ;;  %v3023_v57 = vpack.c.bf16 %v3002_v8, %v3001_v35  ;;  %v2930_v0 = vsub.f32 %v5336_v41, %v5496_v3  ;;  %v2931_v2 = vsub.f32 %v5341_v31, %v5498_v14 }
 0x668   :  { %3829 = vrsqrt.f32 %v2955_v54  ;;  %v2956_v6 = vadd.f32 1e-05, %v2906_v23  ;;  %v2832_v46 = vmul.f32 0.0078125, %v2795_v52  ;;  %v2858_v29 = vmul.f32 %v5512_v45, %v5512_v45 }
 0x669   :  { %3557 = vmatmul.mubr.bf16.gmra.mrb[112].mxu1 %v3023_v57  ;;  %v2797_v60 = vpop.xlane.xlu1 %2796 }
 0x66a   :  { %v3826_v5 = vpop.eup %3825  ;;  %3831 = vrsqrt.f32 %v2956_v6  ;;  %v2882_v51 = vsub.f32 %v2832_v46, %v2857_v18  ;;  %v2833_v9 = vmul.f32 0.0078125, %v2797_v60  ;;  %3560 = vmatprep.mubr.msk.bf16.mxu1 %vm3891_vm0, %v3890_v1 }
 0x66b   :  { %v2699_v58 = vpop.xlane.xlu0 %2698  ;;  %v3003_v7 = vmul.f32 %v3826_v5, %v2928_v43 }
 0x66c   :  { %v3828_v12 = vpop.eup %3827  ;;  %v2907_v61 = vmax.f32 %v2882_v51, 0.0  ;;  %v2883_v62 = vsub.f32 %v2833_v9, %v2858_v29  ;;  %v5524_v17 = vmul.f32 0.0078125, %v2699_v58 }
 0x66d   :  { %v2701_v21 = vpop.xlane.xlu1 %2700  ;;  %v3004_v26 = vmul.f32 %v3828_v12, %v2929_v37  ;;  %v2932_v12 = vsub.f32 %v5355_v15, %v5510_v34 }
 0x66e   :  { %v2957_v13 = vadd.f32 1e-05, %v2907_v61  ;;  %v2908_v36 = vmax.f32 %v2883_v62, 0.0  ;;  %v5526_v44 = vmul.f32 0.0078125, %v2701_v21  ;;  %v2859_v28 = vmul.f32 %v5524_v17, %v5524_v17 }
 0x66f   :  { %v2799_v39 = vpop.xlane.xlu0 %2798  ;;  %v3024_v53 = vpack.c.bf16 %v3004_v26, %v3003_v7  ;;  %v2933_v61 = vsub.f32 %v5360_v33, %v5512_v45 }
 0x670   :  { %3833 = vrsqrt.f32 %v2957_v13  ;;  %v2958_v50 = vadd.f32 1e-05, %v2908_v36  ;;  %v2834_v40 = vmul.f32 0.0078125, %v2799_v39  ;;  %v2860_v56 = vmul.f32 %v5526_v44, %v5526_v44 }
 0x671   :  { %3561 = vmatmul.mubr.bf16.gmra.mrb[116].mxu1 %v3024_v53  ;;  %v2801_v27 = vpop.xlane.xlu1 %2800 }
 0x672   :  { %v3830_v48 = vpop.eup %3829  ;;  %3835 = vrsqrt.f32 %v2958_v50  ;;  %v2884_v22 = vsub.f32 %v2834_v40, %v2859_v28  ;;  %v2835_v38 = vmul.f32 0.0078125, %v2801_v27  ;;  %3564 = vmatprep.mubr.msk.bf16.mxu1 %vm3891_vm0, %v3890_v1 }
 0x673   :  { %v2703_v35 = vpop.xlane.xlu0 %2702  ;;  %v3005_v6 = vmul.f32 %v3830_v48, %v2930_v0 }
 0x674   :  { %v3832_v8 = vpop.eup %3831  ;;  %v2909_v54 = vmax.f32 %v2884_v22, 0.0  ;;  %v2885_v23 = vsub.f32 %v2835_v38, %v2860_v56  ;;  %v5538_v52 = vmul.f32 0.0078125, %v2703_v35  ;;  %v2935_v35 = vsub.f32 %v5376_v30, %v5526_v44 }
 0x675   :  { %v2705_v57 = vpop.xlane.xlu1 %2704  ;;  %v3006_v18 = vmul.f32 %v3832_v8, %v2931_v2  ;;  %v2934_v2 = vsub.f32 %v5371_v16, %v5524_v17 }
 0x676   :  { %v2959_v46 = vadd.f32 1e-05, %v2909_v54  ;;  %v2910_v60 = vmax.f32 %v2885_v23, 0.0  ;;  %v5540_v5 = vmul.f32 0.0078125, %v2705_v57  ;;  %v2861_v31 = vmul.f32 %v5538_v52, %v5538_v52 }
 0x677   :  { %v2803_v29 = vpop.xlane.xlu0 %2802  ;;  %v3025_v51 = vpack.c.bf16 %v3006_v18, %v3005_v6 }
 0x678   :  { %3837 = vrsqrt.f32 %v2959_v46  ;;  %v2960_v41 = vadd.f32 1e-05, %v2910_v60  ;;  %v2836_v3 = vmul.f32 0.0078125, %v2803_v29  ;;  %v2862_v43 = vmul.f32 %v5540_v5, %v5540_v5 }
 0x679   :  { %3565 = vmatmul.mubr.bf16.gmra.mrb[120].mxu1 %v3025_v51  ;;  %v2805_v14 = vpop.xlane.xlu1 %2804 }
 0x67a   :  { %v3834_v9 = vpop.eup %3833  ;;  %3839 = vrsqrt.f32 %v2960_v41  ;;  %v2886_v37 = vsub.f32 %v2836_v3, %v2861_v31  ;;  %v2837_v58 = vmul.f32 0.0078125, %v2805_v14  ;;  %3568 = vmatprep.mubr.msk.bf16.mxu1 %vm3891_vm0, %v3890_v1 }
 0x67b   :  { %v2707_v62 = vpop.xlane.xlu0 %2706  ;;  %v3007_v39 = vmul.f32 %v3834_v9, %v2932_v12  ;;  %v2937_v12 = vsub.f32 %v5392_v49, %v5540_v5 }
 0x67c   :  { %v3836_v21 = vpop.eup %3835  ;;  %v2911_v7 = vmax.f32 %v2886_v37, 0.0  ;;  %v2887_v26 = vsub.f32 %v2837_v58, %v2862_v43  ;;  %v5552_v13 = vmul.f32 0.0078125, %v2707_v62  ;;  %v2936_v58 = vsub.f32 %v5387_v20, %v5538_v52 }
 0x67d   :  { %v2709_v36 = vpop.xlane.xlu1 %2708  ;;  %v3008_v53 = vmul.f32 %v3836_v21, %v2933_v61 }
 0x67e   :  { %v2961_v50 = vadd.f32 1e-05, %v2911_v7  ;;  %v2912_v28 = vmax.f32 %v2887_v26, 0.0  ;;  %v5554_v40 = vmul.f32 0.0078125, %v2709_v36  ;;  %v2863_v33 = vmul.f32 %v5552_v13, %v5552_v13 }
 0x67f   :  { %v2807_v27 = vpop.xlane.xlu0 %2806  ;;  %v3026_v48 = vpack.c.bf16 %v3008_v53, %v3007_v39 }
 0x680   :  { %3841 = vrsqrt.f32 %v2961_v50  ;;  %v2962_v15 = vadd.f32 1e-05, %v2912_v28  ;;  %v2838_v34 = vmul.f32 0.0078125, %v2807_v27  ;;  %v2864_v22 = vmul.f32 %v5554_v40, %v5554_v40 }
 0x681   :  { %3569 = vmatmul.mubr.bf16.gmra.mrb[124].mxu1 %v3026_v48  ;;  %v2809_v45 = vpop.xlane.xlu1 %2808 }
 0x682   :  { %v3838_v56 = vpop.eup %3837  ;;  %3843 = vrsqrt.f32 %v2962_v15  ;;  %v2888_v38 = vsub.f32 %v2838_v34, %v2863_v33  ;;  %v2839_v0 = vmul.f32 0.0078125, %v2809_v45  ;;  %3572 = vmatprep.mubr.msk.bf16.mxu1 %vm3891_vm0, %v3890_v1 }
 0x683   :  { %v2711_v8 = vpop.xlane.xlu0 %2710  ;;  %v3009_v46 = vmul.f32 %v3838_v56, %v2934_v2 }
 0x684   :  { %v3840_v54 = vpop.eup %3839  ;;  %v2913_v23 = vmax.f32 %v2888_v38, 0.0  ;;  %v2889_v57 = vsub.f32 %v2839_v0, %v2864_v22  ;;  %v5566_v6 = vmul.f32 0.0078125, %v2711_v8  ;;  %v5591_v22 = vmul.f32 0.0078125, %v5460_v11 }
 0x685   :  { %v2713_v18 = vpop.xlane.xlu1 %2712  ;;  %v3010_v60 = vmul.f32 %v3840_v54, %v2935_v35  ;;  %v2938_v38 = vsub.f32 %v5403_v59, %v5552_v13  ;;  %v2939_v0 = vsub.f32 %v5408_v42, %v5554_v40  ;;  %v2721_v8 = vmul.f32 0.0078125, %v5462_v55 }
 0x686   :  { %v2963_v29 = vadd.f32 1e-05, %v2913_v23  ;;  %v2914_v51 = vmax.f32 %v2889_v57, 0.0  ;;  %v5568_v41 = vmul.f32 0.0078125, %v2713_v18  ;;  %v2865_v30 = vmul.f32 %v5566_v6, %v5566_v6 }
 0x687   :  { %v2811_v31 = vpop.xlane.xlu0 %2810  ;;  %v3027_v3 = vpack.c.bf16 %v3010_v60, %v3009_v46  ;;  %v2845_v11 = vmul.f32 %v5591_v22, %v5591_v22 }
 0x688   :  { %3845 = vrsqrt.f32 %v2963_v29  ;;  %v2964_v16 = vadd.f32 1e-05, %v2914_v51  ;;  %v2840_v17 = vmul.f32 0.0078125, %v2811_v31  ;;  %v2866_v9 = vmul.f32 %v5568_v41, %v5568_v41 }
 0x689   :  { %3573 = vmatmul.mubr.bf16.gmra.mrb[128].mxu1 %v3027_v3  ;;  %v2813_v44 = vpop.xlane.xlu1 %2812  ;;  %v2846_v3 = vmul.f32 %v2721_v8, %v2721_v8 }
 0x68a   :  { %v3842_v14 = vpop.eup %3841  ;;  %3847 = vrsqrt.f32 %v2964_v16  ;;  %v2890_v43 = vsub.f32 %v2840_v17, %v2865_v30  ;;  %v2841_v37 = vmul.f32 0.0078125, %v2813_v44  ;;  %3576 = vmatprep.mubr.msk.bf16.mxu1 %vm3891_vm0, %v3890_v1 }
 0x68b   :  { %v2715_v61 = vpop.xlane.xlu0 %2714  ;;  %v3011_v39 = vmul.f32 %v3842_v14, %v2936_v58 }
 0x68c   :  { %v3844_v62 = vpop.eup %3843  ;;  %v2915_v21 = vmax.f32 %v2890_v43, 0.0  ;;  %v2891_v7 = vsub.f32 %v2841_v37, %v2866_v9  ;;  %v5580_v26 = vmul.f32 0.0078125, %v2715_v61  ;;  %v2940_v9 = vsub.f32 %v5419_v47, %v5566_v6 }
 0x68d   :  { %v2717_v36 = vpop.xlane.xlu1 %2716  ;;  %v3012_v53 = vmul.f32 %v3844_v62, %v2937_v12  ;;  %v2941_v43 = vsub.f32 %v5424_v24, %v5568_v41 }
 0x68e   :  { %v2965_v50 = vadd.f32 1e-05, %v2915_v21  ;;  %v2916_v28 = vmax.f32 %v2891_v7, 0.0  ;;  %v5582_v27 = vmul.f32 0.0078125, %v2717_v36  ;;  %v2867_v49 = vmul.f32 %v5580_v26, %v5580_v26 }
 0x68f   :  { %v2815_v48 = vpop.xlane.xlu0 %2814  ;;  %v3028_v15 = vpack.c.bf16 %v3012_v53, %v3011_v39  ;;  %v2942_v47 = vsub.f32 %v5435_v10, %v5580_v26 }
 0x690   :  { %3849 = vrsqrt.f32 %v2965_v50  ;;  %v2966_v20 = vadd.f32 1e-05, %v2916_v28  ;;  %v2842_v52 = vmul.f32 0.0078125, %v2815_v48  ;;  %v2868_v34 = vmul.f32 %v5582_v27, %v5582_v27 }
 0x691   :  { %3577 = vmatmul.mubr.bf16.gmra.mrb[132].mxu1 %v3028_v15  ;;  %v2817_v5 = vpop.xlane.xlu1 %2816  ;;  %v2943_v24 = vsub.f32 %v5440_v4, %v5582_v27 }
 0x692   :  { %v3846_v33 = vpop.eup %3845  ;;  %3851 = vrsqrt.f32 %v2966_v20  ;;  %v2892_v45 = vsub.f32 %v2842_v52, %v2867_v49  ;;  %v2843_v56 = vmul.f32 0.0078125, %v2817_v5  ;;  %3580 = vmatprep.mubr.msk.bf16.mxu1 %vm3891_vm0, %v3890_v1  ;;  %v2920_v49 = vsub.f32 %v5255_v32, %v5591_v22  ;;  %v3865_v32 = vld [vmem:[%s5666_s5] sm:$0xff]  ;;  %s3893_s5 = smov [#allocation2]  }
 0x693   :  { %v2719_v2 = vpop.xlane.xlu0 %2718  ;;  %v3013_v18 = vmul.f32 %v3846_v33, %v2938_v38  ;;  %v2921_v52 = vsub.f32 %v5260_v63, %v2721_v8  ;;  %s3267_s15 = sshll.u32 %s3893_s5, 4  ;;  %s3268_s15 = int_to_ptr.vmem [resolvable:$true] %s3267_s15 }
 0x694   :  { %v3848_v35 = vpop.eup %3847  ;;  %v2917_v54 = vmax.f32 %v2892_v45, 0.0  ;;  %v2893_v23 = vsub.f32 %v2843_v56, %v2868_v34  ;;  %v2744_v51 = vmul.f32 0.0078125, %v2719_v2  ;;  %v3051_v56 = vsub.s32 6, %v4028_v19  ;;  %s3866_s16 = scalar_lea.vmem %s3268_s15, 3200  ;;  %p3871_p1 = scmp.lt.s32.totalorder %s3268_s15, %s3268_s15 }
 0x695   :  { %v2771_v57 = vpop.xlane.xlu1 %2770  ;;  %v3014_v46 = vmul.f32 %v3848_v35, %v2939_v0  ;;  %p3867_p0 = scmp.ne.s32.totalorder %s3268_s15, %s3866_s16  ;;  %p3872_p2 = scmp.lt.s32.totalorder %s3866_s16, %s3866_s16 }
 0x696   :  { %v2967_v60 = vadd.f32 1e-05, %v2917_v54  ;;  %v2918_v29 = vmax.f32 %v2893_v23, 0.0  ;;  %v2820_v31 = vmul.f32 0.0078125, %v2771_v57  ;;  %v2869_v17 = vmul.f32 %v2744_v51, %v2744_v51 }
 0x697   :  { %v2773_v59 = vpop.xlane.xlu0 %2772  ;;  %v3029_v13 = vpack.c.bf16 %v3014_v46, %v3013_v18  ;;  %v2944_v10 = vsub.f32 %v5451_v25, %v2744_v51  ;;  %v5622_v63 = vrot.slane %v3865_v32, %v3051_v56  ;;  %p3873_p3 = por %p3872_p2, %p3871_p1 }
 0x698   :  { %3853 = vrsqrt.f32 %v2967_v60  ;;  %v2968_v42 = vadd.f32 1e-05, %v2918_v29  ;;  %v2821_v40 = vmul.f32 0.0078125, %v2773_v59  ;;  %v2870_v16 = vsub.f32 %v2820_v31, %v2845_v11 }
 0x699   :  { %3581 = vmatmul.mubr.bf16.gmra.mrb[136].mxu1 %v3029_v13  ;;  %v2819_v55 = vpop.xlane.xlu1 %2818  ;;  %p3874_p4 = pnand %p3873_p3, %p3867_p0 }
 0x69a   :  { %v3850_v30 = vpop.eup %3849  ;;  %3855 = vrsqrt.f32 %v2968_v42  ;;  %v2871_v44 = vsub.f32 %v2821_v40, %v2846_v3  ;;  %v2844_v14 = vmul.f32 0.0078125, %v2819_v55  ;;  %3584 = vmatprep.mubr.msk.bf16.mxu1 %vm3891_vm0, %v3890_v1  ;;  %v2895_v37 = vmax.f32 %v2870_v16, 0.0 }
 0x69b   :  { %v3015_v21 = vmul.f32 %v3850_v30, %v2940_v9 }
 0x69c   :  { %v3852_v58 = vpop.eup %3851  ;;  %v2896_v12 = vmax.f32 %v2871_v44, 0.0  ;;  %v2894_v61 = vsub.f32 %v2844_v14, %v2869_v17  ;;  %v2945_v62 = vadd.f32 1e-05, %v2895_v37 }
 0x69d   :  { %v3016_v7 = vmul.f32 %v3852_v58, %v2941_v43 }
 0x69e   :  { %v2946_v36 = vadd.f32 1e-05, %v2896_v12  ;;  %v2919_v39 = vmax.f32 %v2894_v61, 0.0  ;;  %3857 = vrsqrt.f32 %v2945_v62 }
 0x69f   :  { %v3030_v53 = vpack.c.bf16 %v3016_v7, %v3015_v21 }
 0x6a0   :  { %3859 = vrsqrt.f32 %v2946_v36  ;;  %v2969_v50 = vadd.f32 1e-05, %v2919_v39 }
 0x6a1   :  { %3585 = vmatmul.mubr.bf16.gmra.mrb[140].mxu1 %v3030_v53 }
 0x6a2   :  { %v3854_v28 = vpop.eup %3853  ;;  %3861 = vrsqrt.f32 %v2969_v50  ;;  %3588 = vmatprep.mubr.msk.bf16.mxu1 %vm3891_vm0, %v3890_v1 }
 0x6a3   :  { %v3017_v41 = vmul.f32 %v3854_v28, %v2942_v47 }
 0x6a4   :  { %v3856_v6 = vpop.eup %3855 }
 0x6a5   :  { %v3018_v48 = vmul.f32 %v3856_v6, %v2943_v24 }
 0x6a7   :  { %v3031_v15 = vpack.c.bf16 %v3018_v48, %v3017_v41 }
 0x6a8   :  { %v3858_v20 = vpop.eup %3857 }
 0x6a9   :  { %3589 = vmatmul.mubr.bf16.gmra.mrb[144].mxu1 %v3031_v15  ;;  %v2995_v26 = vmul.f32 %v3858_v20, %v2920_v49 }
 0x6aa   :  { %v3860_v5 = vpop.eup %3859  ;;  %3592 = vmatprep.mubr.msk.bf16.mxu1 %vm3891_vm0, %v3890_v1 }
 0x6ab   :  { %v2996_v33 = vmul.f32 %v3860_v5, %v2921_v52 }
 0x6ac   :  { %v3862_v4 = vpop.eup %3861 }
 0x6ad   :  { %v3020_v27 = vpack.c.bf16 %v2996_v33, %v2995_v26  ;;  %v3019_v34 = vmul.f32 %v3862_v4, %v2944_v10 }
 0x6af   :  { %3545 = vmatmul.mubr.bf16.vlgmr.msra.gmra.mrb[156].mxu0 %v3020_v27  ;;  %v3032_v45 = vpack.c.bf16 %v3019_v34, %v3019_v34 }
 0x6b1   :  { %3593 = vmatmul.mubr.bf16.gmra.mrb[148].mxu1 %v3032_v45 }
 0x72c   :  { %v3143_v22 = vpop.f32.mrb[104].mxu1 }
 0x72d   :  { %v3144_v1 = vadd.f32 %v3143_v22, %v5622_v63  ;;  %v3550_v25 = vpop.f32.mrb[105].mxu1 }
 0x72e   :  { %v3146_v38 = vpop.f32.mrb[106].mxu1 }
 0x72f   :  { %3239 = vst [vmem:[#allocation2 + $0x10] sm:$0xff] %v3144_v1  ;;  %v3147_v0 = vadd.f32 %v3146_v38, %v5622_v63  ;;  %v3551_v2 = vpop.f32.mrb[107].mxu1 }
 0x731   :  { %3240 = vst [vmem:[#allocation2 + $0x18] sm:$0xff] %v3147_v0 }
 0x734   :  { %v3151_v35 = vpop.f32.mrb[108].mxu1 }
 0x735   :  { %v3152_v8 = vadd.f32 %v3151_v35, %v5622_v63  ;;  %v3554_v19 = vpop.f32.mrb[109].mxu1 }
 0x736   :  { %v3154_v54 = vpop.f32.mrb[110].mxu1 }
 0x737   :  { %3241 = vst [vmem:[#allocation2 + $0x20] sm:$0xff] %v3152_v8  ;;  %v3155_v23 = vadd.f32 %v3154_v54, %v5622_v63  ;;  %v3555_v57 = vpop.f32.mrb[111].mxu1 }
 0x739   :  { %3242 = vst [vmem:[#allocation2 + $0x28] sm:$0xff] %v3155_v23 }
 0x73c   :  { %v3159_v18 = vpop.f32.mrb[112].mxu1 }
 0x73d   :  { %v3160_v46 = vadd.f32 %v3159_v18, %v5622_v63  ;;  %v3558_v60 = vpop.f32.mrb[113].mxu1 }
 0x73e   :  { %v3162_v29 = vpop.f32.mrb[114].mxu1 }
 0x73f   :  { %3243 = vst [vmem:[#allocation2 + $0x30] sm:$0xff] %v3160_v46  ;;  %v3163_v51 = vadd.f32 %v3162_v29, %v5622_v63  ;;  %v3559_v11 = vpop.f32.mrb[115].mxu1 }
 0x741   :  { %3244 = vst [vmem:[#allocation2 + $0x38] sm:$0xff] %v3163_v51 }
 0x744   :  { %v3167_v31 = vpop.f32.mrb[116].mxu1 }
 0x745   :  { %v3168_v59 = vadd.f32 %v3167_v31, %v5622_v63  ;;  %v3562_v13 = vpop.f32.mrb[117].mxu1 }
 0x746   :  { %v3170_v3 = vpop.f32.mrb[118].mxu1 }
 0x747   :  { %3245 = vst [vmem:[#allocation2 + $0x40] sm:$0xff] %v3168_v59  ;;  %v3171_v42 = vadd.f32 %v3170_v3, %v5622_v63  ;;  %v3563_v40 = vpop.f32.mrb[119].mxu1 }
 0x749   :  { %3246 = vst [vmem:[#allocation2 + $0x48] sm:$0xff] %v3171_v42 }
 0x74c   :  { %v3175_v16 = vpop.f32.mrb[120].mxu1 }
 0x74d   :  { %v3176_v55 = vadd.f32 %v3175_v16, %v5622_v63  ;;  %v3566_v30 = vpop.f32.mrb[121].mxu1 }
 0x74e   :  { %v3178_v17 = vpop.f32.mrb[122].mxu1 }
 0x74f   :  { %3247 = vst [vmem:[#allocation2 + $0x50] sm:$0xff] %v3176_v55  ;;  %v3179_v44 = vadd.f32 %v3178_v17, %v5622_v63  ;;  %v3567_v14 = vpop.f32.mrb[123].mxu1 }
 0x751   :  { %3248 = vst [vmem:[#allocation2 + $0x58] sm:$0xff] %v3179_v44 }
 0x754   :  { %v3183_v9 = vpop.f32.mrb[124].mxu1 }
 0x755   :  { %v3184_v43 = vadd.f32 %v3183_v9, %v5622_v63  ;;  %v3570_v37 = vpop.f32.mrb[125].mxu1 }
 0x756   :  { %v3186_v58 = vpop.f32.mrb[126].mxu1 }
 0x757   :  { %3249 = vst [vmem:[#allocation2 + $0x60] sm:$0xff] %v3184_v43  ;;  %v3187_v12 = vadd.f32 %v3186_v58, %v5622_v63  ;;  %v3571_v61 = vpop.f32.mrb[127].mxu1 }
 0x759   :  { %3250 = vst [vmem:[#allocation2 + $0x68] sm:$0xff] %v3187_v12 }
 0x75c   :  { %v3191_v62 = vpop.f32.mrb[128].mxu1 }
 0x75d   :  { %v3192_v21 = vadd.f32 %v3191_v62, %v5622_v63  ;;  %v3574_v7 = vpop.f32.mrb[129].mxu1 }
 0x75e   :  { %v3194_v36 = vpop.f32.mrb[130].mxu1 }
 0x75f   :  { %3251 = vst [vmem:[#allocation2 + $0x70] sm:$0xff] %v3192_v21  ;;  %v3195_v39 = vadd.f32 %v3194_v36, %v5622_v63  ;;  %v3575_v53 = vpop.f32.mrb[131].mxu1 }
 0x761   :  { %3252 = vst [vmem:[#allocation2 + $0x78] sm:$0xff] %v3195_v39 }
 0x764   :  { %v3199_v50 = vpop.f32.mrb[132].mxu1 }
 0x765   :  { %v3200_v28 = vadd.f32 %v3199_v50, %v5622_v63  ;;  %v3578_v47 = vpop.f32.mrb[133].mxu1 }
 0x766   :  { %v3202_v24 = vpop.f32.mrb[134].mxu1 }
 0x767   :  { %3253 = vst [vmem:[#allocation2 + $0x80] sm:$0xff] %v3200_v28  ;;  %v3203_v6 = vadd.f32 %v3202_v24, %v5622_v63  ;;  %v3579_v41 = vpop.f32.mrb[135].mxu1 }
 0x769   :  { %3254 = vst [vmem:[#allocation2 + $0x88] sm:$0xff] %v3203_v6 }
 0x76c   :  { %v3207_v48 = vpop.f32.mrb[136].mxu1 }
 0x76d   :  { %v3208_v15 = vadd.f32 %v3207_v48, %v5622_v63  ;;  %v3582_v20 = vpop.f32.mrb[137].mxu1 }
 0x76e   :  { %v3210_v49 = vpop.f32.mrb[138].mxu1 }
 0x76f   :  { %3255 = vst [vmem:[#allocation2 + $0x90] sm:$0xff] %v3208_v15  ;;  %v3211_v52 = vadd.f32 %v3210_v49, %v5622_v63  ;;  %v3583_v5 = vpop.f32.mrb[139].mxu1 }
 0x771   :  { %3256 = vst [vmem:[#allocation2 + $0x98] sm:$0xff] %v3211_v52 }
 0x774   :  { %v3215_v10 = vpop.f32.mrb[140].mxu1 }
 0x775   :  { %v3216_v26 = vadd.f32 %v3215_v10, %v5622_v63  ;;  %v3586_v33 = vpop.f32.mrb[141].mxu1 }
 0x776   :  { %v3218_v4 = vpop.f32.mrb[142].mxu1 }
 0x777   :  { %3257 = vst [vmem:[#allocation2 + $0xa0] sm:$0xff] %v3216_v26  ;;  %v3219_v27 = vadd.f32 %v3218_v4, %v5622_v63  ;;  %v3587_v34 = vpop.f32.mrb[143].mxu1 }
 0x779   :  { %3258 = vst [vmem:[#allocation2 + $0xa8] sm:$0xff] %v3219_v27 }
 0x77c   :  { %v3223_v45 = vpop.f32.mrb[144].mxu1 }
 0x77d   :  { %v3224_v56 = vadd.f32 %v3223_v45, %v5622_v63  ;;  %v3590_v32 = vpop.f32.mrb[145].mxu1 }
 0x77e   :  { %v3226_v22 = vpop.f32.mrb[146].mxu1 }
 0x77f   :  { %3259 = vst [vmem:[#allocation2 + $0xb0] sm:$0xff] %v3224_v56  ;;  %v3227_v1 = vadd.f32 %v3226_v22, %v5622_v63  ;;  %v3591_v25 = vpop.f32.mrb[147].mxu1 }
 0x781   :  { %3260 = vst [vmem:[#allocation2 + $0xb8] sm:$0xff] %v3227_v1 }
 0x782   :  { %v3135_v38 = vpop.f32.mrb[156].mxu0 }
 0x783   :  { %v3136_v0 = vadd.f32 %v3135_v38, %v5622_v63  ;;  %v3546_v2 = vpop.f32.mrb[157].mxu0 }
 0x784   :  { %v3138_v35 = vpop.f32.mrb[158].mxu0  ;;  %v3231_v8 = vpop.f32.mrb[148].mxu1 }
 0x785   :  { %3237 = vst [vmem:[#allocation2] sm:$0xff] %v3136_v0  ;;  %v3139_v19 = vadd.f32 %v3138_v35, %v5622_v63  ;;  %v3232_v54 = vadd.f32 %v3231_v8, %v5622_v63  ;;  %v3547_v23 = vpop.f32.mrb[159].mxu0  ;;  %v3594_v57 = vpop.f32.mrb[149].mxu1 }
 0x786   :  { %v3234_v18 = vpop.f32.mrb[150].mxu1 }
 0x787   :  { %3238 = vst [vmem:[#allocation2 + $0x8] sm:$0xff] %v3139_v19  ;;  %3261 = vst [vmem:[#allocation2 + $0xc0] sm:$0xff] %v3232_v54  ;;  %v3595_v46 = vpop.f32.mrb[151].mxu1 }
 0x788   :  { %3877 = shalt.err (!%p3874_p4)
}
 0x789   :  { %s3878_s19 = scalar_lea.hbm %s5668_s7, 3200 }
 0x78a   :  { %p3879_p5 = scmp.ne.s32.totalorder %s5668_s7, %s3878_s19  ;;  %p3882_p6 = scmp.lt.u32.totalorder %s3878_s19, %s5668_s7 }
 0x78c   :  { %p3884_p7 = pnand %p3882_p6, %p3879_p5 }
 0x78e   :  { %3887 = shalt.err (!%p3884_p7)
}
 0x78f   :  { %s3894_s3 = smov 128   ;;  %s3895_s6 = smov 8  }
 0x790   :  { %3273 = dma.vmem_to_hbm [thread:$0]  %s3268_s15, 3200, %s5668_s7, [#allocation3], %s3894_s3, %s3894_s3, %s3895_s6  }
 0x791   :  { %3888 = dma.done.wait [#allocation3], 3200  }
 0x792   :  { %3889 = vsyncadd [#allocation3], 4294964096 }
 0x793   :  { %3277 = vsyncpa [#allocation3], 1 }

</bundles_post_ra>
